<compile_context>
chip_gen: v7x
topology: tpu7x:2x2x1
jax: 0.10.0
libtpu: 0.0.40
codegen_flags: <defaults>
</compile_context>

<pallas_src>
import functools

import jax
import jax.numpy as jnp
from jax import lax
from jax.experimental import pallas as pl
from jax.experimental.pallas import tpu as pltpu


def _cnn_bilstm_attn_kernel(nl, T, B, D, H, C, L1, P1, L2, S, *refs):
    """Whole forward pass in one Pallas invocation (grid=(1,))."""
    it = iter(refs)
    x_ref = next(it)                                    # (T*B, D) time-major
    c1w0, c1w1, c1b = next(it), next(it), next(it)      # conv1 (BN folded)
    c2w0, c2w1, c2b = next(it), next(it), next(it)      # conv2 (BN folded)
    lstm = []
    for l in range(nl):
        n = 6 if l == 0 else 8
        lstm.append(tuple(next(it) for _ in range(n)))
    wa_f, wa_b, ba = next(it), next(it), next(it)       # attention linear
    wfc_f, wfc_b, bfc = next(it), next(it), next(it)    # final fc
    out_ref = next(it)                                  # (B, C)
    (conv1_s, pool1_s, conv2_s, xl_s,
     pre_f_s, pre_b_s, seq_f_s, seq_b_s) = (next(it) for _ in range(8))

    f32 = jnp.float32

    # ---------------- CNN front-end ----------------
    # Conv1d(k=2, padding=1) as two hoisted whole-sequence matmuls.
    x2d = x_ref[...]
    p0 = jnp.dot(x2d, c1w0[...], preferred_element_type=f32)  # tap0: x[l] -> out[l+1]
    p1 = jnp.dot(x2d, c1w1[...], preferred_element_type=f32)  # tap1: x[l] -> out[l]
    b1 = c1b[...]
    conv1_s[0:T * B, :] = p1 + b1
    conv1_s[T * B:L1 * B, :] = jnp.zeros((B, H), f32) + b1
    conv1_s[B:L1 * B, :] = conv1_s[B:L1 * B, :] + p0

    # ReLU + MaxPool1d(k=3, s=2); ReLU fused into the pooled reads
    # (max(relu(a),relu(b),relu(c)) == relu(max(a,b,c))).
    def relu_maxpool(src_ref, dst_ref, n_out):
        for j in range(n_out):
            a = src_ref[(2 * j) * B:(2 * j + 1) * B, :]
            b_ = src_ref[(2 * j + 1) * B:(2 * j + 2) * B, :]
            c_ = src_ref[(2 * j + 2) * B:(2 * j + 3) * B, :]
            m = jnp.maximum(jnp.maximum(a, b_), c_)
            dst_ref[j * B:(j + 1) * B, :] = jnp.maximum(m, 0.0)

    relu_maxpool(conv1_s, pool1_s, P1)

    x1 = pool1_s[...]
    q0 = jnp.dot(x1, c2w0[...], preferred_element_type=f32)
    q1 = jnp.dot(x1, c2w1[...], preferred_element_type=f32)
    b2 = c2b[...]
    conv2_s[0:P1 * B, :] = q1 + b2
    conv2_s[P1 * B:L2 * B, :] = jnp.zeros((B, H), f32) + b2
    conv2_s[B:L2 * B, :] = conv2_s[B:L2 * B, :] + q0

    relu_maxpool(conv2_s, xl_s, S)

    # ---------------- stacked bidirectional LSTM ----------------
    def run_direction(pre_ref, whh_ref, seq_out_ref, reverse):
        whh = whh_ref[...]

        def step(i, carry):
            h, c = carry
            t = (S - 1 - i) if reverse else i
            start = pl.multiple_of(t * B, B)
            gates = pre_ref[pl.ds(start, B), :] + jnp.dot(
                h, whh, preferred_element_type=f32)
            i_g = jax.nn.sigmoid(gates[:, 0 * H:1 * H])
            f_g = jax.nn.sigmoid(gates[:, 1 * H:2 * H])
            g_g = jnp.tanh(gates[:, 2 * H:3 * H])
            o_g = jax.nn.sigmoid(gates[:, 3 * H:4 * H])
            c_new = f_g * c + i_g * g_g
            h_new = o_g * jnp.tanh(c_new)
            seq_out_ref[pl.ds(start, B), :] = h_new
            return h_new, c_new

        z = jnp.zeros((B, H), f32)
        lax.fori_loop(0, S, step, (z, z), unroll=True)

    # Layer 0: input = CNN output. Input projection + bias hoisted out of loop.
    wih_f0, whh_f0, b_f0, wih_b0, whh_b0, b_b0 = lstm[0]
    x_l = xl_s[...]
    pre_f_s[...] = jnp.dot(x_l, wih_f0[...], preferred_element_type=f32) + b_f0[...]
    pre_b_s[...] = jnp.dot(x_l, wih_b0[...], preferred_element_type=f32) + b_b0[...]
    run_direction(pre_f_s, whh_f0, seq_f_s, reverse=False)
    run_direction(pre_b_s, whh_b0, seq_b_s, reverse=True)

    # Layers >= 1: input = concat(fwd, bwd) of previous layer, expressed as a
    # sum of two matmuls with the split W_ih halves (no in-kernel concat).
    for l in range(1, nl):
        wf_f, wb_f, whh_f, b_f, wf_b, wb_b, whh_b, b_b = lstm[l]
        sf = seq_f_s[...]
        sb = seq_b_s[...]
        pre_f_s[...] = (jnp.dot(sf, wf_f[...], preferred_element_type=f32)
                        + jnp.dot(sb, wb_f[...], preferred_element_type=f32)
                        + b_f[...])
        pre_b_s[...] = (jnp.dot(sf, wf_b[...], preferred_element_type=f32)
                        + jnp.dot(sb, wb_b[...], preferred_element_type=f32)
                        + b_b[...])
        run_direction(pre_f_s, whh_f, seq_f_s, reverse=False)
        run_direction(pre_b_s, whh_b, seq_b_s, reverse=True)

    # ---------------- attention + final fc ----------------
    sf = seq_f_s[...]                                    # (S*B, H)
    sb = seq_b_s[...]                                    # (S*B, H)
    scores = (jnp.sum(sf * wa_f[...], axis=1, keepdims=True)
              + jnp.sum(sb * wa_b[...], axis=1, keepdims=True)
              + ba[...])                                 # (S*B, 1)

    # softmax over time (per batch row), S is small and static
    score_t = [scores[t * B:(t + 1) * B, :] for t in range(S)]
    m = score_t[0]
    for t in range(1, S):
        m = jnp.maximum(m, score_t[t])
    exps = [jnp.exp(s - m) for s in score_t]
    denom = exps[0]
    for t in range(1, S):
        denom = denom + exps[t]

    attn_f = jnp.zeros((B, H), f32)
    attn_b = jnp.zeros((B, H), f32)
    for t in range(S):
        w_t = exps[t] / denom                            # (B, 1)
        attn_f = attn_f + w_t * sf[t * B:(t + 1) * B, :]
        attn_b = attn_b + w_t * sb[t * B:(t + 1) * B, :]

    out_ref[...] = (jnp.dot(attn_f, wfc_f[...], preferred_element_type=f32)
                    + jnp.dot(attn_b, wfc_b[...], preferred_element_type=f32)
                    + bfc[...])


def cnn_bilstm_attention_forward(x, params):
    """x: (B, T, input_dim) float32 -> (B, num_classes) float32."""
    B, T, D = x.shape
    H = params["lstm"][0]["fwd"]["whh"].shape[0]
    C = params["fc"]["w"].shape[1]
    nl = len(params["lstm"])
    eps = 1e-5

    L1 = T + 1                      # after conv1 (k=2, pad=1)
    P1 = (L1 - 3) // 2 + 1          # after pool1 (k=3, s=2)
    L2 = P1 + 1                     # after conv2
    S = (L2 - 3) // 2 + 1           # after pool2 (LSTM sequence length)
    assert P1 >= 1 and S >= 1, "sequence too short for the CNN front-end"

    # Pad batch to a multiple of 8 (f32 sublane count); padded rows are sliced off.
    Bp = ((B + 7) // 8) * 8
    xp = jnp.zeros((Bp, T, D), jnp.float32).at[:B].set(x)
    x2d = jnp.transpose(xp, (1, 0, 2)).reshape(T * Bp, D)   # time-major, flat

    def fold_bn(w0, w1, b, bn):
        scale = bn["gamma"] / jnp.sqrt(bn["var"] + eps)      # (1, H)
        shift = bn["beta"] - bn["mean"] * scale              # (1, H)
        return w0 * scale, w1 * scale, b * scale + shift

    c1w0, c1w1, c1b = fold_bn(params["conv1"]["w0"], params["conv1"]["w1"],
                              params["conv1"]["b"], params["bn1"])
    c2w0, c2w1, c2b = fold_bn(params["conv2"]["w0"], params["conv2"]["w1"],
                              params["conv2"]["b"], params["bn2"])

    args = [x2d, c1w0, c1w1, c1b, c2w0, c2w1, c2b]
    for l, layer in enumerate(params["lstm"]):
        fwd, bwd = layer["fwd"], layer["bwd"]
        if l == 0:
            args += [fwd["wih"], fwd["whh"], fwd["b"],
                     bwd["wih"], bwd["whh"], bwd["b"]]
        else:
            args += [fwd["wih"][:H], fwd["wih"][H:], fwd["whh"], fwd["b"],
                     bwd["wih"][:H], bwd["wih"][H:], bwd["whh"], bwd["b"]]
    wa = params["attn"]["w"]                                  # (1, 2H)
    args += [wa[:, :H], wa[:, H:], params["attn"]["b"]]
    wfc = params["fc"]["w"]                                   # (2H, C)
    args += [wfc[:H], wfc[H:], params["fc"]["b"]]

    in_specs = [pl.BlockSpec(a.shape, lambda i: (0, 0)) for a in args]

    scratch_shapes = [
        pltpu.VMEM((L1 * Bp, H), jnp.float32),      # conv1 output
        pltpu.VMEM((P1 * Bp, H), jnp.float32),      # pool1 output
        pltpu.VMEM((L2 * Bp, H), jnp.float32),      # conv2 output
        pltpu.VMEM((S * Bp, H), jnp.float32),       # pool2 output (LSTM input)
        pltpu.VMEM((S * Bp, 4 * H), jnp.float32),   # hoisted pre-activations, fwd
        pltpu.VMEM((S * Bp, 4 * H), jnp.float32),   # hoisted pre-activations, bwd
        pltpu.VMEM((S * Bp, H), jnp.float32),       # fwd hidden sequence
        pltpu.VMEM((S * Bp, H), jnp.float32),       # bwd hidden sequence
    ]

    kernel = functools.partial(_cnn_bilstm_attn_kernel,
                               nl, T, Bp, D, H, C, L1, P1, L2, S)

    grid_spec = pltpu.PrefetchScalarGridSpec(
        num_scalar_prefetch=0,
        grid=(1,),
        in_specs=in_specs,
        out_specs=pl.BlockSpec((Bp, C), lambda i: (0, 0)),
        scratch_shapes=scratch_shapes,
    )

    y = pl.pallas_call(
        kernel,
        out_shape=jax.ShapeDtypeStruct((Bp, C), jnp.float32),
        grid_spec=grid_spec,
        compiler_params=pltpu.CompilerParams(
            dimension_semantics=("arbitrary",)),
    )(*args)
    return y[:B]


def init_params(key, input_dim, hidden_dim, num_layers, num_classes):
    """Deterministic PyTorch-style parameter init (eval-mode BN stats included)."""
    H = hidden_dim
    keys = iter(jax.random.split(key, 64))

    def u(shape, bound):
        return jax.random.uniform(next(keys), shape, jnp.float32, -bound, bound)

    def conv_params(cin):
        bound = 1.0 / jnp.sqrt(jnp.float32(cin * 2))
        return dict(w0=u((cin, H), bound), w1=u((cin, H), bound),
                    b=u((1, H), bound))

    def bn_params():
        return dict(
            gamma=jax.random.uniform(next(keys), (1, H), jnp.float32, 0.5, 1.5),
            beta=u((1, H), 0.5),
            mean=u((1, H), 0.5),
            var=jax.random.uniform(next(keys), (1, H), jnp.float32, 0.5, 1.5),
        )

    def lstm_dir(in_features):
        bound = 1.0 / jnp.sqrt(jnp.float32(H))
        return dict(wih=u((in_features, 4 * H), bound),
                    whh=u((H, 4 * H), bound),
                    b=u((1, 4 * H), bound) + u((1, 4 * H), bound))  # b_ih + b_hh

    lstm = []
    for l in range(num_layers):
        in_f = H if l == 0 else 2 * H
        lstm.append(dict(fwd=lstm_dir(in_f), bwd=lstm_dir(in_f)))

    bound_a = 1.0 / jnp.sqrt(jnp.float32(2 * H))
    attn = dict(w=u((1, 2 * H), bound_a), b=u((1, 1), bound_a))
    fc = dict(w=u((2 * H, num_classes), bound_a), b=u((1, num_classes), bound_a))

    return dict(conv1=conv_params(input_dim), bn1=bn_params(),
                conv2=conv_params(H), bn2=bn_params(),
                lstm=lstm, attn=attn, fc=fc)


def reference_forward(x, params):
    """Pure-JAX reference mirroring the PyTorch module (eval mode)."""
    eps = 1e-5
    H = params["lstm"][0]["fwd"]["whh"].shape[0]

    def conv_bn_relu_pool(seq, conv, bn):
        Bb, L, Cin = seq.shape
        zero = jnp.zeros((Bb, 1, Cin), jnp.float32)
        xp = jnp.concatenate([zero, seq, zero], axis=1)        # padding=1
        out = (jnp.einsum("blc,ch->blh", xp[:, :L + 1, :], conv["w0"])
               + jnp.einsum("blc,ch->blh", xp[:, 1:L + 2, :], conv["w1"])
               + conv["b"])
        out = (out - bn["mean"]) / jnp.sqrt(bn["var"] + eps) * bn["gamma"] + bn["beta"]
        out = jnp.maximum(out, 0.0)
        Lo = (out.shape[1] - 3) // 2 + 1
        out = jnp.stack([jnp.max(out[:, 2 * j:2 * j + 3, :], axis=1)
                         for j in range(Lo)], axis=1)
        return out

    h = conv_bn_relu_pool(x, params["conv1"], params["bn1"])
    h = conv_bn_relu_pool(h, params["conv2"], params["bn2"])

    def run_dir(seq, p, reverse):
        Bb = seq.shape[0]

        def cell(carry, x_t):
            hh, cc = carry
            g = x_t @ p["wih"] + hh @ p["whh"] + p["b"]
            i = jax.nn.sigmoid(g[:, 0 * H:1 * H])
            f = jax.nn.sigmoid(g[:, 1 * H:2 * H])
            gg = jnp.tanh(g[:, 2 * H:3 * H])
            o = jax.nn.sigmoid(g[:, 3 * H:4 * H])
            cc = f * cc + i * gg
            hh = o * jnp.tanh(cc)
            return (hh, cc), hh

        tb = jnp.transpose(seq, (1, 0, 2))
        if reverse:
            tb = tb[::-1]
        h0 = jnp.zeros((Bb, H), jnp.float32)
        (_, _), hs = lax.scan(cell, (h0, h0), tb)
        if reverse:
            hs = hs[::-1]
        return jnp.transpose(hs, (1, 0, 2))

    out = h
    for layer in params["lstm"]:
        out = jnp.concatenate([run_dir(out, layer["fwd"], False),
                               run_dir(out, layer["bwd"], True)], axis=-1)

    scores = jnp.einsum("bsf,of->bso", out, params["attn"]["w"]) + params["attn"]["b"]
    w = jax.nn.softmax(scores, axis=1)                  # (B, S, 1)
    attn_out = jnp.einsum("bso,bsf->bf", w, out)        # (B, 2H)
    return attn_out @ params["fc"]["w"] + params["fc"]["b"]


if __name__ == "__main__":
    B, T, D, H, NL, C = 2, 16, 16, 32, 2, 3   # batch, seq, input_dim, hidden, layers, classes

    key = jax.random.PRNGKey(0)
    k_x, k_p = jax.random.split(key)
    x = jax.random.normal(k_x, (B, T, D), jnp.float32)
    params = init_params(k_p, D, H, NL, C)

    y = cnn_bilstm_attention_forward(x, params)
    y = jax.block_until_ready(y)

    y_ref = reference_forward(x, params)
    assert y.shape == (B, C)
    assert jnp.allclose(y, y_ref, atol=1e-3, rtol=1e-3), (y, y_ref)

    print("KERNEL_OK")
</pallas_src>

<mosaic_0001>
module attributes {stable_mosaic.version = 11 : i64} {
  func.func @_cnn_bilstm_attn_kernel(%arg0: i32, %arg1: memref<128x16xf32, #tpu.memory_space<vmem>>, %arg2: memref<16x32xf32, #tpu.memory_space<vmem>>, %arg3: memref<16x32xf32, #tpu.memory_space<vmem>>, %arg4: memref<1x32xf32, #tpu.memory_space<vmem>>, %arg5: memref<32x32xf32, #tpu.memory_space<vmem>>, %arg6: memref<32x32xf32, #tpu.memory_space<vmem>>, %arg7: memref<1x32xf32, #tpu.memory_space<vmem>>, %arg8: memref<32x128xf32, #tpu.memory_space<vmem>>, %arg9: memref<32x128xf32, #tpu.memory_space<vmem>>, %arg10: memref<1x128xf32, #tpu.memory_space<vmem>>, %arg11: memref<32x128xf32, #tpu.memory_space<vmem>>, %arg12: memref<32x128xf32, #tpu.memory_space<vmem>>, %arg13: memref<1x128xf32, #tpu.memory_space<vmem>>, %arg14: memref<32x128xf32, #tpu.memory_space<vmem>>, %arg15: memref<32x128xf32, #tpu.memory_space<vmem>>, %arg16: memref<32x128xf32, #tpu.memory_space<vmem>>, %arg17: memref<1x128xf32, #tpu.memory_space<vmem>>, %arg18: memref<32x128xf32, #tpu.memory_space<vmem>>, %arg19: memref<32x128xf32, #tpu.memory_space<vmem>>, %arg20: memref<32x128xf32, #tpu.memory_space<vmem>>, %arg21: memref<1x128xf32, #tpu.memory_space<vmem>>, %arg22: memref<1x32xf32, #tpu.memory_space<vmem>>, %arg23: memref<1x32xf32, #tpu.memory_space<vmem>>, %arg24: memref<1x1xf32, #tpu.memory_space<vmem>>, %arg25: memref<32x3xf32, #tpu.memory_space<vmem>>, %arg26: memref<32x3xf32, #tpu.memory_space<vmem>>, %arg27: memref<1x3xf32, #tpu.memory_space<vmem>>, %arg28: memref<8x3xf32, #tpu.memory_space<vmem>>, %arg29: memref<136x32xf32, #tpu.memory_space<vmem>>, %arg30: memref<64x32xf32, #tpu.memory_space<vmem>>, %arg31: memref<72x32xf32, #tpu.memory_space<vmem>>, %arg32: memref<32x32xf32, #tpu.memory_space<vmem>>, %arg33: memref<32x128xf32, #tpu.memory_space<vmem>>, %arg34: memref<32x128xf32, #tpu.memory_space<vmem>>, %arg35: memref<32x32xf32, #tpu.memory_space<vmem>>, %arg36: memref<32x32xf32, #tpu.memory_space<vmem>>) attributes {dimension_semantics = [#tpu.dimension_semantics<arbitrary>], iteration_bounds = array<i64: 1>, scalar_prefetch = 0 : i64, scratch_operands = 8 : i64, tpu.core_type = #tpu.core_type<tc>, window_params = [{pipeline_mode = #tpu.pipeline_mode<synchronous>, transform_indices = @transform_0, window_bounds = array<i64: 128, 16>}, {pipeline_mode = #tpu.pipeline_mode<synchronous>, transform_indices = @transform_1, window_bounds = array<i64: 16, 32>}, {pipeline_mode = #tpu.pipeline_mode<synchronous>, transform_indices = @transform_2, window_bounds = array<i64: 16, 32>}, {pipeline_mode = #tpu.pipeline_mode<synchronous>, transform_indices = @transform_3, window_bounds = array<i64: 1, 32>}, {pipeline_mode = #tpu.pipeline_mode<synchronous>, transform_indices = @transform_4, window_bounds = array<i64: 32, 32>}, {pipeline_mode = #tpu.pipeline_mode<synchronous>, transform_indices = @transform_5, window_bounds = array<i64: 32, 32>}, {pipeline_mode = #tpu.pipeline_mode<synchronous>, transform_indices = @transform_6, window_bounds = array<i64: 1, 32>}, {pipeline_mode = #tpu.pipeline_mode<synchronous>, transform_indices = @transform_7, window_bounds = array<i64: 32, 128>}, {pipeline_mode = #tpu.pipeline_mode<synchronous>, transform_indices = @transform_8, window_bounds = array<i64: 32, 128>}, {pipeline_mode = #tpu.pipeline_mode<synchronous>, transform_indices = @transform_9, window_bounds = array<i64: 1, 128>}, {pipeline_mode = #tpu.pipeline_mode<synchronous>, transform_indices = @transform_10, window_bounds = array<i64: 32, 128>}, {pipeline_mode = #tpu.pipeline_mode<synchronous>, transform_indices = @transform_11, window_bounds = array<i64: 32, 128>}, {pipeline_mode = #tpu.pipeline_mode<synchronous>, transform_indices = @transform_12, window_bounds = array<i64: 1, 128>}, {pipeline_mode = #tpu.pipeline_mode<synchronous>, transform_indices = @transform_13, window_bounds = array<i64: 32, 128>}, {pipeline_mode = #tpu.pipeline_mode<synchronous>, transform_indices = @transform_14, window_bounds = array<i64: 32, 128>}, {pipeline_mode = #tpu.pipeline_mode<synchronous>, transform_indices = @transform_15, window_bounds = array<i64: 32, 128>}, {pipeline_mode = #tpu.pipeline_mode<synchronous>, transform_indices = @transform_16, window_bounds = array<i64: 1, 128>}, {pipeline_mode = #tpu.pipeline_mode<synchronous>, transform_indices = @transform_17, window_bounds = array<i64: 32, 128>}, {pipeline_mode = #tpu.pipeline_mode<synchronous>, transform_indices = @transform_18, window_bounds = array<i64: 32, 128>}, {pipeline_mode = #tpu.pipeline_mode<synchronous>, transform_indices = @transform_19, window_bounds = array<i64: 32, 128>}, {pipeline_mode = #tpu.pipeline_mode<synchronous>, transform_indices = @transform_20, window_bounds = array<i64: 1, 128>}, {pipeline_mode = #tpu.pipeline_mode<synchronous>, transform_indices = @transform_21, window_bounds = array<i64: 1, 32>}, {pipeline_mode = #tpu.pipeline_mode<synchronous>, transform_indices = @transform_22, window_bounds = array<i64: 1, 32>}, {pipeline_mode = #tpu.pipeline_mode<synchronous>, transform_indices = @transform_23, window_bounds = array<i64: 1, 1>}, {pipeline_mode = #tpu.pipeline_mode<synchronous>, transform_indices = @transform_24, window_bounds = array<i64: 32, 3>}, {pipeline_mode = #tpu.pipeline_mode<synchronous>, transform_indices = @transform_25, window_bounds = array<i64: 32, 3>}, {pipeline_mode = #tpu.pipeline_mode<synchronous>, transform_indices = @transform_26, window_bounds = array<i64: 1, 3>}, {pipeline_mode = #tpu.pipeline_mode<synchronous>, transform_indices = @transform_27, window_bounds = array<i64: 8, 3>}]} {
    %c0 = arith.constant 0 : index
    %c0_0 = arith.constant 0 : index
    %0 = vector.load %arg1[%c0, %c0_0] : memref<128x16xf32, #tpu.memory_space<vmem>>, vector<128x16xf32>
    %c0_1 = arith.constant 0 : index
    %c0_2 = arith.constant 0 : index
    %1 = vector.load %arg2[%c0_1, %c0_2] : memref<16x32xf32, #tpu.memory_space<vmem>>, vector<16x32xf32>
    %cst = arith.constant dense<0.000000e+00> : vector<128x32xf32>
    %2 = tpu.matmul %0, %1, %cst {dimension_numbers = #tpu.dot_dimension_numbers<[1], [0], [0], [1], [0, 0, 1, 1], [], []>} : vector<128x16xf32>, vector<16x32xf32>, vector<128x32xf32> -> vector<128x32xf32>
    %c0_3 = arith.constant 0 : index
    %c0_4 = arith.constant 0 : index
    %3 = vector.load %arg3[%c0_3, %c0_4] : memref<16x32xf32, #tpu.memory_space<vmem>>, vector<16x32xf32>
    %cst_5 = arith.constant dense<0.000000e+00> : vector<128x32xf32>
    %4 = tpu.matmul %0, %3, %cst_5 {dimension_numbers = #tpu.dot_dimension_numbers<[1], [0], [0], [1], [0, 0, 1, 1], [], []>} : vector<128x16xf32>, vector<16x32xf32>, vector<128x32xf32> -> vector<128x32xf32>
    %c0_6 = arith.constant 0 : index
    %c0_7 = arith.constant 0 : index
    %5 = vector.load %arg4[%c0_6, %c0_7] : memref<1x32xf32, #tpu.memory_space<vmem>>, vector<1x32xf32>
    %6 = vector.broadcast %5 : vector<1x32xf32> to vector<128x32xf32>
    %7 = arith.addf %4, %6 : vector<128x32xf32>
    %c0_8 = arith.constant 0 : index
    %c0_9 = arith.constant 0 : index
    %8 = vector.load %arg29[%c0_8, %c0_9] : memref<136x32xf32, #tpu.memory_space<vmem>>, vector<128x32xf32>
    tpu.vector_store %arg29[%c0_8, %c0_9], %7 {strides = array<i32>} : memref<136x32xf32, #tpu.memory_space<vmem>>, vector<128x32xf32>,
    %cst_10 = arith.constant 0.000000e+00 : f32
    %9 = vector.broadcast %cst_10 : f32 to vector<8x32xf32>
    %10 = vector.broadcast %5 : vector<1x32xf32> to vector<8x32xf32>
    %11 = arith.addf %9, %10 : vector<8x32xf32>
    %c128 = arith.constant 128 : index
    %c0_11 = arith.constant 0 : index
    %12 = vector.load %arg29[%c128, %c0_11] : memref<136x32xf32, #tpu.memory_space<vmem>>, vector<8x32xf32>
    tpu.vector_store %arg29[%c128, %c0_11], %11 {strides = array<i32>} : memref<136x32xf32, #tpu.memory_space<vmem>>, vector<8x32xf32>,
    %c8 = arith.constant 8 : index
    %c0_12 = arith.constant 0 : index
    %13 = vector.load %arg29[%c8, %c0_12] : memref<136x32xf32, #tpu.memory_space<vmem>>, vector<128x32xf32>
    %14 = arith.addf %13, %2 : vector<128x32xf32>
    %c8_13 = arith.constant 8 : index
    %c0_14 = arith.constant 0 : index
    %15 = vector.load %arg29[%c8_13, %c0_14] : memref<136x32xf32, #tpu.memory_space<vmem>>, vector<128x32xf32>
    tpu.vector_store %arg29[%c8_13, %c0_14], %14 {strides = array<i32>} : memref<136x32xf32, #tpu.memory_space<vmem>>, vector<128x32xf32>,
    %c0_15 = arith.constant 0 : index
    %c0_16 = arith.constant 0 : index
    %16 = vector.load %arg29[%c0_15, %c0_16] : memref<136x32xf32, #tpu.memory_space<vmem>>, vector<8x32xf32>
    %c8_17 = arith.constant 8 : index
    %c0_18 = arith.constant 0 : index
    %17 = vector.load %arg29[%c8_17, %c0_18] : memref<136x32xf32, #tpu.memory_space<vmem>>, vector<8x32xf32>
    %c16 = arith.constant 16 : index
    %c0_19 = arith.constant 0 : index
    %18 = vector.load %arg29[%c16, %c0_19] : memref<136x32xf32, #tpu.memory_space<vmem>>, vector<8x32xf32>
    %19 = arith.maximumf %16, %17 : vector<8x32xf32>
    %20 = arith.maximumf %19, %18 : vector<8x32xf32>
    %cst_20 = arith.constant 0.000000e+00 : f32
    %21 = vector.broadcast %cst_20 : f32 to vector<8x32xf32>
    %22 = arith.maximumf %20, %21 : vector<8x32xf32>
    %c0_21 = arith.constant 0 : index
    %c0_22 = arith.constant 0 : index
    %23 = vector.load %arg30[%c0_21, %c0_22] : memref<64x32xf32, #tpu.memory_space<vmem>>, vector<8x32xf32>
    tpu.vector_store %arg30[%c0_21, %c0_22], %22 {strides = array<i32>} : memref<64x32xf32, #tpu.memory_space<vmem>>, vector<8x32xf32>,
    %c16_23 = arith.constant 16 : index
    %c0_24 = arith.constant 0 : index
    %24 = vector.load %arg29[%c16_23, %c0_24] : memref<136x32xf32, #tpu.memory_space<vmem>>, vector<8x32xf32>
    %c24 = arith.constant 24 : index
    %c0_25 = arith.constant 0 : index
    %25 = vector.load %arg29[%c24, %c0_25] : memref<136x32xf32, #tpu.memory_space<vmem>>, vector<8x32xf32>
    %c32 = arith.constant 32 : index
    %c0_26 = arith.constant 0 : index
    %26 = vector.load %arg29[%c32, %c0_26] : memref<136x32xf32, #tpu.memory_space<vmem>>, vector<8x32xf32>
    %27 = arith.maximumf %24, %25 : vector<8x32xf32>
    %28 = arith.maximumf %27, %26 : vector<8x32xf32>
    %cst_27 = arith.constant 0.000000e+00 : f32
    %29 = vector.broadcast %cst_27 : f32 to vector<8x32xf32>
    %30 = arith.maximumf %28, %29 : vector<8x32xf32>
    %c8_28 = arith.constant 8 : index
    %c0_29 = arith.constant 0 : index
    %31 = vector.load %arg30[%c8_28, %c0_29] : memref<64x32xf32, #tpu.memory_space<vmem>>, vector<8x32xf32>
    tpu.vector_store %arg30[%c8_28, %c0_29], %30 {strides = array<i32>} : memref<64x32xf32, #tpu.memory_space<vmem>>, vector<8x32xf32>,
    %c32_30 = arith.constant 32 : index
    %c0_31 = arith.constant 0 : index
    %32 = vector.load %arg29[%c32_30, %c0_31] : memref<136x32xf32, #tpu.memory_space<vmem>>, vector<8x32xf32>
    %c40 = arith.constant 40 : index
    %c0_32 = arith.constant 0 : index
    %33 = vector.load %arg29[%c40, %c0_32] : memref<136x32xf32, #tpu.memory_space<vmem>>, vector<8x32xf32>
    %c48 = arith.constant 48 : index
    %c0_33 = arith.constant 0 : index
    %34 = vector.load %arg29[%c48, %c0_33] : memref<136x32xf32, #tpu.memory_space<vmem>>, vector<8x32xf32>
    %35 = arith.maximumf %32, %33 : vector<8x32xf32>
    %36 = arith.maximumf %35, %34 : vector<8x32xf32>
    %cst_34 = arith.constant 0.000000e+00 : f32
    %37 = vector.broadcast %cst_34 : f32 to vector<8x32xf32>
    %38 = arith.maximumf %36, %37 : vector<8x32xf32>
    %c16_35 = arith.constant 16 : index
    %c0_36 = arith.constant 0 : index
    %39 = vector.load %arg30[%c16_35, %c0_36] : memref<64x32xf32, #tpu.memory_space<vmem>>, vector<8x32xf32>
    tpu.vector_store %arg30[%c16_35, %c0_36], %38 {strides = array<i32>} : memref<64x32xf32, #tpu.memory_space<vmem>>, vector<8x32xf32>,
    %c48_37 = arith.constant 48 : index
    %c0_38 = arith.constant 0 : index
    %40 = vector.load %arg29[%c48_37, %c0_38] : memref<136x32xf32, #tpu.memory_space<vmem>>, vector<8x32xf32>
    %c56 = arith.constant 56 : index
    %c0_39 = arith.constant 0 : index
    %41 = vector.load %arg29[%c56, %c0_39] : memref<136x32xf32, #tpu.memory_space<vmem>>, vector<8x32xf32>
    %c64 = arith.constant 64 : index
    %c0_40 = arith.constant 0 : index
    %42 = vector.load %arg29[%c64, %c0_40] : memref<136x32xf32, #tpu.memory_space<vmem>>, vector<8x32xf32>
    %43 = arith.maximumf %40, %41 : vector<8x32xf32>
    %44 = arith.maximumf %43, %42 : vector<8x32xf32>
    %cst_41 = arith.constant 0.000000e+00 : f32
    %45 = vector.broadcast %cst_41 : f32 to vector<8x32xf32>
    %46 = arith.maximumf %44, %45 : vector<8x32xf32>
    %c24_42 = arith.constant 24 : index
    %c0_43 = arith.constant 0 : index
    %47 = vector.load %arg30[%c24_42, %c0_43] : memref<64x32xf32, #tpu.memory_space<vmem>>, vector<8x32xf32>
    tpu.vector_store %arg30[%c24_42, %c0_43], %46 {strides = array<i32>} : memref<64x32xf32, #tpu.memory_space<vmem>>, vector<8x32xf32>,
    %c64_44 = arith.constant 64 : index
    %c0_45 = arith.constant 0 : index
    %48 = vector.load %arg29[%c64_44, %c0_45] : memref<136x32xf32, #tpu.memory_space<vmem>>, vector<8x32xf32>
    %c72 = arith.constant 72 : index
    %c0_46 = arith.constant 0 : index
    %49 = vector.load %arg29[%c72, %c0_46] : memref<136x32xf32, #tpu.memory_space<vmem>>, vector<8x32xf32>
    %c80 = arith.constant 80 : index
    %c0_47 = arith.constant 0 : index
    %50 = vector.load %arg29[%c80, %c0_47] : memref<136x32xf32, #tpu.memory_space<vmem>>, vector<8x32xf32>
    %51 = arith.maximumf %48, %49 : vector<8x32xf32>
    %52 = arith.maximumf %51, %50 : vector<8x32xf32>
    %cst_48 = arith.constant 0.000000e+00 : f32
    %53 = vector.broadcast %cst_48 : f32 to vector<8x32xf32>
    %54 = arith.maximumf %52, %53 : vector<8x32xf32>
    %c32_49 = arith.constant 32 : index
    %c0_50 = arith.constant 0 : index
    %55 = vector.load %arg30[%c32_49, %c0_50] : memref<64x32xf32, #tpu.memory_space<vmem>>, vector<8x32xf32>
    tpu.vector_store %arg30[%c32_49, %c0_50], %54 {strides = array<i32>} : memref<64x32xf32, #tpu.memory_space<vmem>>, vector<8x32xf32>,
    %c80_51 = arith.constant 80 : index
    %c0_52 = arith.constant 0 : index
    %56 = vector.load %arg29[%c80_51, %c0_52] : memref<136x32xf32, #tpu.memory_space<vmem>>, vector<8x32xf32>
    %c88 = arith.constant 88 : index
    %c0_53 = arith.constant 0 : index
    %57 = vector.load %arg29[%c88, %c0_53] : memref<136x32xf32, #tpu.memory_space<vmem>>, vector<8x32xf32>
    %c96 = arith.constant 96 : index
    %c0_54 = arith.constant 0 : index
    %58 = vector.load %arg29[%c96, %c0_54] : memref<136x32xf32, #tpu.memory_space<vmem>>, vector<8x32xf32>
    %59 = arith.maximumf %56, %57 : vector<8x32xf32>
    %60 = arith.maximumf %59, %58 : vector<8x32xf32>
    %cst_55 = arith.constant 0.000000e+00 : f32
    %61 = vector.broadcast %cst_55 : f32 to vector<8x32xf32>
    %62 = arith.maximumf %60, %61 : vector<8x32xf32>
    %c40_56 = arith.constant 40 : index
    %c0_57 = arith.constant 0 : index
    %63 = vector.load %arg30[%c40_56, %c0_57] : memref<64x32xf32, #tpu.memory_space<vmem>>, vector<8x32xf32>
    tpu.vector_store %arg30[%c40_56, %c0_57], %62 {strides = array<i32>} : memref<64x32xf32, #tpu.memory_space<vmem>>, vector<8x32xf32>,
    %c96_58 = arith.constant 96 : index
    %c0_59 = arith.constant 0 : index
    %64 = vector.load %arg29[%c96_58, %c0_59] : memref<136x32xf32, #tpu.memory_space<vmem>>, vector<8x32xf32>
    %c104 = arith.constant 104 : index
    %c0_60 = arith.constant 0 : index
    %65 = vector.load %arg29[%c104, %c0_60] : memref<136x32xf32, #tpu.memory_space<vmem>>, vector<8x32xf32>
    %c112 = arith.constant 112 : index
    %c0_61 = arith.constant 0 : index
    %66 = vector.load %arg29[%c112, %c0_61] : memref<136x32xf32, #tpu.memory_space<vmem>>, vector<8x32xf32>
    %67 = arith.maximumf %64, %65 : vector<8x32xf32>
    %68 = arith.maximumf %67, %66 : vector<8x32xf32>
    %cst_62 = arith.constant 0.000000e+00 : f32
    %69 = vector.broadcast %cst_62 : f32 to vector<8x32xf32>
    %70 = arith.maximumf %68, %69 : vector<8x32xf32>
    %c48_63 = arith.constant 48 : index
    %c0_64 = arith.constant 0 : index
    %71 = vector.load %arg30[%c48_63, %c0_64] : memref<64x32xf32, #tpu.memory_space<vmem>>, vector<8x32xf32>
    tpu.vector_store %arg30[%c48_63, %c0_64], %70 {strides = array<i32>} : memref<64x32xf32, #tpu.memory_space<vmem>>, vector<8x32xf32>,
    %c112_65 = arith.constant 112 : index
    %c0_66 = arith.constant 0 : index
    %72 = vector.load %arg29[%c112_65, %c0_66] : memref<136x32xf32, #tpu.memory_space<vmem>>, vector<8x32xf32>
    %c120 = arith.constant 120 : index
    %c0_67 = arith.constant 0 : index
    %73 = vector.load %arg29[%c120, %c0_67] : memref<136x32xf32, #tpu.memory_space<vmem>>, vector<8x32xf32>
    %c128_68 = arith.constant 128 : index
    %c0_69 = arith.constant 0 : index
    %74 = vector.load %arg29[%c128_68, %c0_69] : memref<136x32xf32, #tpu.memory_space<vmem>>, vector<8x32xf32>
    %75 = arith.maximumf %72, %73 : vector<8x32xf32>
    %76 = arith.maximumf %75, %74 : vector<8x32xf32>
    %cst_70 = arith.constant 0.000000e+00 : f32
    %77 = vector.broadcast %cst_70 : f32 to vector<8x32xf32>
    %78 = arith.maximumf %76, %77 : vector<8x32xf32>
    %c56_71 = arith.constant 56 : index
    %c0_72 = arith.constant 0 : index
    %79 = vector.load %arg30[%c56_71, %c0_72] : memref<64x32xf32, #tpu.memory_space<vmem>>, vector<8x32xf32>
    tpu.vector_store %arg30[%c56_71, %c0_72], %78 {strides = array<i32>} : memref<64x32xf32, #tpu.memory_space<vmem>>, vector<8x32xf32>,
    %c0_73 = arith.constant 0 : index
    %c0_74 = arith.constant 0 : index
    %80 = vector.load %arg30[%c0_73, %c0_74] : memref<64x32xf32, #tpu.memory_space<vmem>>, vector<64x32xf32>
    %c0_75 = arith.constant 0 : index
    %c0_76 = arith.constant 0 : index
    %81 = vector.load %arg5[%c0_75, %c0_76] : memref<32x32xf32, #tpu.memory_space<vmem>>, vector<32x32xf32>
    %cst_77 = arith.constant dense<0.000000e+00> : vector<64x32xf32>
    %82 = tpu.matmul %80, %81, %cst_77 {dimension_numbers = #tpu.dot_dimension_numbers<[1], [0], [0], [1], [0, 0, 1, 1], [], []>} : vector<64x32xf32>, vector<32x32xf32>, vector<64x32xf32> -> vector<64x32xf32>
    %c0_78 = arith.constant 0 : index
    %c0_79 = arith.constant 0 : index
    %83 = vector.load %arg6[%c0_78, %c0_79] : memref<32x32xf32, #tpu.memory_space<vmem>>, vector<32x32xf32>
    %cst_80 = arith.constant dense<0.000000e+00> : vector<64x32xf32>
    %84 = tpu.matmul %80, %83, %cst_80 {dimension_numbers = #tpu.dot_dimension_numbers<[1], [0], [0], [1], [0, 0, 1, 1], [], []>} : vector<64x32xf32>, vector<32x32xf32>, vector<64x32xf32> -> vector<64x32xf32>
    %c0_81 = arith.constant 0 : index
    %c0_82 = arith.constant 0 : index
    %85 = vector.load %arg7[%c0_81, %c0_82] : memref<1x32xf32, #tpu.memory_space<vmem>>, vector<1x32xf32>
    %86 = vector.broadcast %85 : vector<1x32xf32> to vector<64x32xf32>
    %87 = arith.addf %84, %86 : vector<64x32xf32>
    %c0_83 = arith.constant 0 : index
    %c0_84 = arith.constant 0 : index
    %88 = vector.load %arg31[%c0_83, %c0_84] : memref<72x32xf32, #tpu.memory_space<vmem>>, vector<64x32xf32>
    tpu.vector_store %arg31[%c0_83, %c0_84], %87 {strides = array<i32>} : memref<72x32xf32, #tpu.memory_space<vmem>>, vector<64x32xf32>,
    %cst_85 = arith.constant 0.000000e+00 : f32
    %89 = vector.broadcast %cst_85 : f32 to vector<8x32xf32>
    %90 = vector.broadcast %85 : vector<1x32xf32> to vector<8x32xf32>
    %91 = arith.addf %89, %90 : vector<8x32xf32>
    %c64_86 = arith.constant 64 : index
    %c0_87 = arith.constant 0 : index
    %92 = vector.load %arg31[%c64_86, %c0_87] : memref<72x32xf32, #tpu.memory_space<vmem>>, vector<8x32xf32>
    tpu.vector_store %arg31[%c64_86, %c0_87], %91 {strides = array<i32>} : memref<72x32xf32, #tpu.memory_space<vmem>>, vector<8x32xf32>,
    %c8_88 = arith.constant 8 : index
    %c0_89 = arith.constant 0 : index
    %93 = vector.load %arg31[%c8_88, %c0_89] : memref<72x32xf32, #tpu.memory_space<vmem>>, vector<64x32xf32>
    %94 = arith.addf %93, %82 : vector<64x32xf32>
    %c8_90 = arith.constant 8 : index
    %c0_91 = arith.constant 0 : index
    %95 = vector.load %arg31[%c8_90, %c0_91] : memref<72x32xf32, #tpu.memory_space<vmem>>, vector<64x32xf32>
    tpu.vector_store %arg31[%c8_90, %c0_91], %94 {strides = array<i32>} : memref<72x32xf32, #tpu.memory_space<vmem>>, vector<64x32xf32>,
    %c0_92 = arith.constant 0 : index
    %c0_93 = arith.constant 0 : index
    %96 = vector.load %arg31[%c0_92, %c0_93] : memref<72x32xf32, #tpu.memory_space<vmem>>, vector<8x32xf32>
    %c8_94 = arith.constant 8 : index
    %c0_95 = arith.constant 0 : index
    %97 = vector.load %arg31[%c8_94, %c0_95] : memref<72x32xf32, #tpu.memory_space<vmem>>, vector<8x32xf32>
    %c16_96 = arith.constant 16 : index
    %c0_97 = arith.constant 0 : index
    %98 = vector.load %arg31[%c16_96, %c0_97] : memref<72x32xf32, #tpu.memory_space<vmem>>, vector<8x32xf32>
    %99 = arith.maximumf %96, %97 : vector<8x32xf32>
    %100 = arith.maximumf %99, %98 : vector<8x32xf32>
    %cst_98 = arith.constant 0.000000e+00 : f32
    %101 = vector.broadcast %cst_98 : f32 to vector<8x32xf32>
    %102 = arith.maximumf %100, %101 : vector<8x32xf32>
    %c0_99 = arith.constant 0 : index
    %c0_100 = arith.constant 0 : index
    %103 = vector.load %arg32[%c0_99, %c0_100] : memref<32x32xf32, #tpu.memory_space<vmem>>, vector<8x32xf32>
    tpu.vector_store %arg32[%c0_99, %c0_100], %102 {strides = array<i32>} : memref<32x32xf32, #tpu.memory_space<vmem>>, vector<8x32xf32>,
    %c16_101 = arith.constant 16 : index
    %c0_102 = arith.constant 0 : index
    %104 = vector.load %arg31[%c16_101, %c0_102] : memref<72x32xf32, #tpu.memory_space<vmem>>, vector<8x32xf32>
    %c24_103 = arith.constant 24 : index
    %c0_104 = arith.constant 0 : index
    %105 = vector.load %arg31[%c24_103, %c0_104] : memref<72x32xf32, #tpu.memory_space<vmem>>, vector<8x32xf32>
    %c32_105 = arith.constant 32 : index
    %c0_106 = arith.constant 0 : index
    %106 = vector.load %arg31[%c32_105, %c0_106] : memref<72x32xf32, #tpu.memory_space<vmem>>, vector<8x32xf32>
    %107 = arith.maximumf %104, %105 : vector<8x32xf32>
    %108 = arith.maximumf %107, %106 : vector<8x32xf32>
    %cst_107 = arith.constant 0.000000e+00 : f32
    %109 = vector.broadcast %cst_107 : f32 to vector<8x32xf32>
    %110 = arith.maximumf %108, %109 : vector<8x32xf32>
    %c8_108 = arith.constant 8 : index
    %c0_109 = arith.constant 0 : index
    %111 = vector.load %arg32[%c8_108, %c0_109] : memref<32x32xf32, #tpu.memory_space<vmem>>, vector<8x32xf32>
    tpu.vector_store %arg32[%c8_108, %c0_109], %110 {strides = array<i32>} : memref<32x32xf32, #tpu.memory_space<vmem>>, vector<8x32xf32>,
    %c32_110 = arith.constant 32 : index
    %c0_111 = arith.constant 0 : index
    %112 = vector.load %arg31[%c32_110, %c0_111] : memref<72x32xf32, #tpu.memory_space<vmem>>, vector<8x32xf32>
    %c40_112 = arith.constant 40 : index
    %c0_113 = arith.constant 0 : index
    %113 = vector.load %arg31[%c40_112, %c0_113] : memref<72x32xf32, #tpu.memory_space<vmem>>, vector<8x32xf32>
    %c48_114 = arith.constant 48 : index
    %c0_115 = arith.constant 0 : index
    %114 = vector.load %arg31[%c48_114, %c0_115] : memref<72x32xf32, #tpu.memory_space<vmem>>, vector<8x32xf32>
    %115 = arith.maximumf %112, %113 : vector<8x32xf32>
    %116 = arith.maximumf %115, %114 : vector<8x32xf32>
    %cst_116 = arith.constant 0.000000e+00 : f32
    %117 = vector.broadcast %cst_116 : f32 to vector<8x32xf32>
    %118 = arith.maximumf %116, %117 : vector<8x32xf32>
    %c16_117 = arith.constant 16 : index
    %c0_118 = arith.constant 0 : index
    %119 = vector.load %arg32[%c16_117, %c0_118] : memref<32x32xf32, #tpu.memory_space<vmem>>, vector<8x32xf32>
    tpu.vector_store %arg32[%c16_117, %c0_118], %118 {strides = array<i32>} : memref<32x32xf32, #tpu.memory_space<vmem>>, vector<8x32xf32>,
    %c48_119 = arith.constant 48 : index
    %c0_120 = arith.constant 0 : index
    %120 = vector.load %arg31[%c48_119, %c0_120] : memref<72x32xf32, #tpu.memory_space<vmem>>, vector<8x32xf32>
    %c56_121 = arith.constant 56 : index
    %c0_122 = arith.constant 0 : index
    %121 = vector.load %arg31[%c56_121, %c0_122] : memref<72x32xf32, #tpu.memory_space<vmem>>, vector<8x32xf32>
    %c64_123 = arith.constant 64 : index
    %c0_124 = arith.constant 0 : index
    %122 = vector.load %arg31[%c64_123, %c0_124] : memref<72x32xf32, #tpu.memory_space<vmem>>, vector<8x32xf32>
    %123 = arith.maximumf %120, %121 : vector<8x32xf32>
    %124 = arith.maximumf %123, %122 : vector<8x32xf32>
    %cst_125 = arith.constant 0.000000e+00 : f32
    %125 = vector.broadcast %cst_125 : f32 to vector<8x32xf32>
    %126 = arith.maximumf %124, %125 : vector<8x32xf32>
    %c24_126 = arith.constant 24 : index
    %c0_127 = arith.constant 0 : index
    %127 = vector.load %arg32[%c24_126, %c0_127] : memref<32x32xf32, #tpu.memory_space<vmem>>, vector<8x32xf32>
    tpu.vector_store %arg32[%c24_126, %c0_127], %126 {strides = array<i32>} : memref<32x32xf32, #tpu.memory_space<vmem>>, vector<8x32xf32>,
    %c0_128 = arith.constant 0 : index
    %c0_129 = arith.constant 0 : index
    %128 = vector.load %arg32[%c0_128, %c0_129] : memref<32x32xf32, #tpu.memory_space<vmem>>, vector<32x32xf32>
    %c0_130 = arith.constant 0 : index
    %c0_131 = arith.constant 0 : index
    %129 = vector.load %arg8[%c0_130, %c0_131] : memref<32x128xf32, #tpu.memory_space<vmem>>, vector<32x128xf32>
    %cst_132 = arith.constant dense<0.000000e+00> : vector<32x128xf32>
    %130 = tpu.matmul %128, %129, %cst_132 {dimension_numbers = #tpu.dot_dimension_numbers<[1], [0], [0], [1], [0, 0, 1, 1], [], []>} : vector<32x32xf32>, vector<32x128xf32>, vector<32x128xf32> -> vector<32x128xf32>
    %c0_133 = arith.constant 0 : index
    %c0_134 = arith.constant 0 : index
    %131 = vector.load %arg10[%c0_133, %c0_134] : memref<1x128xf32, #tpu.memory_space<vmem>>, vector<1x128xf32>
    %132 = vector.broadcast %131 : vector<1x128xf32> to vector<32x128xf32>
    %133 = arith.addf %130, %132 : vector<32x128xf32>
    %c0_135 = arith.constant 0 : index
    %c0_136 = arith.constant 0 : index
    %134 = vector.load %arg33[%c0_135, %c0_136] : memref<32x128xf32, #tpu.memory_space<vmem>>, vector<32x128xf32>
    tpu.vector_store %arg33[%c0_135, %c0_136], %133 {strides = array<i32>} : memref<32x128xf32, #tpu.memory_space<vmem>>, vector<32x128xf32>,
    %c0_137 = arith.constant 0 : index
    %c0_138 = arith.constant 0 : index
    %135 = vector.load %arg11[%c0_137, %c0_138] : memref<32x128xf32, #tpu.memory_space<vmem>>, vector<32x128xf32>
    %cst_139 = arith.constant dense<0.000000e+00> : vector<32x128xf32>
    %136 = tpu.matmul %128, %135, %cst_139 {dimension_numbers = #tpu.dot_dimension_numbers<[1], [0], [0], [1], [0, 0, 1, 1], [], []>} : vector<32x32xf32>, vector<32x128xf32>, vector<32x128xf32> -> vector<32x128xf32>
    %c0_140 = arith.constant 0 : index
    %c0_141 = arith.constant 0 : index
    %137 = vector.load %arg13[%c0_140, %c0_141] : memref<1x128xf32, #tpu.memory_space<vmem>>, vector<1x128xf32>
    %138 = vector.broadcast %137 : vector<1x128xf32> to vector<32x128xf32>
    %139 = arith.addf %136, %138 : vector<32x128xf32>
    %c0_142 = arith.constant 0 : index
    %c0_143 = arith.constant 0 : index
    %140 = vector.load %arg34[%c0_142, %c0_143] : memref<32x128xf32, #tpu.memory_space<vmem>>, vector<32x128xf32>
    tpu.vector_store %arg34[%c0_142, %c0_143], %139 {strides = array<i32>} : memref<32x128xf32, #tpu.memory_space<vmem>>, vector<32x128xf32>,
    %c0_144 = arith.constant 0 : index
    %c0_145 = arith.constant 0 : index
    %141 = vector.load %arg9[%c0_144, %c0_145] : memref<32x128xf32, #tpu.memory_space<vmem>>, vector<32x128xf32>
    %cst_146 = arith.constant 0.000000e+00 : f32
    %142 = vector.broadcast %cst_146 : f32 to vector<8x32xf32>
    %c0_i32 = arith.constant 0 : i32
    %c8_i32 = arith.constant 8 : i32
    %143 = arith.muli %c0_i32, %c8_i32 : i32
    %144 = tpu.assume_multiple %143, 8 : i32
    %145 = arith.index_cast %144 : i32 to index
    %c0_147 = arith.constant 0 : index
    %146 = vector.load %arg33[%145, %c0_147] : memref<32x128xf32, #tpu.memory_space<vmem>>, vector<8x128xf32>
    %cst_148 = arith.constant dense<0.000000e+00> : vector<8x128xf32>
    %147 = tpu.matmul %142, %141, %cst_148 {dimension_numbers = #tpu.dot_dimension_numbers<[1], [0], [0], [1], [0, 0, 1, 1], [], []>} : vector<8x32xf32>, vector<32x128xf32>, vector<8x128xf32> -> vector<8x128xf32>
    %148 = arith.addf %146, %147 : vector<8x128xf32>
    %149 = vector.extract_strided_slice %148 {offsets = [0, 0], sizes = [8, 32], strides = [1, 1]} : vector<8x128xf32> to vector<8x32xf32>
    %150 = arith.negf %149 : vector<8x32xf32>
    %151 = math.exp %150 : vector<8x32xf32>
    %cst_149 = arith.constant 1.000000e+00 : f32
    %152 = vector.broadcast %cst_149 : f32 to vector<8x32xf32>
    %153 = arith.addf %152, %151 : vector<8x32xf32>
    %154 = arith.divf %152, %153 : vector<8x32xf32>
    %155 = vector.extract_strided_slice %148 {offsets = [0, 32], sizes = [8, 32], strides = [1, 1]} : vector<8x128xf32> to vector<8x32xf32>
    %156 = arith.negf %155 : vector<8x32xf32>
    %157 = math.exp %156 : vector<8x32xf32>
    %cst_150 = arith.constant 1.000000e+00 : f32
    %158 = vector.broadcast %cst_150 : f32 to vector<8x32xf32>
    %159 = arith.addf %158, %157 : vector<8x32xf32>
    %160 = arith.divf %158, %159 : vector<8x32xf32>
    %161 = vector.extract_strided_slice %148 {offsets = [0, 64], sizes = [8, 32], strides = [1, 1]} : vector<8x128xf32> to vector<8x32xf32>
    %162 = math.tanh %161 : vector<8x32xf32>
    %163 = vector.extract_strided_slice %148 {offsets = [0, 96], sizes = [8, 32], strides = [1, 1]} : vector<8x128xf32> to vector<8x32xf32>
    %164 = arith.negf %163 : vector<8x32xf32>
    %165 = math.exp %164 : vector<8x32xf32>
    %cst_151 = arith.constant 1.000000e+00 : f32
    %166 = vector.broadcast %cst_151 : f32 to vector<8x32xf32>
    %167 = arith.addf %166, %165 : vector<8x32xf32>
    %168 = arith.divf %166, %167 : vector<8x32xf32>
    %169 = arith.mulf %160, %142 : vector<8x32xf32>
    %170 = arith.mulf %154, %162 : vector<8x32xf32>
    %171 = arith.addf %169, %170 : vector<8x32xf32>
    %172 = math.tanh %171 : vector<8x32xf32>
    %173 = arith.mulf %168, %172 : vector<8x32xf32>
    %174 = arith.index_cast %144 : i32 to index
    %c0_152 = arith.constant 0 : index
    %175 = vector.load %arg35[%174, %c0_152] : memref<32x32xf32, #tpu.memory_space<vmem>>, vector<8x32xf32>
    tpu.vector_store %arg35[%174, %c0_152], %173 {strides = array<i32>} : memref<32x32xf32, #tpu.memory_space<vmem>>, vector<8x32xf32>,
    %c1_i32 = arith.constant 1 : i32
    %c8_i32_153 = arith.constant 8 : i32
    %176 = arith.muli %c1_i32, %c8_i32_153 : i32
    %177 = tpu.assume_multiple %176, 8 : i32
    %178 = arith.index_cast %177 : i32 to index
    %c0_154 = arith.constant 0 : index
    %179 = vector.load %arg33[%178, %c0_154] : memref<32x128xf32, #tpu.memory_space<vmem>>, vector<8x128xf32>
    %cst_155 = arith.constant dense<0.000000e+00> : vector<8x128xf32>
    %180 = tpu.matmul %173, %141, %cst_155 {dimension_numbers = #tpu.dot_dimension_numbers<[1], [0], [0], [1], [0, 0, 1, 1], [], []>} : vector<8x32xf32>, vector<32x128xf32>, vector<8x128xf32> -> vector<8x128xf32>
    %181 = arith.addf %179, %180 : vector<8x128xf32>
    %182 = vector.extract_strided_slice %181 {offsets = [0, 0], sizes = [8, 32], strides = [1, 1]} : vector<8x128xf32> to vector<8x32xf32>
    %183 = arith.negf %182 : vector<8x32xf32>
    %184 = math.exp %183 : vector<8x32xf32>
    %cst_156 = arith.constant 1.000000e+00 : f32
    %185 = vector.broadcast %cst_156 : f32 to vector<8x32xf32>
    %186 = arith.addf %185, %184 : vector<8x32xf32>
    %187 = arith.divf %185, %186 : vector<8x32xf32>
    %188 = vector.extract_strided_slice %181 {offsets = [0, 32], sizes = [8, 32], strides = [1, 1]} : vector<8x128xf32> to vector<8x32xf32>
    %189 = arith.negf %188 : vector<8x32xf32>
    %190 = math.exp %189 : vector<8x32xf32>
    %cst_157 = arith.constant 1.000000e+00 : f32
    %191 = vector.broadcast %cst_157 : f32 to vector<8x32xf32>
    %192 = arith.addf %191, %190 : vector<8x32xf32>
    %193 = arith.divf %191, %192 : vector<8x32xf32>
    %194 = vector.extract_strided_slice %181 {offsets = [0, 64], sizes = [8, 32], strides = [1, 1]} : vector<8x128xf32> to vector<8x32xf32>
    %195 = math.tanh %194 : vector<8x32xf32>
    %196 = vector.extract_strided_slice %181 {offsets = [0, 96], sizes = [8, 32], strides = [1, 1]} : vector<8x128xf32> to vector<8x32xf32>
    %197 = arith.negf %196 : vector<8x32xf32>
    %198 = math.exp %197 : vector<8x32xf32>
    %cst_158 = arith.constant 1.000000e+00 : f32
    %199 = vector.broadcast %cst_158 : f32 to vector<8x32xf32>
    %200 = arith.addf %199, %198 : vector<8x32xf32>
    %201 = arith.divf %199, %200 : vector<8x32xf32>
    %202 = arith.mulf %193, %171 : vector<8x32xf32>
    %203 = arith.mulf %187, %195 : vector<8x32xf32>
    %204 = arith.addf %202, %203 : vector<8x32xf32>
    %205 = math.tanh %204 : vector<8x32xf32>
    %206 = arith.mulf %201, %205 : vector<8x32xf32>
    %207 = arith.index_cast %177 : i32 to index
    %c0_159 = arith.constant 0 : index
    %208 = vector.load %arg35[%207, %c0_159] : memref<32x32xf32, #tpu.memory_space<vmem>>, vector<8x32xf32>
    tpu.vector_store %arg35[%207, %c0_159], %206 {strides = array<i32>} : memref<32x32xf32, #tpu.memory_space<vmem>>, vector<8x32xf32>,
    %c2_i32 = arith.constant 2 : i32
    %c8_i32_160 = arith.constant 8 : i32
    %209 = arith.muli %c2_i32, %c8_i32_160 : i32
    %210 = tpu.assume_multiple %209, 8 : i32
    %211 = arith.index_cast %210 : i32 to index
    %c0_161 = arith.constant 0 : index
    %212 = vector.load %arg33[%211, %c0_161] : memref<32x128xf32, #tpu.memory_space<vmem>>, vector<8x128xf32>
    %cst_162 = arith.constant dense<0.000000e+00> : vector<8x128xf32>
    %213 = tpu.matmul %206, %141, %cst_162 {dimension_numbers = #tpu.dot_dimension_numbers<[1], [0], [0], [1], [0, 0, 1, 1], [], []>} : vector<8x32xf32>, vector<32x128xf32>, vector<8x128xf32> -> vector<8x128xf32>
    %214 = arith.addf %212, %213 : vector<8x128xf32>
    %215 = vector.extract_strided_slice %214 {offsets = [0, 0], sizes = [8, 32], strides = [1, 1]} : vector<8x128xf32> to vector<8x32xf32>
    %216 = arith.negf %215 : vector<8x32xf32>
    %217 = math.exp %216 : vector<8x32xf32>
    %cst_163 = arith.constant 1.000000e+00 : f32
    %218 = vector.broadcast %cst_163 : f32 to vector<8x32xf32>
    %219 = arith.addf %218, %217 : vector<8x32xf32>
    %220 = arith.divf %218, %219 : vector<8x32xf32>
    %221 = vector.extract_strided_slice %214 {offsets = [0, 32], sizes = [8, 32], strides = [1, 1]} : vector<8x128xf32> to vector<8x32xf32>
    %222 = arith.negf %221 : vector<8x32xf32>
    %223 = math.exp %222 : vector<8x32xf32>
    %cst_164 = arith.constant 1.000000e+00 : f32
    %224 = vector.broadcast %cst_164 : f32 to vector<8x32xf32>
    %225 = arith.addf %224, %223 : vector<8x32xf32>
    %226 = arith.divf %224, %225 : vector<8x32xf32>
    %227 = vector.extract_strided_slice %214 {offsets = [0, 64], sizes = [8, 32], strides = [1, 1]} : vector<8x128xf32> to vector<8x32xf32>
    %228 = math.tanh %227 : vector<8x32xf32>
    %229 = vector.extract_strided_slice %214 {offsets = [0, 96], sizes = [8, 32], strides = [1, 1]} : vector<8x128xf32> to vector<8x32xf32>
    %230 = arith.negf %229 : vector<8x32xf32>
    %231 = math.exp %230 : vector<8x32xf32>
    %cst_165 = arith.constant 1.000000e+00 : f32
    %232 = vector.broadcast %cst_165 : f32 to vector<8x32xf32>
    %233 = arith.addf %232, %231 : vector<8x32xf32>
    %234 = arith.divf %232, %233 : vector<8x32xf32>
    %235 = arith.mulf %226, %204 : vector<8x32xf32>
    %236 = arith.mulf %220, %228 : vector<8x32xf32>
    %237 = arith.addf %235, %236 : vector<8x32xf32>
    %238 = math.tanh %237 : vector<8x32xf32>
    %239 = arith.mulf %234, %238 : vector<8x32xf32>
    %240 = arith.index_cast %210 : i32 to index
    %c0_166 = arith.constant 0 : index
    %241 = vector.load %arg35[%240, %c0_166] : memref<32x32xf32, #tpu.memory_space<vmem>>, vector<8x32xf32>
    tpu.vector_store %arg35[%240, %c0_166], %239 {strides = array<i32>} : memref<32x32xf32, #tpu.memory_space<vmem>>, vector<8x32xf32>,
    %c3_i32 = arith.constant 3 : i32
    %c8_i32_167 = arith.constant 8 : i32
    %242 = arith.muli %c3_i32, %c8_i32_167 : i32
    %243 = tpu.assume_multiple %242, 8 : i32
    %244 = arith.index_cast %243 : i32 to index
    %c0_168 = arith.constant 0 : index
    %245 = vector.load %arg33[%244, %c0_168] : memref<32x128xf32, #tpu.memory_space<vmem>>, vector<8x128xf32>
    %cst_169 = arith.constant dense<0.000000e+00> : vector<8x128xf32>
    %246 = tpu.matmul %239, %141, %cst_169 {dimension_numbers = #tpu.dot_dimension_numbers<[1], [0], [0], [1], [0, 0, 1, 1], [], []>} : vector<8x32xf32>, vector<32x128xf32>, vector<8x128xf32> -> vector<8x128xf32>
    %247 = arith.addf %245, %246 : vector<8x128xf32>
    %248 = vector.extract_strided_slice %247 {offsets = [0, 0], sizes = [8, 32], strides = [1, 1]} : vector<8x128xf32> to vector<8x32xf32>
    %249 = arith.negf %248 : vector<8x32xf32>
    %250 = math.exp %249 : vector<8x32xf32>
    %cst_170 = arith.constant 1.000000e+00 : f32
    %251 = vector.broadcast %cst_170 : f32 to vector<8x32xf32>
    %252 = arith.addf %251, %250 : vector<8x32xf32>
    %253 = arith.divf %251, %252 : vector<8x32xf32>
    %254 = vector.extract_strided_slice %247 {offsets = [0, 32], sizes = [8, 32], strides = [1, 1]} : vector<8x128xf32> to vector<8x32xf32>
    %255 = arith.negf %254 : vector<8x32xf32>
    %256 = math.exp %255 : vector<8x32xf32>
    %cst_171 = arith.constant 1.000000e+00 : f32
    %257 = vector.broadcast %cst_171 : f32 to vector<8x32xf32>
    %258 = arith.addf %257, %256 : vector<8x32xf32>
    %259 = arith.divf %257, %258 : vector<8x32xf32>
    %260 = vector.extract_strided_slice %247 {offsets = [0, 64], sizes = [8, 32], strides = [1, 1]} : vector<8x128xf32> to vector<8x32xf32>
    %261 = math.tanh %260 : vector<8x32xf32>
    %262 = vector.extract_strided_slice %247 {offsets = [0, 96], sizes = [8, 32], strides = [1, 1]} : vector<8x128xf32> to vector<8x32xf32>
    %263 = arith.negf %262 : vector<8x32xf32>
    %264 = math.exp %263 : vector<8x32xf32>
    %cst_172 = arith.constant 1.000000e+00 : f32
    %265 = vector.broadcast %cst_172 : f32 to vector<8x32xf32>
    %266 = arith.addf %265, %264 : vector<8x32xf32>
    %267 = arith.divf %265, %266 : vector<8x32xf32>
    %268 = arith.mulf %259, %237 : vector<8x32xf32>
    %269 = arith.mulf %253, %261 : vector<8x32xf32>
    %270 = arith.addf %268, %269 : vector<8x32xf32>
    %271 = math.tanh %270 : vector<8x32xf32>
    %272 = arith.mulf %267, %271 : vector<8x32xf32>
    %273 = arith.index_cast %243 : i32 to index
    %c0_173 = arith.constant 0 : index
    %274 = vector.load %arg35[%273, %c0_173] : memref<32x32xf32, #tpu.memory_space<vmem>>, vector<8x32xf32>
    tpu.vector_store %arg35[%273, %c0_173], %272 {strides = array<i32>} : memref<32x32xf32, #tpu.memory_space<vmem>>, vector<8x32xf32>,
    %c4_i32 = arith.constant 4 : i32
    %c0_174 = arith.constant 0 : index
    %c0_175 = arith.constant 0 : index
    %275 = vector.load %arg12[%c0_174, %c0_175] : memref<32x128xf32, #tpu.memory_space<vmem>>, vector<32x128xf32>
    %cst_176 = arith.constant 0.000000e+00 : f32
    %276 = vector.broadcast %cst_176 : f32 to vector<8x32xf32>
    %c0_i32_177 = arith.constant 0 : i32
    %c3_i32_178 = arith.constant 3 : i32
    %277 = arith.subi %c3_i32_178, %c0_i32_177 : i32
    %c8_i32_179 = arith.constant 8 : i32
    %278 = arith.muli %277, %c8_i32_179 : i32
    %279 = tpu.assume_multiple %278, 8 : i32
    %280 = arith.index_cast %279 : i32 to index
    %c0_180 = arith.constant 0 : index
    %281 = vector.load %arg34[%280, %c0_180] : memref<32x128xf32, #tpu.memory_space<vmem>>, vector<8x128xf32>
    %cst_181 = arith.constant dense<0.000000e+00> : vector<8x128xf32>
    %282 = tpu.matmul %276, %275, %cst_181 {dimension_numbers = #tpu.dot_dimension_numbers<[1], [0], [0], [1], [0, 0, 1, 1], [], []>} : vector<8x32xf32>, vector<32x128xf32>, vector<8x128xf32> -> vector<8x128xf32>
    %283 = arith.addf %281, %282 : vector<8x128xf32>
    %284 = vector.extract_strided_slice %283 {offsets = [0, 0], sizes = [8, 32], strides = [1, 1]} : vector<8x128xf32> to vector<8x32xf32>
    %285 = arith.negf %284 : vector<8x32xf32>
    %286 = math.exp %285 : vector<8x32xf32>
    %cst_182 = arith.constant 1.000000e+00 : f32
    %287 = vector.broadcast %cst_182 : f32 to vector<8x32xf32>
    %288 = arith.addf %287, %286 : vector<8x32xf32>
    %289 = arith.divf %287, %288 : vector<8x32xf32>
    %290 = vector.extract_strided_slice %283 {offsets = [0, 32], sizes = [8, 32], strides = [1, 1]} : vector<8x128xf32> to vector<8x32xf32>
    %291 = arith.negf %290 : vector<8x32xf32>
    %292 = math.exp %291 : vector<8x32xf32>
    %cst_183 = arith.constant 1.000000e+00 : f32
    %293 = vector.broadcast %cst_183 : f32 to vector<8x32xf32>
    %294 = arith.addf %293, %292 : vector<8x32xf32>
    %295 = arith.divf %293, %294 : vector<8x32xf32>
    %296 = vector.extract_strided_slice %283 {offsets = [0, 64], sizes = [8, 32], strides = [1, 1]} : vector<8x128xf32> to vector<8x32xf32>
    %297 = math.tanh %296 : vector<8x32xf32>
    %298 = vector.extract_strided_slice %283 {offsets = [0, 96], sizes = [8, 32], strides = [1, 1]} : vector<8x128xf32> to vector<8x32xf32>
    %299 = arith.negf %298 : vector<8x32xf32>
    %300 = math.exp %299 : vector<8x32xf32>
    %cst_184 = arith.constant 1.000000e+00 : f32
    %301 = vector.broadcast %cst_184 : f32 to vector<8x32xf32>
    %302 = arith.addf %301, %300 : vector<8x32xf32>
    %303 = arith.divf %301, %302 : vector<8x32xf32>
    %304 = arith.mulf %295, %276 : vector<8x32xf32>
    %305 = arith.mulf %289, %297 : vector<8x32xf32>
    %306 = arith.addf %304, %305 : vector<8x32xf32>
    %307 = math.tanh %306 : vector<8x32xf32>
    %308 = arith.mulf %303, %307 : vector<8x32xf32>
    %309 = arith.index_cast %279 : i32 to index
    %c0_185 = arith.constant 0 : index
    %310 = vector.load %arg36[%309, %c0_185] : memref<32x32xf32, #tpu.memory_space<vmem>>, vector<8x32xf32>
    tpu.vector_store %arg36[%309, %c0_185], %308 {strides = array<i32>} : memref<32x32xf32, #tpu.memory_space<vmem>>, vector<8x32xf32>,
    %c1_i32_186 = arith.constant 1 : i32
    %c3_i32_187 = arith.constant 3 : i32
    %311 = arith.subi %c3_i32_187, %c1_i32_186 : i32
    %c8_i32_188 = arith.constant 8 : i32
    %312 = arith.muli %311, %c8_i32_188 : i32
    %313 = tpu.assume_multiple %312, 8 : i32
    %314 = arith.index_cast %313 : i32 to index
    %c0_189 = arith.constant 0 : index
    %315 = vector.load %arg34[%314, %c0_189] : memref<32x128xf32, #tpu.memory_space<vmem>>, vector<8x128xf32>
    %cst_190 = arith.constant dense<0.000000e+00> : vector<8x128xf32>
    %316 = tpu.matmul %308, %275, %cst_190 {dimension_numbers = #tpu.dot_dimension_numbers<[1], [0], [0], [1], [0, 0, 1, 1], [], []>} : vector<8x32xf32>, vector<32x128xf32>, vector<8x128xf32> -> vector<8x128xf32>
    %317 = arith.addf %315, %316 : vector<8x128xf32>
    %318 = vector.extract_strided_slice %317 {offsets = [0, 0], sizes = [8, 32], strides = [1, 1]} : vector<8x128xf32> to vector<8x32xf32>
    %319 = arith.negf %318 : vector<8x32xf32>
    %320 = math.exp %319 : vector<8x32xf32>
    %cst_191 = arith.constant 1.000000e+00 : f32
    %321 = vector.broadcast %cst_191 : f32 to vector<8x32xf32>
    %322 = arith.addf %321, %320 : vector<8x32xf32>
    %323 = arith.divf %321, %322 : vector<8x32xf32>
    %324 = vector.extract_strided_slice %317 {offsets = [0, 32], sizes = [8, 32], strides = [1, 1]} : vector<8x128xf32> to vector<8x32xf32>
    %325 = arith.negf %324 : vector<8x32xf32>
    %326 = math.exp %325 : vector<8x32xf32>
    %cst_192 = arith.constant 1.000000e+00 : f32
    %327 = vector.broadcast %cst_192 : f32 to vector<8x32xf32>
    %328 = arith.addf %327, %326 : vector<8x32xf32>
    %329 = arith.divf %327, %328 : vector<8x32xf32>
    %330 = vector.extract_strided_slice %317 {offsets = [0, 64], sizes = [8, 32], strides = [1, 1]} : vector<8x128xf32> to vector<8x32xf32>
    %331 = math.tanh %330 : vector<8x32xf32>
    %332 = vector.extract_strided_slice %317 {offsets = [0, 96], sizes = [8, 32], strides = [1, 1]} : vector<8x128xf32> to vector<8x32xf32>
    %333 = arith.negf %332 : vector<8x32xf32>
    %334 = math.exp %333 : vector<8x32xf32>
    %cst_193 = arith.constant 1.000000e+00 : f32
    %335 = vector.broadcast %cst_193 : f32 to vector<8x32xf32>
    %336 = arith.addf %335, %334 : vector<8x32xf32>
    %337 = arith.divf %335, %336 : vector<8x32xf32>
    %338 = arith.mulf %329, %306 : vector<8x32xf32>
    %339 = arith.mulf %323, %331 : vector<8x32xf32>
    %340 = arith.addf %338, %339 : vector<8x32xf32>
    %341 = math.tanh %340 : vector<8x32xf32>
    %342 = arith.mulf %337, %341 : vector<8x32xf32>
    %343 = arith.index_cast %313 : i32 to index
    %c0_194 = arith.constant 0 : index
    %344 = vector.load %arg36[%343, %c0_194] : memref<32x32xf32, #tpu.memory_space<vmem>>, vector<8x32xf32>
    tpu.vector_store %arg36[%343, %c0_194], %342 {strides = array<i32>} : memref<32x32xf32, #tpu.memory_space<vmem>>, vector<8x32xf32>,
    %c2_i32_195 = arith.constant 2 : i32
    %c3_i32_196 = arith.constant 3 : i32
    %345 = arith.subi %c3_i32_196, %c2_i32_195 : i32
    %c8_i32_197 = arith.constant 8 : i32
    %346 = arith.muli %345, %c8_i32_197 : i32
    %347 = tpu.assume_multiple %346, 8 : i32
    %348 = arith.index_cast %347 : i32 to index
    %c0_198 = arith.constant 0 : index
    %349 = vector.load %arg34[%348, %c0_198] : memref<32x128xf32, #tpu.memory_space<vmem>>, vector<8x128xf32>
    %cst_199 = arith.constant dense<0.000000e+00> : vector<8x128xf32>
    %350 = tpu.matmul %342, %275, %cst_199 {dimension_numbers = #tpu.dot_dimension_numbers<[1], [0], [0], [1], [0, 0, 1, 1], [], []>} : vector<8x32xf32>, vector<32x128xf32>, vector<8x128xf32> -> vector<8x128xf32>
    %351 = arith.addf %349, %350 : vector<8x128xf32>
    %352 = vector.extract_strided_slice %351 {offsets = [0, 0], sizes = [8, 32], strides = [1, 1]} : vector<8x128xf32> to vector<8x32xf32>
    %353 = arith.negf %352 : vector<8x32xf32>
    %354 = math.exp %353 : vector<8x32xf32>
    %cst_200 = arith.constant 1.000000e+00 : f32
    %355 = vector.broadcast %cst_200 : f32 to vector<8x32xf32>
    %356 = arith.addf %355, %354 : vector<8x32xf32>
    %357 = arith.divf %355, %356 : vector<8x32xf32>
    %358 = vector.extract_strided_slice %351 {offsets = [0, 32], sizes = [8, 32], strides = [1, 1]} : vector<8x128xf32> to vector<8x32xf32>
    %359 = arith.negf %358 : vector<8x32xf32>
    %360 = math.exp %359 : vector<8x32xf32>
    %cst_201 = arith.constant 1.000000e+00 : f32
    %361 = vector.broadcast %cst_201 : f32 to vector<8x32xf32>
    %362 = arith.addf %361, %360 : vector<8x32xf32>
    %363 = arith.divf %361, %362 : vector<8x32xf32>
    %364 = vector.extract_strided_slice %351 {offsets = [0, 64], sizes = [8, 32], strides = [1, 1]} : vector<8x128xf32> to vector<8x32xf32>
    %365 = math.tanh %364 : vector<8x32xf32>
    %366 = vector.extract_strided_slice %351 {offsets = [0, 96], sizes = [8, 32], strides = [1, 1]} : vector<8x128xf32> to vector<8x32xf32>
    %367 = arith.negf %366 : vector<8x32xf32>
    %368 = math.exp %367 : vector<8x32xf32>
    %cst_202 = arith.constant 1.000000e+00 : f32
    %369 = vector.broadcast %cst_202 : f32 to vector<8x32xf32>
    %370 = arith.addf %369, %368 : vector<8x32xf32>
    %371 = arith.divf %369, %370 : vector<8x32xf32>
    %372 = arith.mulf %363, %340 : vector<8x32xf32>
    %373 = arith.mulf %357, %365 : vector<8x32xf32>
    %374 = arith.addf %372, %373 : vector<8x32xf32>
    %375 = math.tanh %374 : vector<8x32xf32>
    %376 = arith.mulf %371, %375 : vector<8x32xf32>
    %377 = arith.index_cast %347 : i32 to index
    %c0_203 = arith.constant 0 : index
    %378 = vector.load %arg36[%377, %c0_203] : memref<32x32xf32, #tpu.memory_space<vmem>>, vector<8x32xf32>
    tpu.vector_store %arg36[%377, %c0_203], %376 {strides = array<i32>} : memref<32x32xf32, #tpu.memory_space<vmem>>, vector<8x32xf32>,
    %c3_i32_204 = arith.constant 3 : i32
    %c3_i32_205 = arith.constant 3 : i32
    %379 = arith.subi %c3_i32_205, %c3_i32_204 : i32
    %c8_i32_206 = arith.constant 8 : i32
    %380 = arith.muli %379, %c8_i32_206 : i32
    %381 = tpu.assume_multiple %380, 8 : i32
    %382 = arith.index_cast %381 : i32 to index
    %c0_207 = arith.constant 0 : index
    %383 = vector.load %arg34[%382, %c0_207] : memref<32x128xf32, #tpu.memory_space<vmem>>, vector<8x128xf32>
    %cst_208 = arith.constant dense<0.000000e+00> : vector<8x128xf32>
    %384 = tpu.matmul %376, %275, %cst_208 {dimension_numbers = #tpu.dot_dimension_numbers<[1], [0], [0], [1], [0, 0, 1, 1], [], []>} : vector<8x32xf32>, vector<32x128xf32>, vector<8x128xf32> -> vector<8x128xf32>
    %385 = arith.addf %383, %384 : vector<8x128xf32>
    %386 = vector.extract_strided_slice %385 {offsets = [0, 0], sizes = [8, 32], strides = [1, 1]} : vector<8x128xf32> to vector<8x32xf32>
    %387 = arith.negf %386 : vector<8x32xf32>
    %388 = math.exp %387 : vector<8x32xf32>
    %cst_209 = arith.constant 1.000000e+00 : f32
    %389 = vector.broadcast %cst_209 : f32 to vector<8x32xf32>
    %390 = arith.addf %389, %388 : vector<8x32xf32>
    %391 = arith.divf %389, %390 : vector<8x32xf32>
    %392 = vector.extract_strided_slice %385 {offsets = [0, 32], sizes = [8, 32], strides = [1, 1]} : vector<8x128xf32> to vector<8x32xf32>
    %393 = arith.negf %392 : vector<8x32xf32>
    %394 = math.exp %393 : vector<8x32xf32>
    %cst_210 = arith.constant 1.000000e+00 : f32
    %395 = vector.broadcast %cst_210 : f32 to vector<8x32xf32>
    %396 = arith.addf %395, %394 : vector<8x32xf32>
    %397 = arith.divf %395, %396 : vector<8x32xf32>
    %398 = vector.extract_strided_slice %385 {offsets = [0, 64], sizes = [8, 32], strides = [1, 1]} : vector<8x128xf32> to vector<8x32xf32>
    %399 = math.tanh %398 : vector<8x32xf32>
    %400 = vector.extract_strided_slice %385 {offsets = [0, 96], sizes = [8, 32], strides = [1, 1]} : vector<8x128xf32> to vector<8x32xf32>
    %401 = arith.negf %400 : vector<8x32xf32>
    %402 = math.exp %401 : vector<8x32xf32>
    %cst_211 = arith.constant 1.000000e+00 : f32
    %403 = vector.broadcast %cst_211 : f32 to vector<8x32xf32>
    %404 = arith.addf %403, %402 : vector<8x32xf32>
    %405 = arith.divf %403, %404 : vector<8x32xf32>
    %406 = arith.mulf %397, %374 : vector<8x32xf32>
    %407 = arith.mulf %391, %399 : vector<8x32xf32>
    %408 = arith.addf %406, %407 : vector<8x32xf32>
    %409 = math.tanh %408 : vector<8x32xf32>
    %410 = arith.mulf %405, %409 : vector<8x32xf32>
    %411 = arith.index_cast %381 : i32 to index
    %c0_212 = arith.constant 0 : index
    %412 = vector.load %arg36[%411, %c0_212] : memref<32x32xf32, #tpu.memory_space<vmem>>, vector<8x32xf32>
    tpu.vector_store %arg36[%411, %c0_212], %410 {strides = array<i32>} : memref<32x32xf32, #tpu.memory_space<vmem>>, vector<8x32xf32>,
    %c4_i32_213 = arith.constant 4 : i32
    %c0_214 = arith.constant 0 : index
    %c0_215 = arith.constant 0 : index
    %413 = vector.load %arg35[%c0_214, %c0_215] : memref<32x32xf32, #tpu.memory_space<vmem>>, vector<32x32xf32>
    %c0_216 = arith.constant 0 : index
    %c0_217 = arith.constant 0 : index
    %414 = vector.load %arg36[%c0_216, %c0_217] : memref<32x32xf32, #tpu.memory_space<vmem>>, vector<32x32xf32>
    %c0_218 = arith.constant 0 : index
    %c0_219 = arith.constant 0 : index
    %415 = vector.load %arg14[%c0_218, %c0_219] : memref<32x128xf32, #tpu.memory_space<vmem>>, vector<32x128xf32>
    %cst_220 = arith.constant dense<0.000000e+00> : vector<32x128xf32>
    %416 = tpu.matmul %413, %415, %cst_220 {dimension_numbers = #tpu.dot_dimension_numbers<[1], [0], [0], [1], [0, 0, 1, 1], [], []>} : vector<32x32xf32>, vector<32x128xf32>, vector<32x128xf32> -> vector<32x128xf32>
    %c0_221 = arith.constant 0 : index
    %c0_222 = arith.constant 0 : index
    %417 = vector.load %arg15[%c0_221, %c0_222] : memref<32x128xf32, #tpu.memory_space<vmem>>, vector<32x128xf32>
    %cst_223 = arith.constant dense<0.000000e+00> : vector<32x128xf32>
    %418 = tpu.matmul %414, %417, %cst_223 {dimension_numbers = #tpu.dot_dimension_numbers<[1], [0], [0], [1], [0, 0, 1, 1], [], []>} : vector<32x32xf32>, vector<32x128xf32>, vector<32x128xf32> -> vector<32x128xf32>
    %419 = arith.addf %416, %418 : vector<32x128xf32>
    %c0_224 = arith.constant 0 : index
    %c0_225 = arith.constant 0 : index
    %420 = vector.load %arg17[%c0_224, %c0_225] : memref<1x128xf32, #tpu.memory_space<vmem>>, vector<1x128xf32>
    %421 = vector.broadcast %420 : vector<1x128xf32> to vector<32x128xf32>
    %422 = arith.addf %419, %421 : vector<32x128xf32>
    %c0_226 = arith.constant 0 : index
    %c0_227 = arith.constant 0 : index
    %423 = vector.load %arg33[%c0_226, %c0_227] : memref<32x128xf32, #tpu.memory_space<vmem>>, vector<32x128xf32>
    tpu.vector_store %arg33[%c0_226, %c0_227], %422 {strides = array<i32>} : memref<32x128xf32, #tpu.memory_space<vmem>>, vector<32x128xf32>,
    %c0_228 = arith.constant 0 : index
    %c0_229 = arith.constant 0 : index
    %424 = vector.load %arg18[%c0_228, %c0_229] : memref<32x128xf32, #tpu.memory_space<vmem>>, vector<32x128xf32>
    %cst_230 = arith.constant dense<0.000000e+00> : vector<32x128xf32>
    %425 = tpu.matmul %413, %424, %cst_230 {dimension_numbers = #tpu.dot_dimension_numbers<[1], [0], [0], [1], [0, 0, 1, 1], [], []>} : vector<32x32xf32>, vector<32x128xf32>, vector<32x128xf32> -> vector<32x128xf32>
    %c0_231 = arith.constant 0 : index
    %c0_232 = arith.constant 0 : index
    %426 = vector.load %arg19[%c0_231, %c0_232] : memref<32x128xf32, #tpu.memory_space<vmem>>, vector<32x128xf32>
    %cst_233 = arith.constant dense<0.000000e+00> : vector<32x128xf32>
    %427 = tpu.matmul %414, %426, %cst_233 {dimension_numbers = #tpu.dot_dimension_numbers<[1], [0], [0], [1], [0, 0, 1, 1], [], []>} : vector<32x32xf32>, vector<32x128xf32>, vector<32x128xf32> -> vector<32x128xf32>
    %428 = arith.addf %425, %427 : vector<32x128xf32>
    %c0_234 = arith.constant 0 : index
    %c0_235 = arith.constant 0 : index
    %429 = vector.load %arg21[%c0_234, %c0_235] : memref<1x128xf32, #tpu.memory_space<vmem>>, vector<1x128xf32>
    %430 = vector.broadcast %429 : vector<1x128xf32> to vector<32x128xf32>
    %431 = arith.addf %428, %430 : vector<32x128xf32>
    %c0_236 = arith.constant 0 : index
    %c0_237 = arith.constant 0 : index
    %432 = vector.load %arg34[%c0_236, %c0_237] : memref<32x128xf32, #tpu.memory_space<vmem>>, vector<32x128xf32>
    tpu.vector_store %arg34[%c0_236, %c0_237], %431 {strides = array<i32>} : memref<32x128xf32, #tpu.memory_space<vmem>>, vector<32x128xf32>,
    %c0_238 = arith.constant 0 : index
    %c0_239 = arith.constant 0 : index
    %433 = vector.load %arg16[%c0_238, %c0_239] : memref<32x128xf32, #tpu.memory_space<vmem>>, vector<32x128xf32>
    %cst_240 = arith.constant 0.000000e+00 : f32
    %434 = vector.broadcast %cst_240 : f32 to vector<8x32xf32>
    %c0_i32_241 = arith.constant 0 : i32
    %c8_i32_242 = arith.constant 8 : i32
    %435 = arith.muli %c0_i32_241, %c8_i32_242 : i32
    %436 = tpu.assume_multiple %435, 8 : i32
    %437 = arith.index_cast %436 : i32 to index
    %c0_243 = arith.constant 0 : index
    %438 = vector.load %arg33[%437, %c0_243] : memref<32x128xf32, #tpu.memory_space<vmem>>, vector<8x128xf32>
    %cst_244 = arith.constant dense<0.000000e+00> : vector<8x128xf32>
    %439 = tpu.matmul %434, %433, %cst_244 {dimension_numbers = #tpu.dot_dimension_numbers<[1], [0], [0], [1], [0, 0, 1, 1], [], []>} : vector<8x32xf32>, vector<32x128xf32>, vector<8x128xf32> -> vector<8x128xf32>
    %440 = arith.addf %438, %439 : vector<8x128xf32>
    %441 = vector.extract_strided_slice %440 {offsets = [0, 0], sizes = [8, 32], strides = [1, 1]} : vector<8x128xf32> to vector<8x32xf32>
    %442 = arith.negf %441 : vector<8x32xf32>
    %443 = math.exp %442 : vector<8x32xf32>
    %cst_245 = arith.constant 1.000000e+00 : f32
    %444 = vector.broadcast %cst_245 : f32 to vector<8x32xf32>
    %445 = arith.addf %444, %443 : vector<8x32xf32>
    %446 = arith.divf %444, %445 : vector<8x32xf32>
    %447 = vector.extract_strided_slice %440 {offsets = [0, 32], sizes = [8, 32], strides = [1, 1]} : vector<8x128xf32> to vector<8x32xf32>
    %448 = arith.negf %447 : vector<8x32xf32>
    %449 = math.exp %448 : vector<8x32xf32>
    %cst_246 = arith.constant 1.000000e+00 : f32
    %450 = vector.broadcast %cst_246 : f32 to vector<8x32xf32>
    %451 = arith.addf %450, %449 : vector<8x32xf32>
    %452 = arith.divf %450, %451 : vector<8x32xf32>
    %453 = vector.extract_strided_slice %440 {offsets = [0, 64], sizes = [8, 32], strides = [1, 1]} : vector<8x128xf32> to vector<8x32xf32>
    %454 = math.tanh %453 : vector<8x32xf32>
    %455 = vector.extract_strided_slice %440 {offsets = [0, 96], sizes = [8, 32], strides = [1, 1]} : vector<8x128xf32> to vector<8x32xf32>
    %456 = arith.negf %455 : vector<8x32xf32>
    %457 = math.exp %456 : vector<8x32xf32>
    %cst_247 = arith.constant 1.000000e+00 : f32
    %458 = vector.broadcast %cst_247 : f32 to vector<8x32xf32>
    %459 = arith.addf %458, %457 : vector<8x32xf32>
    %460 = arith.divf %458, %459 : vector<8x32xf32>
    %461 = arith.mulf %452, %434 : vector<8x32xf32>
    %462 = arith.mulf %446, %454 : vector<8x32xf32>
    %463 = arith.addf %461, %462 : vector<8x32xf32>
    %464 = math.tanh %463 : vector<8x32xf32>
    %465 = arith.mulf %460, %464 : vector<8x32xf32>
    %466 = arith.index_cast %436 : i32 to index
    %c0_248 = arith.constant 0 : index
    %467 = vector.load %arg35[%466, %c0_248] : memref<32x32xf32, #tpu.memory_space<vmem>>, vector<8x32xf32>
    tpu.vector_store %arg35[%466, %c0_248], %465 {strides = array<i32>} : memref<32x32xf32, #tpu.memory_space<vmem>>, vector<8x32xf32>,
    %c1_i32_249 = arith.constant 1 : i32
    %c8_i32_250 = arith.constant 8 : i32
    %468 = arith.muli %c1_i32_249, %c8_i32_250 : i32
    %469 = tpu.assume_multiple %468, 8 : i32
    %470 = arith.index_cast %469 : i32 to index
    %c0_251 = arith.constant 0 : index
    %471 = vector.load %arg33[%470, %c0_251] : memref<32x128xf32, #tpu.memory_space<vmem>>, vector<8x128xf32>
    %cst_252 = arith.constant dense<0.000000e+00> : vector<8x128xf32>
    %472 = tpu.matmul %465, %433, %cst_252 {dimension_numbers = #tpu.dot_dimension_numbers<[1], [0], [0], [1], [0, 0, 1, 1], [], []>} : vector<8x32xf32>, vector<32x128xf32>, vector<8x128xf32> -> vector<8x128xf32>
    %473 = arith.addf %471, %472 : vector<8x128xf32>
    %474 = vector.extract_strided_slice %473 {offsets = [0, 0], sizes = [8, 32], strides = [1, 1]} : vector<8x128xf32> to vector<8x32xf32>
    %475 = arith.negf %474 : vector<8x32xf32>
    %476 = math.exp %475 : vector<8x32xf32>
    %cst_253 = arith.constant 1.000000e+00 : f32
    %477 = vector.broadcast %cst_253 : f32 to vector<8x32xf32>
    %478 = arith.addf %477, %476 : vector<8x32xf32>
    %479 = arith.divf %477, %478 : vector<8x32xf32>
    %480 = vector.extract_strided_slice %473 {offsets = [0, 32], sizes = [8, 32], strides = [1, 1]} : vector<8x128xf32> to vector<8x32xf32>
    %481 = arith.negf %480 : vector<8x32xf32>
    %482 = math.exp %481 : vector<8x32xf32>
    %cst_254 = arith.constant 1.000000e+00 : f32
    %483 = vector.broadcast %cst_254 : f32 to vector<8x32xf32>
    %484 = arith.addf %483, %482 : vector<8x32xf32>
    %485 = arith.divf %483, %484 : vector<8x32xf32>
    %486 = vector.extract_strided_slice %473 {offsets = [0, 64], sizes = [8, 32], strides = [1, 1]} : vector<8x128xf32> to vector<8x32xf32>
    %487 = math.tanh %486 : vector<8x32xf32>
    %488 = vector.extract_strided_slice %473 {offsets = [0, 96], sizes = [8, 32], strides = [1, 1]} : vector<8x128xf32> to vector<8x32xf32>
    %489 = arith.negf %488 : vector<8x32xf32>
    %490 = math.exp %489 : vector<8x32xf32>
    %cst_255 = arith.constant 1.000000e+00 : f32
    %491 = vector.broadcast %cst_255 : f32 to vector<8x32xf32>
    %492 = arith.addf %491, %490 : vector<8x32xf32>
    %493 = arith.divf %491, %492 : vector<8x32xf32>
    %494 = arith.mulf %485, %463 : vector<8x32xf32>
    %495 = arith.mulf %479, %487 : vector<8x32xf32>
    %496 = arith.addf %494, %495 : vector<8x32xf32>
    %497 = math.tanh %496 : vector<8x32xf32>
    %498 = arith.mulf %493, %497 : vector<8x32xf32>
    %499 = arith.index_cast %469 : i32 to index
    %c0_256 = arith.constant 0 : index
    %500 = vector.load %arg35[%499, %c0_256] : memref<32x32xf32, #tpu.memory_space<vmem>>, vector<8x32xf32>
    tpu.vector_store %arg35[%499, %c0_256], %498 {strides = array<i32>} : memref<32x32xf32, #tpu.memory_space<vmem>>, vector<8x32xf32>,
    %c2_i32_257 = arith.constant 2 : i32
    %c8_i32_258 = arith.constant 8 : i32
    %501 = arith.muli %c2_i32_257, %c8_i32_258 : i32
    %502 = tpu.assume_multiple %501, 8 : i32
    %503 = arith.index_cast %502 : i32 to index
    %c0_259 = arith.constant 0 : index
    %504 = vector.load %arg33[%503, %c0_259] : memref<32x128xf32, #tpu.memory_space<vmem>>, vector<8x128xf32>
    %cst_260 = arith.constant dense<0.000000e+00> : vector<8x128xf32>
    %505 = tpu.matmul %498, %433, %cst_260 {dimension_numbers = #tpu.dot_dimension_numbers<[1], [0], [0], [1], [0, 0, 1, 1], [], []>} : vector<8x32xf32>, vector<32x128xf32>, vector<8x128xf32> -> vector<8x128xf32>
    %506 = arith.addf %504, %505 : vector<8x128xf32>
    %507 = vector.extract_strided_slice %506 {offsets = [0, 0], sizes = [8, 32], strides = [1, 1]} : vector<8x128xf32> to vector<8x32xf32>
    %508 = arith.negf %507 : vector<8x32xf32>
    %509 = math.exp %508 : vector<8x32xf32>
    %cst_261 = arith.constant 1.000000e+00 : f32
    %510 = vector.broadcast %cst_261 : f32 to vector<8x32xf32>
    %511 = arith.addf %510, %509 : vector<8x32xf32>
    %512 = arith.divf %510, %511 : vector<8x32xf32>
    %513 = vector.extract_strided_slice %506 {offsets = [0, 32], sizes = [8, 32], strides = [1, 1]} : vector<8x128xf32> to vector<8x32xf32>
    %514 = arith.negf %513 : vector<8x32xf32>
    %515 = math.exp %514 : vector<8x32xf32>
    %cst_262 = arith.constant 1.000000e+00 : f32
    %516 = vector.broadcast %cst_262 : f32 to vector<8x32xf32>
    %517 = arith.addf %516, %515 : vector<8x32xf32>
    %518 = arith.divf %516, %517 : vector<8x32xf32>
    %519 = vector.extract_strided_slice %506 {offsets = [0, 64], sizes = [8, 32], strides = [1, 1]} : vector<8x128xf32> to vector<8x32xf32>
    %520 = math.tanh %519 : vector<8x32xf32>
    %521 = vector.extract_strided_slice %506 {offsets = [0, 96], sizes = [8, 32], strides = [1, 1]} : vector<8x128xf32> to vector<8x32xf32>
    %522 = arith.negf %521 : vector<8x32xf32>
    %523 = math.exp %522 : vector<8x32xf32>
    %cst_263 = arith.constant 1.000000e+00 : f32
    %524 = vector.broadcast %cst_263 : f32 to vector<8x32xf32>
    %525 = arith.addf %524, %523 : vector<8x32xf32>
    %526 = arith.divf %524, %525 : vector<8x32xf32>
    %527 = arith.mulf %518, %496 : vector<8x32xf32>
    %528 = arith.mulf %512, %520 : vector<8x32xf32>
    %529 = arith.addf %527, %528 : vector<8x32xf32>
    %530 = math.tanh %529 : vector<8x32xf32>
    %531 = arith.mulf %526, %530 : vector<8x32xf32>
    %532 = arith.index_cast %502 : i32 to index
    %c0_264 = arith.constant 0 : index
    %533 = vector.load %arg35[%532, %c0_264] : memref<32x32xf32, #tpu.memory_space<vmem>>, vector<8x32xf32>
    tpu.vector_store %arg35[%532, %c0_264], %531 {strides = array<i32>} : memref<32x32xf32, #tpu.memory_space<vmem>>, vector<8x32xf32>,
    %c3_i32_265 = arith.constant 3 : i32
    %c8_i32_266 = arith.constant 8 : i32
    %534 = arith.muli %c3_i32_265, %c8_i32_266 : i32
    %535 = tpu.assume_multiple %534, 8 : i32
    %536 = arith.index_cast %535 : i32 to index
    %c0_267 = arith.constant 0 : index
    %537 = vector.load %arg33[%536, %c0_267] : memref<32x128xf32, #tpu.memory_space<vmem>>, vector<8x128xf32>
    %cst_268 = arith.constant dense<0.000000e+00> : vector<8x128xf32>
    %538 = tpu.matmul %531, %433, %cst_268 {dimension_numbers = #tpu.dot_dimension_numbers<[1], [0], [0], [1], [0, 0, 1, 1], [], []>} : vector<8x32xf32>, vector<32x128xf32>, vector<8x128xf32> -> vector<8x128xf32>
    %539 = arith.addf %537, %538 : vector<8x128xf32>
    %540 = vector.extract_strided_slice %539 {offsets = [0, 0], sizes = [8, 32], strides = [1, 1]} : vector<8x128xf32> to vector<8x32xf32>
    %541 = arith.negf %540 : vector<8x32xf32>
    %542 = math.exp %541 : vector<8x32xf32>
    %cst_269 = arith.constant 1.000000e+00 : f32
    %543 = vector.broadcast %cst_269 : f32 to vector<8x32xf32>
    %544 = arith.addf %543, %542 : vector<8x32xf32>
    %545 = arith.divf %543, %544 : vector<8x32xf32>
    %546 = vector.extract_strided_slice %539 {offsets = [0, 32], sizes = [8, 32], strides = [1, 1]} : vector<8x128xf32> to vector<8x32xf32>
    %547 = arith.negf %546 : vector<8x32xf32>
    %548 = math.exp %547 : vector<8x32xf32>
    %cst_270 = arith.constant 1.000000e+00 : f32
    %549 = vector.broadcast %cst_270 : f32 to vector<8x32xf32>
    %550 = arith.addf %549, %548 : vector<8x32xf32>
    %551 = arith.divf %549, %550 : vector<8x32xf32>
    %552 = vector.extract_strided_slice %539 {offsets = [0, 64], sizes = [8, 32], strides = [1, 1]} : vector<8x128xf32> to vector<8x32xf32>
    %553 = math.tanh %552 : vector<8x32xf32>
    %554 = vector.extract_strided_slice %539 {offsets = [0, 96], sizes = [8, 32], strides = [1, 1]} : vector<8x128xf32> to vector<8x32xf32>
    %555 = arith.negf %554 : vector<8x32xf32>
    %556 = math.exp %555 : vector<8x32xf32>
    %cst_271 = arith.constant 1.000000e+00 : f32
    %557 = vector.broadcast %cst_271 : f32 to vector<8x32xf32>
    %558 = arith.addf %557, %556 : vector<8x32xf32>
    %559 = arith.divf %557, %558 : vector<8x32xf32>
    %560 = arith.mulf %551, %529 : vector<8x32xf32>
    %561 = arith.mulf %545, %553 : vector<8x32xf32>
    %562 = arith.addf %560, %561 : vector<8x32xf32>
    %563 = math.tanh %562 : vector<8x32xf32>
    %564 = arith.mulf %559, %563 : vector<8x32xf32>
    %565 = arith.index_cast %535 : i32 to index
    %c0_272 = arith.constant 0 : index
    %566 = vector.load %arg35[%565, %c0_272] : memref<32x32xf32, #tpu.memory_space<vmem>>, vector<8x32xf32>
    tpu.vector_store %arg35[%565, %c0_272], %564 {strides = array<i32>} : memref<32x32xf32, #tpu.memory_space<vmem>>, vector<8x32xf32>,
    %c4_i32_273 = arith.constant 4 : i32
    %c0_274 = arith.constant 0 : index
    %c0_275 = arith.constant 0 : index
    %567 = vector.load %arg20[%c0_274, %c0_275] : memref<32x128xf32, #tpu.memory_space<vmem>>, vector<32x128xf32>
    %cst_276 = arith.constant 0.000000e+00 : f32
    %568 = vector.broadcast %cst_276 : f32 to vector<8x32xf32>
    %c0_i32_277 = arith.constant 0 : i32
    %c3_i32_278 = arith.constant 3 : i32
    %569 = arith.subi %c3_i32_278, %c0_i32_277 : i32
    %c8_i32_279 = arith.constant 8 : i32
    %570 = arith.muli %569, %c8_i32_279 : i32
    %571 = tpu.assume_multiple %570, 8 : i32
    %572 = arith.index_cast %571 : i32 to index
    %c0_280 = arith.constant 0 : index
    %573 = vector.load %arg34[%572, %c0_280] : memref<32x128xf32, #tpu.memory_space<vmem>>, vector<8x128xf32>
    %cst_281 = arith.constant dense<0.000000e+00> : vector<8x128xf32>
    %574 = tpu.matmul %568, %567, %cst_281 {dimension_numbers = #tpu.dot_dimension_numbers<[1], [0], [0], [1], [0, 0, 1, 1], [], []>} : vector<8x32xf32>, vector<32x128xf32>, vector<8x128xf32> -> vector<8x128xf32>
    %575 = arith.addf %573, %574 : vector<8x128xf32>
    %576 = vector.extract_strided_slice %575 {offsets = [0, 0], sizes = [8, 32], strides = [1, 1]} : vector<8x128xf32> to vector<8x32xf32>
    %577 = arith.negf %576 : vector<8x32xf32>
    %578 = math.exp %577 : vector<8x32xf32>
    %cst_282 = arith.constant 1.000000e+00 : f32
    %579 = vector.broadcast %cst_282 : f32 to vector<8x32xf32>
    %580 = arith.addf %579, %578 : vector<8x32xf32>
    %581 = arith.divf %579, %580 : vector<8x32xf32>
    %582 = vector.extract_strided_slice %575 {offsets = [0, 32], sizes = [8, 32], strides = [1, 1]} : vector<8x128xf32> to vector<8x32xf32>
    %583 = arith.negf %582 : vector<8x32xf32>
    %584 = math.exp %583 : vector<8x32xf32>
    %cst_283 = arith.constant 1.000000e+00 : f32
    %585 = vector.broadcast %cst_283 : f32 to vector<8x32xf32>
    %586 = arith.addf %585, %584 : vector<8x32xf32>
    %587 = arith.divf %585, %586 : vector<8x32xf32>
    %588 = vector.extract_strided_slice %575 {offsets = [0, 64], sizes = [8, 32], strides = [1, 1]} : vector<8x128xf32> to vector<8x32xf32>
    %589 = math.tanh %588 : vector<8x32xf32>
    %590 = vector.extract_strided_slice %575 {offsets = [0, 96], sizes = [8, 32], strides = [1, 1]} : vector<8x128xf32> to vector<8x32xf32>
    %591 = arith.negf %590 : vector<8x32xf32>
    %592 = math.exp %591 : vector<8x32xf32>
    %cst_284 = arith.constant 1.000000e+00 : f32
    %593 = vector.broadcast %cst_284 : f32 to vector<8x32xf32>
    %594 = arith.addf %593, %592 : vector<8x32xf32>
    %595 = arith.divf %593, %594 : vector<8x32xf32>
    %596 = arith.mulf %587, %568 : vector<8x32xf32>
    %597 = arith.mulf %581, %589 : vector<8x32xf32>
    %598 = arith.addf %596, %597 : vector<8x32xf32>
    %599 = math.tanh %598 : vector<8x32xf32>
    %600 = arith.mulf %595, %599 : vector<8x32xf32>
    %601 = arith.index_cast %571 : i32 to index
    %c0_285 = arith.constant 0 : index
    %602 = vector.load %arg36[%601, %c0_285] : memref<32x32xf32, #tpu.memory_space<vmem>>, vector<8x32xf32>
    tpu.vector_store %arg36[%601, %c0_285], %600 {strides = array<i32>} : memref<32x32xf32, #tpu.memory_space<vmem>>, vector<8x32xf32>,
    %c1_i32_286 = arith.constant 1 : i32
    %c3_i32_287 = arith.constant 3 : i32
    %603 = arith.subi %c3_i32_287, %c1_i32_286 : i32
    %c8_i32_288 = arith.constant 8 : i32
    %604 = arith.muli %603, %c8_i32_288 : i32
    %605 = tpu.assume_multiple %604, 8 : i32
    %606 = arith.index_cast %605 : i32 to index
    %c0_289 = arith.constant 0 : index
    %607 = vector.load %arg34[%606, %c0_289] : memref<32x128xf32, #tpu.memory_space<vmem>>, vector<8x128xf32>
    %cst_290 = arith.constant dense<0.000000e+00> : vector<8x128xf32>
    %608 = tpu.matmul %600, %567, %cst_290 {dimension_numbers = #tpu.dot_dimension_numbers<[1], [0], [0], [1], [0, 0, 1, 1], [], []>} : vector<8x32xf32>, vector<32x128xf32>, vector<8x128xf32> -> vector<8x128xf32>
    %609 = arith.addf %607, %608 : vector<8x128xf32>
    %610 = vector.extract_strided_slice %609 {offsets = [0, 0], sizes = [8, 32], strides = [1, 1]} : vector<8x128xf32> to vector<8x32xf32>
    %611 = arith.negf %610 : vector<8x32xf32>
    %612 = math.exp %611 : vector<8x32xf32>
    %cst_291 = arith.constant 1.000000e+00 : f32
    %613 = vector.broadcast %cst_291 : f32 to vector<8x32xf32>
    %614 = arith.addf %613, %612 : vector<8x32xf32>
    %615 = arith.divf %613, %614 : vector<8x32xf32>
    %616 = vector.extract_strided_slice %609 {offsets = [0, 32], sizes = [8, 32], strides = [1, 1]} : vector<8x128xf32> to vector<8x32xf32>
    %617 = arith.negf %616 : vector<8x32xf32>
    %618 = math.exp %617 : vector<8x32xf32>
    %cst_292 = arith.constant 1.000000e+00 : f32
    %619 = vector.broadcast %cst_292 : f32 to vector<8x32xf32>
    %620 = arith.addf %619, %618 : vector<8x32xf32>
    %621 = arith.divf %619, %620 : vector<8x32xf32>
    %622 = vector.extract_strided_slice %609 {offsets = [0, 64], sizes = [8, 32], strides = [1, 1]} : vector<8x128xf32> to vector<8x32xf32>
    %623 = math.tanh %622 : vector<8x32xf32>
    %624 = vector.extract_strided_slice %609 {offsets = [0, 96], sizes = [8, 32], strides = [1, 1]} : vector<8x128xf32> to vector<8x32xf32>
    %625 = arith.negf %624 : vector<8x32xf32>
    %626 = math.exp %625 : vector<8x32xf32>
    %cst_293 = arith.constant 1.000000e+00 : f32
    %627 = vector.broadcast %cst_293 : f32 to vector<8x32xf32>
    %628 = arith.addf %627, %626 : vector<8x32xf32>
    %629 = arith.divf %627, %628 : vector<8x32xf32>
    %630 = arith.mulf %621, %598 : vector<8x32xf32>
    %631 = arith.mulf %615, %623 : vector<8x32xf32>
    %632 = arith.addf %630, %631 : vector<8x32xf32>
    %633 = math.tanh %632 : vector<8x32xf32>
    %634 = arith.mulf %629, %633 : vector<8x32xf32>
    %635 = arith.index_cast %605 : i32 to index
    %c0_294 = arith.constant 0 : index
    %636 = vector.load %arg36[%635, %c0_294] : memref<32x32xf32, #tpu.memory_space<vmem>>, vector<8x32xf32>
    tpu.vector_store %arg36[%635, %c0_294], %634 {strides = array<i32>} : memref<32x32xf32, #tpu.memory_space<vmem>>, vector<8x32xf32>,
    %c2_i32_295 = arith.constant 2 : i32
    %c3_i32_296 = arith.constant 3 : i32
    %637 = arith.subi %c3_i32_296, %c2_i32_295 : i32
    %c8_i32_297 = arith.constant 8 : i32
    %638 = arith.muli %637, %c8_i32_297 : i32
    %639 = tpu.assume_multiple %638, 8 : i32
    %640 = arith.index_cast %639 : i32 to index
    %c0_298 = arith.constant 0 : index
    %641 = vector.load %arg34[%640, %c0_298] : memref<32x128xf32, #tpu.memory_space<vmem>>, vector<8x128xf32>
    %cst_299 = arith.constant dense<0.000000e+00> : vector<8x128xf32>
    %642 = tpu.matmul %634, %567, %cst_299 {dimension_numbers = #tpu.dot_dimension_numbers<[1], [0], [0], [1], [0, 0, 1, 1], [], []>} : vector<8x32xf32>, vector<32x128xf32>, vector<8x128xf32> -> vector<8x128xf32>
    %643 = arith.addf %641, %642 : vector<8x128xf32>
    %644 = vector.extract_strided_slice %643 {offsets = [0, 0], sizes = [8, 32], strides = [1, 1]} : vector<8x128xf32> to vector<8x32xf32>
    %645 = arith.negf %644 : vector<8x32xf32>
    %646 = math.exp %645 : vector<8x32xf32>
    %cst_300 = arith.constant 1.000000e+00 : f32
    %647 = vector.broadcast %cst_300 : f32 to vector<8x32xf32>
    %648 = arith.addf %647, %646 : vector<8x32xf32>
    %649 = arith.divf %647, %648 : vector<8x32xf32>
    %650 = vector.extract_strided_slice %643 {offsets = [0, 32], sizes = [8, 32], strides = [1, 1]} : vector<8x128xf32> to vector<8x32xf32>
    %651 = arith.negf %650 : vector<8x32xf32>
    %652 = math.exp %651 : vector<8x32xf32>
    %cst_301 = arith.constant 1.000000e+00 : f32
    %653 = vector.broadcast %cst_301 : f32 to vector<8x32xf32>
    %654 = arith.addf %653, %652 : vector<8x32xf32>
    %655 = arith.divf %653, %654 : vector<8x32xf32>
    %656 = vector.extract_strided_slice %643 {offsets = [0, 64], sizes = [8, 32], strides = [1, 1]} : vector<8x128xf32> to vector<8x32xf32>
    %657 = math.tanh %656 : vector<8x32xf32>
    %658 = vector.extract_strided_slice %643 {offsets = [0, 96], sizes = [8, 32], strides = [1, 1]} : vector<8x128xf32> to vector<8x32xf32>
    %659 = arith.negf %658 : vector<8x32xf32>
    %660 = math.exp %659 : vector<8x32xf32>
    %cst_302 = arith.constant 1.000000e+00 : f32
    %661 = vector.broadcast %cst_302 : f32 to vector<8x32xf32>
    %662 = arith.addf %661, %660 : vector<8x32xf32>
    %663 = arith.divf %661, %662 : vector<8x32xf32>
    %664 = arith.mulf %655, %632 : vector<8x32xf32>
    %665 = arith.mulf %649, %657 : vector<8x32xf32>
    %666 = arith.addf %664, %665 : vector<8x32xf32>
    %667 = math.tanh %666 : vector<8x32xf32>
    %668 = arith.mulf %663, %667 : vector<8x32xf32>
    %669 = arith.index_cast %639 : i32 to index
    %c0_303 = arith.constant 0 : index
    %670 = vector.load %arg36[%669, %c0_303] : memref<32x32xf32, #tpu.memory_space<vmem>>, vector<8x32xf32>
    tpu.vector_store %arg36[%669, %c0_303], %668 {strides = array<i32>} : memref<32x32xf32, #tpu.memory_space<vmem>>, vector<8x32xf32>,
    %c3_i32_304 = arith.constant 3 : i32
    %c3_i32_305 = arith.constant 3 : i32
    %671 = arith.subi %c3_i32_305, %c3_i32_304 : i32
    %c8_i32_306 = arith.constant 8 : i32
    %672 = arith.muli %671, %c8_i32_306 : i32
    %673 = tpu.assume_multiple %672, 8 : i32
    %674 = arith.index_cast %673 : i32 to index
    %c0_307 = arith.constant 0 : index
    %675 = vector.load %arg34[%674, %c0_307] : memref<32x128xf32, #tpu.memory_space<vmem>>, vector<8x128xf32>
    %cst_308 = arith.constant dense<0.000000e+00> : vector<8x128xf32>
    %676 = tpu.matmul %668, %567, %cst_308 {dimension_numbers = #tpu.dot_dimension_numbers<[1], [0], [0], [1], [0, 0, 1, 1], [], []>} : vector<8x32xf32>, vector<32x128xf32>, vector<8x128xf32> -> vector<8x128xf32>
    %677 = arith.addf %675, %676 : vector<8x128xf32>
    %678 = vector.extract_strided_slice %677 {offsets = [0, 0], sizes = [8, 32], strides = [1, 1]} : vector<8x128xf32> to vector<8x32xf32>
    %679 = arith.negf %678 : vector<8x32xf32>
    %680 = math.exp %679 : vector<8x32xf32>
    %cst_309 = arith.constant 1.000000e+00 : f32
    %681 = vector.broadcast %cst_309 : f32 to vector<8x32xf32>
    %682 = arith.addf %681, %680 : vector<8x32xf32>
    %683 = arith.divf %681, %682 : vector<8x32xf32>
    %684 = vector.extract_strided_slice %677 {offsets = [0, 32], sizes = [8, 32], strides = [1, 1]} : vector<8x128xf32> to vector<8x32xf32>
    %685 = arith.negf %684 : vector<8x32xf32>
    %686 = math.exp %685 : vector<8x32xf32>
    %cst_310 = arith.constant 1.000000e+00 : f32
    %687 = vector.broadcast %cst_310 : f32 to vector<8x32xf32>
    %688 = arith.addf %687, %686 : vector<8x32xf32>
    %689 = arith.divf %687, %688 : vector<8x32xf32>
    %690 = vector.extract_strided_slice %677 {offsets = [0, 64], sizes = [8, 32], strides = [1, 1]} : vector<8x128xf32> to vector<8x32xf32>
    %691 = math.tanh %690 : vector<8x32xf32>
    %692 = vector.extract_strided_slice %677 {offsets = [0, 96], sizes = [8, 32], strides = [1, 1]} : vector<8x128xf32> to vector<8x32xf32>
    %693 = arith.negf %692 : vector<8x32xf32>
    %694 = math.exp %693 : vector<8x32xf32>
    %cst_311 = arith.constant 1.000000e+00 : f32
    %695 = vector.broadcast %cst_311 : f32 to vector<8x32xf32>
    %696 = arith.addf %695, %694 : vector<8x32xf32>
    %697 = arith.divf %695, %696 : vector<8x32xf32>
    %698 = arith.mulf %689, %666 : vector<8x32xf32>
    %699 = arith.mulf %683, %691 : vector<8x32xf32>
    %700 = arith.addf %698, %699 : vector<8x32xf32>
    %701 = math.tanh %700 : vector<8x32xf32>
    %702 = arith.mulf %697, %701 : vector<8x32xf32>
    %703 = arith.index_cast %673 : i32 to index
    %c0_312 = arith.constant 0 : index
    %704 = vector.load %arg36[%703, %c0_312] : memref<32x32xf32, #tpu.memory_space<vmem>>, vector<8x32xf32>
    tpu.vector_store %arg36[%703, %c0_312], %702 {strides = array<i32>} : memref<32x32xf32, #tpu.memory_space<vmem>>, vector<8x32xf32>,
    %c4_i32_313 = arith.constant 4 : i32
    %c0_314 = arith.constant 0 : index
    %c0_315 = arith.constant 0 : index
    %705 = vector.load %arg35[%c0_314, %c0_315] : memref<32x32xf32, #tpu.memory_space<vmem>>, vector<32x32xf32>
    %c0_316 = arith.constant 0 : index
    %c0_317 = arith.constant 0 : index
    %706 = vector.load %arg36[%c0_316, %c0_317] : memref<32x32xf32, #tpu.memory_space<vmem>>, vector<32x32xf32>
    %c0_318 = arith.constant 0 : index
    %c0_319 = arith.constant 0 : index
    %707 = vector.load %arg22[%c0_318, %c0_319] : memref<1x32xf32, #tpu.memory_space<vmem>>, vector<1x32xf32>
    %708 = vector.broadcast %707 : vector<1x32xf32> to vector<32x32xf32>
    %709 = arith.mulf %705, %708 : vector<32x32xf32>
    %cst_320 = arith.constant dense<0.000000e+00> : vector<32xf32>
    %710 = vector.multi_reduction <add>, %709, %cst_320 [1] : vector<32x32xf32> to vector<32xf32>
    %711 = vector.shape_cast %710 : vector<32xf32> to vector<32x1xf32>
    %c0_321 = arith.constant 0 : index
    %c0_322 = arith.constant 0 : index
    %712 = vector.load %arg23[%c0_321, %c0_322] : memref<1x32xf32, #tpu.memory_space<vmem>>, vector<1x32xf32>
    %713 = vector.broadcast %712 : vector<1x32xf32> to vector<32x32xf32>
    %714 = arith.mulf %706, %713 : vector<32x32xf32>
    %cst_323 = arith.constant dense<0.000000e+00> : vector<32xf32>
    %715 = vector.multi_reduction <add>, %714, %cst_323 [1] : vector<32x32xf32> to vector<32xf32>
    %716 = vector.shape_cast %715 : vector<32xf32> to vector<32x1xf32>
    %717 = arith.addf %711, %716 : vector<32x1xf32>
    %c0_324 = arith.constant 0 : index
    %c0_325 = arith.constant 0 : index
    %718 = vector.load %arg24[%c0_324, %c0_325] : memref<1x1xf32, #tpu.memory_space<vmem>>, vector<1x1xf32>
    %719 = vector.broadcast %718 : vector<1x1xf32> to vector<32x1xf32>
    %720 = arith.addf %717, %719 : vector<32x1xf32>
    %721 = vector.extract_strided_slice %720 {offsets = [0, 0], sizes = [8, 1], strides = [1, 1]} : vector<32x1xf32> to vector<8x1xf32>
    %722 = vector.extract_strided_slice %720 {offsets = [8, 0], sizes = [8, 1], strides = [1, 1]} : vector<32x1xf32> to vector<8x1xf32>
    %723 = vector.extract_strided_slice %720 {offsets = [16, 0], sizes = [8, 1], strides = [1, 1]} : vector<32x1xf32> to vector<8x1xf32>
    %724 = vector.extract_strided_slice %720 {offsets = [24, 0], sizes = [8, 1], strides = [1, 1]} : vector<32x1xf32> to vector<8x1xf32>
    %725 = arith.maximumf %721, %722 : vector<8x1xf32>
    %726 = arith.maximumf %725, %723 : vector<8x1xf32>
    %727 = arith.maximumf %726, %724 : vector<8x1xf32>
    %728 = arith.subf %721, %727 : vector<8x1xf32>
    %729 = math.exp %728 : vector<8x1xf32>
    %730 = arith.subf %722, %727 : vector<8x1xf32>
    %731 = math.exp %730 : vector<8x1xf32>
    %732 = arith.subf %723, %727 : vector<8x1xf32>
    %733 = math.exp %732 : vector<8x1xf32>
    %734 = arith.subf %724, %727 : vector<8x1xf32>
    %735 = math.exp %734 : vector<8x1xf32>
    %736 = arith.addf %729, %731 : vector<8x1xf32>
    %737 = arith.addf %736, %733 : vector<8x1xf32>
    %738 = arith.addf %737, %735 : vector<8x1xf32>
    %cst_326 = arith.constant 0.000000e+00 : f32
    %739 = vector.broadcast %cst_326 : f32 to vector<8x32xf32>
    %cst_327 = arith.constant 0.000000e+00 : f32
    %740 = vector.broadcast %cst_327 : f32 to vector<8x32xf32>
    %741 = arith.divf %729, %738 : vector<8x1xf32>
    %742 = vector.extract_strided_slice %705 {offsets = [0, 0], sizes = [8, 32], strides = [1, 1]} : vector<32x32xf32> to vector<8x32xf32>
    %743 = vector.broadcast %741 : vector<8x1xf32> to vector<8x32xf32>
    %744 = arith.mulf %743, %742 : vector<8x32xf32>
    %745 = arith.addf %739, %744 : vector<8x32xf32>
    %746 = vector.extract_strided_slice %706 {offsets = [0, 0], sizes = [8, 32], strides = [1, 1]} : vector<32x32xf32> to vector<8x32xf32>
    %747 = vector.broadcast %741 : vector<8x1xf32> to vector<8x32xf32>
    %748 = arith.mulf %747, %746 : vector<8x32xf32>
    %749 = arith.addf %740, %748 : vector<8x32xf32>
    %750 = arith.divf %731, %738 : vector<8x1xf32>
    %751 = vector.extract_strided_slice %705 {offsets = [8, 0], sizes = [8, 32], strides = [1, 1]} : vector<32x32xf32> to vector<8x32xf32>
    %752 = vector.broadcast %750 : vector<8x1xf32> to vector<8x32xf32>
    %753 = arith.mulf %752, %751 : vector<8x32xf32>
    %754 = arith.addf %745, %753 : vector<8x32xf32>
    %755 = vector.extract_strided_slice %706 {offsets = [8, 0], sizes = [8, 32], strides = [1, 1]} : vector<32x32xf32> to vector<8x32xf32>
    %756 = vector.broadcast %750 : vector<8x1xf32> to vector<8x32xf32>
    %757 = arith.mulf %756, %755 : vector<8x32xf32>
    %758 = arith.addf %749, %757 : vector<8x32xf32>
    %759 = arith.divf %733, %738 : vector<8x1xf32>
    %760 = vector.extract_strided_slice %705 {offsets = [16, 0], sizes = [8, 32], strides = [1, 1]} : vector<32x32xf32> to vector<8x32xf32>
    %761 = vector.broadcast %759 : vector<8x1xf32> to vector<8x32xf32>
    %762 = arith.mulf %761, %760 : vector<8x32xf32>
    %763 = arith.addf %754, %762 : vector<8x32xf32>
    %764 = vector.extract_strided_slice %706 {offsets = [16, 0], sizes = [8, 32], strides = [1, 1]} : vector<32x32xf32> to vector<8x32xf32>
    %765 = vector.broadcast %759 : vector<8x1xf32> to vector<8x32xf32>
    %766 = arith.mulf %765, %764 : vector<8x32xf32>
    %767 = arith.addf %758, %766 : vector<8x32xf32>
    %768 = arith.divf %735, %738 : vector<8x1xf32>
    %769 = vector.extract_strided_slice %705 {offsets = [24, 0], sizes = [8, 32], strides = [1, 1]} : vector<32x32xf32> to vector<8x32xf32>
    %770 = vector.broadcast %768 : vector<8x1xf32> to vector<8x32xf32>
    %771 = arith.mulf %770, %769 : vector<8x32xf32>
    %772 = arith.addf %763, %771 : vector<8x32xf32>
    %773 = vector.extract_strided_slice %706 {offsets = [24, 0], sizes = [8, 32], strides = [1, 1]} : vector<32x32xf32> to vector<8x32xf32>
    %774 = vector.broadcast %768 : vector<8x1xf32> to vector<8x32xf32>
    %775 = arith.mulf %774, %773 : vector<8x32xf32>
    %776 = arith.addf %767, %775 : vector<8x32xf32>
    %c0_328 = arith.constant 0 : index
    %c0_329 = arith.constant 0 : index
    %777 = vector.load %arg25[%c0_328, %c0_329] : memref<32x3xf32, #tpu.memory_space<vmem>>, vector<32x3xf32>
    %cst_330 = arith.constant dense<0.000000e+00> : vector<8x3xf32>
    %778 = tpu.matmul %772, %777, %cst_330 {dimension_numbers = #tpu.dot_dimension_numbers<[1], [0], [0], [1], [0, 0, 1, 1], [], []>} : vector<8x32xf32>, vector<32x3xf32>, vector<8x3xf32> -> vector<8x3xf32>
    %c0_331 = arith.constant 0 : index
    %c0_332 = arith.constant 0 : index
    %779 = vector.load %arg26[%c0_331, %c0_332] : memref<32x3xf32, #tpu.memory_space<vmem>>, vector<32x3xf32>
    %cst_333 = arith.constant dense<0.000000e+00> : vector<8x3xf32>
    %780 = tpu.matmul %776, %779, %cst_333 {dimension_numbers = #tpu.dot_dimension_numbers<[1], [0], [0], [1], [0, 0, 1, 1], [], []>} : vector<8x32xf32>, vector<32x3xf32>, vector<8x3xf32> -> vector<8x3xf32>
    %781 = arith.addf %778, %780 : vector<8x3xf32>
    %c0_334 = arith.constant 0 : index
    %c0_335 = arith.constant 0 : index
    %782 = vector.load %arg27[%c0_334, %c0_335] : memref<1x3xf32, #tpu.memory_space<vmem>>, vector<1x3xf32>
    %783 = vector.broadcast %782 : vector<1x3xf32> to vector<8x3xf32>
    %784 = arith.addf %781, %783 : vector<8x3xf32>
    %c0_336 = arith.constant 0 : index
    %c0_337 = arith.constant 0 : index
    %785 = vector.load %arg28[%c0_336, %c0_337] : memref<8x3xf32, #tpu.memory_space<vmem>>, vector<8x3xf32>
    tpu.vector_store %arg28[%c0_336, %c0_337], %784 {strides = array<i32>} : memref<8x3xf32, #tpu.memory_space<vmem>>, vector<8x3xf32>,
    return
  }
  func.func @transform_0(%arg0: i32) -> (i32, i32) {
    %c0_i32 = arith.constant 0 : i32
    %c0_i32_0 = arith.constant 0 : i32
    %c0_i32_1 = arith.constant 0 : i32
    return %c0_i32, %c0_i32_0 : i32, i32
  }
  func.func @transform_1(%arg0: i32) -> (i32, i32) {
    %c0_i32 = arith.constant 0 : i32
    %c0_i32_0 = arith.constant 0 : i32
    %c0_i32_1 = arith.constant 0 : i32
    return %c0_i32, %c0_i32_0 : i32, i32
  }
  func.func @transform_2(%arg0: i32) -> (i32, i32) {
    %c0_i32 = arith.constant 0 : i32
    %c0_i32_0 = arith.constant 0 : i32
    %c0_i32_1 = arith.constant 0 : i32
    return %c0_i32, %c0_i32_0 : i32, i32
  }
  func.func @transform_3(%arg0: i32) -> (i32, i32) {
    %c0_i32 = arith.constant 0 : i32
    %c0_i32_0 = arith.constant 0 : i32
    %c0_i32_1 = arith.constant 0 : i32
    return %c0_i32, %c0_i32_0 : i32, i32
  }
  func.func @transform_4(%arg0: i32) -> (i32, i32) {
    %c0_i32 = arith.constant 0 : i32
    %c0_i32_0 = arith.constant 0 : i32
    %c0_i32_1 = arith.constant 0 : i32
    return %c0_i32, %c0_i32_0 : i32, i32
  }
  func.func @transform_5(%arg0: i32) -> (i32, i32) {
    %c0_i32 = arith.constant 0 : i32
    %c0_i32_0 = arith.constant 0 : i32
    %c0_i32_1 = arith.constant 0 : i32
    return %c0_i32, %c0_i32_0 : i32, i32
  }
  func.func @transform_6(%arg0: i32) -> (i32, i32) {
    %c0_i32 = arith.constant 0 : i32
    %c0_i32_0 = arith.constant 0 : i32
    %c0_i32_1 = arith.constant 0 : i32
    return %c0_i32, %c0_i32_0 : i32, i32
  }
  func.func @transform_7(%arg0: i32) -> (i32, i32) {
    %c0_i32 = arith.constant 0 : i32
    %c0_i32_0 = arith.constant 0 : i32
    %c0_i32_1 = arith.constant 0 : i32
    return %c0_i32, %c0_i32_0 : i32, i32
  }
  func.func @transform_8(%arg0: i32) -> (i32, i32) {
    %c0_i32 = arith.constant 0 : i32
    %c0_i32_0 = arith.constant 0 : i32
    %c0_i32_1 = arith.constant 0 : i32
    return %c0_i32, %c0_i32_0 : i32, i32
  }
  func.func @transform_9(%arg0: i32) -> (i32, i32) {
    %c0_i32 = arith.constant 0 : i32
    %c0_i32_0 = arith.constant 0 : i32
    %c0_i32_1 = arith.constant 0 : i32
    return %c0_i32, %c0_i32_0 : i32, i32
  }
  func.func @transform_10(%arg0: i32) -> (i32, i32) {
    %c0_i32 = arith.constant 0 : i32
    %c0_i32_0 = arith.constant 0 : i32
    %c0_i32_1 = arith.constant 0 : i32
    return %c0_i32, %c0_i32_0 : i32, i32
  }
  func.func @transform_11(%arg0: i32) -> (i32, i32) {
    %c0_i32 = arith.constant 0 : i32
    %c0_i32_0 = arith.constant 0 : i32
    %c0_i32_1 = arith.constant 0 : i32
    return %c0_i32, %c0_i32_0 : i32, i32
  }
  func.func @transform_12(%arg0: i32) -> (i32, i32) {
    %c0_i32 = arith.constant 0 : i32
    %c0_i32_0 = arith.constant 0 : i32
    %c0_i32_1 = arith.constant 0 : i32
    return %c0_i32, %c0_i32_0 : i32, i32
  }
  func.func @transform_13(%arg0: i32) -> (i32, i32) {
    %c0_i32 = arith.constant 0 : i32
    %c0_i32_0 = arith.constant 0 : i32
    %c0_i32_1 = arith.constant 0 : i32
    return %c0_i32, %c0_i32_0 : i32, i32
  }
  func.func @transform_14(%arg0: i32) -> (i32, i32) {
    %c0_i32 = arith.constant 0 : i32
    %c0_i32_0 = arith.constant 0 : i32
    %c0_i32_1 = arith.constant 0 : i32
    return %c0_i32, %c0_i32_0 : i32, i32
  }
  func.func @transform_15(%arg0: i32) -> (i32, i32) {
    %c0_i32 = arith.constant 0 : i32
    %c0_i32_0 = arith.constant 0 : i32
    %c0_i32_1 = arith.constant 0 : i32
    return %c0_i32, %c0_i32_0 : i32, i32
  }
  func.func @transform_16(%arg0: i32) -> (i32, i32) {
    %c0_i32 = arith.constant 0 : i32
    %c0_i32_0 = arith.constant 0 : i32
    %c0_i32_1 = arith.constant 0 : i32
    return %c0_i32, %c0_i32_0 : i32, i32
  }
  func.func @transform_17(%arg0: i32) -> (i32, i32) {
    %c0_i32 = arith.constant 0 : i32
    %c0_i32_0 = arith.constant 0 : i32
    %c0_i32_1 = arith.constant 0 : i32
    return %c0_i32, %c0_i32_0 : i32, i32
  }
  func.func @transform_18(%arg0: i32) -> (i32, i32) {
    %c0_i32 = arith.constant 0 : i32
    %c0_i32_0 = arith.constant 0 : i32
    %c0_i32_1 = arith.constant 0 : i32
    return %c0_i32, %c0_i32_0 : i32, i32
  }
  func.func @transform_19(%arg0: i32) -> (i32, i32) {
    %c0_i32 = arith.constant 0 : i32
    %c0_i32_0 = arith.constant 0 : i32
    %c0_i32_1 = arith.constant 0 : i32
    return %c0_i32, %c0_i32_0 : i32, i32
  }
  func.func @transform_20(%arg0: i32) -> (i32, i32) {
    %c0_i32 = arith.constant 0 : i32
    %c0_i32_0 = arith.constant 0 : i32
    %c0_i32_1 = arith.constant 0 : i32
    return %c0_i32, %c0_i32_0 : i32, i32
  }
  func.func @transform_21(%arg0: i32) -> (i32, i32) {
    %c0_i32 = arith.constant 0 : i32
    %c0_i32_0 = arith.constant 0 : i32
    %c0_i32_1 = arith.constant 0 : i32
    return %c0_i32, %c0_i32_0 : i32, i32
  }
  func.func @transform_22(%arg0: i32) -> (i32, i32) {
    %c0_i32 = arith.constant 0 : i32
    %c0_i32_0 = arith.constant 0 : i32
    %c0_i32_1 = arith.constant 0 : i32
    return %c0_i32, %c0_i32_0 : i32, i32
  }
  func.func @transform_23(%arg0: i32) -> (i32, i32) {
    %c0_i32 = arith.constant 0 : i32
    %c0_i32_0 = arith.constant 0 : i32
    %c0_i32_1 = arith.constant 0 : i32
    return %c0_i32, %c0_i32_0 : i32, i32
  }
  func.func @transform_24(%arg0: i32) -> (i32, i32) {
    %c0_i32 = arith.constant 0 : i32
    %c0_i32_0 = arith.constant 0 : i32
    %c0_i32_1 = arith.constant 0 : i32
    return %c0_i32, %c0_i32_0 : i32, i32
  }
  func.func @transform_25(%arg0: i32) -> (i32, i32) {
    %c0_i32 = arith.constant 0 : i32
    %c0_i32_0 = arith.constant 0 : i32
    %c0_i32_1 = arith.constant 0 : i32
    return %c0_i32, %c0_i32_0 : i32, i32
  }
  func.func @transform_26(%arg0: i32) -> (i32, i32) {
    %c0_i32 = arith.constant 0 : i32
    %c0_i32_0 = arith.constant 0 : i32
    %c0_i32_1 = arith.constant 0 : i32
    return %c0_i32, %c0_i32_0 : i32, i32
  }
  func.func @transform_27(%arg0: i32) -> (i32, i32) {
    %c0_i32 = arith.constant 0 : i32
    %c0_i32_0 = arith.constant 0 : i32
    %c0_i32_1 = arith.constant 0 : i32
    return %c0_i32, %c0_i32_0 : i32, i32
  }
}

</mosaic_0001>

<bundles_post_ra>
// kernel: tpu_custom_call.1
= control target key start
LH: loop header
LB: loop body
LE: loop exit
PB: predicated region body
PF: predicated region fallthrough
CT: control target
= control target key end

     0   :  { %s5834_s0 = inlined_call_operand.vmem [shape: f32[128,16], index: 0, kind: input, shape index: {}]   ;;  %s5835_s1 = inlined_call_operand.hbm [shape: f32[16,32], index: 1, kind: input, shape index: {}]   ;;  %s5836_s2 = inlined_call_operand.hbm [shape: f32[16,32], index: 2, kind: input, shape index: {}]   ;;  %s5837_s3 = inlined_call_operand.vmem [shape: f32[1,32], index: 3, kind: input, shape index: {}]   ;;  %s5838_s4 = inlined_call_operand.vmem [shape: f32[32,32], index: 4, kind: input, shape index: {}]   ;;  %s5839_s5 = inlined_call_operand.vmem [shape: f32[32,32], index: 5, kind: input, shape index: {}]   ;;  %s5840_s6 = inlined_call_operand.hbm [shape: f32[1,32], index: 6, kind: input, shape index: {}]   ;;  %s5841_s7 = inlined_call_operand.vmem [shape: f32[32,128], index: 7, kind: input, shape index: {}]   ;;  %s5842_s8 = inlined_call_operand.vmem [shape: f32[32,128], index: 8, kind: input, shape index: {}]   ;;  %s5843_s9 = inlined_call_operand.hbm [shape: f32[1,128], index: 9, kind: input, shape index: {}]   ;;  %s5844_s10 = inlined_call_operand.vmem [shape: f32[32,128], index: 10, kind: input, shape index: {}]   ;;  %s5845_s11 = inlined_call_operand.vmem [shape: f32[32,128], index: 11, kind: input, shape index: {}]   ;;  %s5846_s12 = inlined_call_operand.vmem [shape: f32[1,128], index: 12, kind: input, shape index: {}]   ;;  %s5847_s13 = inlined_call_operand.vmem [shape: f32[32,128], index: 13, kind: input, shape index: {}]   ;;  %s5848_s14 = inlined_call_operand.vmem [shape: f32[32,128], index: 14, kind: input, shape index: {}]   ;;  %s5849_s15 = inlined_call_operand.hbm [shape: f32[32,128], index: 15, kind: input, shape index: {}]   ;;  %s5850_s16 = inlined_call_operand.vmem [shape: f32[1,128], index: 16, kind: input, shape index: {}]   ;;  %s5851_s17 = inlined_call_operand.hbm [shape: f32[32,128], index: 17, kind: input, shape index: {}]   ;;  %s5852_s18 = inlined_call_operand.hbm [shape: f32[32,128], index: 18, kind: input, shape index: {}]   ;;  %s5853_s19 = inlined_call_operand.vmem [shape: f32[32,128], index: 19, kind: input, shape index: {}]   ;;  %s5854_s20 = inlined_call_operand.hbm [shape: f32[1,128], index: 20, kind: input, shape index: {}]   ;;  %s5855_s21 = inlined_call_operand.hbm [shape: f32[1,32], index: 21, kind: input, shape index: {}]   ;;  %s5856_s22 = inlined_call_operand.vmem [shape: f32[1,32], index: 22, kind: input, shape index: {}]   ;;  %s5857_s23 = inlined_call_operand.<no memory space> [shape: f32[1,1], index: 23, kind: input, shape index: {}]   ;;  %s5858_s24 = inlined_call_operand.vmem [shape: f32[32,3], index: 24, kind: input, shape index: {}]   ;;  %s5859_s25 = inlined_call_operand.vmem [shape: f32[32,3], index: 25, kind: input, shape index: {}]   ;;  %s5860_s26 = inlined_call_operand.vmem [shape: f32[1,3], index: 26, kind: input, shape index: {}]   ;;  %s5861_s27 = inlined_call_operand.vmem [shape: f32[8,3], index: 27, kind: output, shape index: {}]  }
   0x1   :  { %5875 = sst [smem:[#allocation30_spill]] %s5834_s0  ;;  %v32_v0 = vstv %s5857_s23 }
   0x2   :  { %5876 = sst [smem:[#allocation31_spill]] %s5835_s1  ;;  %33 = vst [vmem:[#allocation10] sm:$0x1] %v32_v0 }
   0x3   :  { %5877 = sst [smem:[#allocation32_spill]] %s5836_s2 }
   0x4   :  { %5878 = sst [smem:[#allocation33_spill]] %s5837_s3 }
   0x5   :  { %5879 = sst [smem:[#allocation34_spill]] %s5838_s4 }
   0x6   :  { %5880 = sst [smem:[#allocation35_spill]] %s5839_s5 }
   0x7   :  { %5881 = sst [smem:[#allocation36_spill]] %s5840_s6 }
   0x8   :  { %5882 = sst [smem:[#allocation37_spill]] %s5841_s7 }
   0x9   :  { %5883 = sst [smem:[#allocation38_spill]] %s5842_s8 }
   0xa   :  { %5884 = sst [smem:[#allocation39_spill]] %s5843_s9 }
   0xb   :  { %5885 = sst [smem:[#allocation40_spill]] %s5844_s10 }
   0xc   :  { %5886 = sst [smem:[#allocation41_spill]] %s5845_s11 }
   0xd   :  { %34 = vsyncpa [#allocation12], 0 }
   0xe   :  { %35 = vsyncpa [#allocation14], 0 }
   0xf   :  { %36 = vsyncpa [#allocation17], 0 }
  0x10   :  { %37 = vsyncpa [#allocation20], 0 }
  0x11   :  { %38 = vsyncpa [#allocation23], 0  ;;  %s4857_s8 = smov [#allocation13]   ;;  %s4858_s9 = smov [#allocation16]  }
  0x12   :  { %s58_s30 = sshll.u32 %s4857_s8, 4  ;;  %s91_s5 = sshll.u32 %s4858_s9, 4  ;;  %s59_s30 = int_to_ptr.vmem [resolvable:$true] %s58_s30  ;;  %s5017_s5 = int_to_ptr.vmem [resolvable:$true] %s91_s5 }
  0x13   :  { %s5887_s10 = sld [smem:[#allocation32_spill]] }
  0x19   :  { %s4649_s29 = scalar_lea.hbm %s5887_s10, 256 }
  0x1a   :  { %p4650_p0 = scmp.ne.s32.totalorder %s5887_s10, %s4649_s29  ;;  %p4653_p1 = scmp.lt.u32.totalorder %s4649_s29, %s5887_s10 }
  0x1c   :  { %p4655_p2 = pnand %p4653_p1, %p4650_p0 }
  0x1e   :  { %4658 = shalt.err (!%p4655_p2)
}
  0x1f   :  { %s4659_s2 = scalar_lea.vmem %s59_s30, 256  ;;  %p4664_p4 = scmp.lt.s32.totalorder %s59_s30, %s59_s30 }
  0x20   :  { %p4660_p3 = scmp.ne.s32.totalorder %s59_s30, %s4659_s2  ;;  %p4665_p5 = scmp.lt.s32.totalorder %s4659_s2, %s4659_s2 }
  0x22   :  { %p4666_p6 = por %p4665_p5, %p4664_p4 }
  0x24   :  { %p4667_p7 = pnand %p4666_p6, %p4660_p3 }
  0x26   :  { %4670 = shalt.err (!%p4667_p7)
}
  0x27   :  { %s5873_s3 = smov 128   ;;  %s4860_s7 = smov 8  }
  0x28   :  { %64 = dma.hbm_to_vmem [thread:$0]  %s5887_s10, 256, %s59_s30, [#allocation14], %s5873_s3, %s5873_s3, %s4860_s7  }
  0x29   :  { %s5888_s0 = sld [smem:[#allocation39_spill]] }
  0x2f   :  { %s4671_s29 = scalar_lea.hbm %s5888_s0, 16 }
  0x30   :  { %p4672_p8 = scmp.ne.s32.totalorder %s5888_s0, %s4671_s29  ;;  %p4675_p9 = scmp.lt.u32.totalorder %s4671_s29, %s5888_s0 }
  0x32   :  { %p4677_p10 = pnand %p4675_p9, %p4672_p8 }
  0x34   :  { %4680 = shalt.err (!%p4677_p10)
}
  0x35   :  { %s4681_s2 = scalar_lea.vmem %s5017_s5, 16  ;;  %s4685_s30 = scalar_lea.vmem %s5017_s5, 32 }
  0x36   :  { %p4682_p11 = scmp.ne.s32.totalorder %s5017_s5, %s4681_s2  ;;  %p4686_p12 = scmp.lt.s32.totalorder %s5017_s5, %s5017_s5 }
  0x37   :  { %p4687_p13 = scmp.lt.s32.totalorder %s4685_s30, %s4681_s2 }
  0x39   :  { %p4688_p0 = por %p4687_p13, %p4686_p12 }
  0x3b   :  { %p4689_p1 = pnand %p4688_p0, %p4682_p11 }
  0x3d   :  { %4692 = shalt.err (!%p4689_p1)
}
  0x3e   :  { %94 = dma.hbm_to_vmem [thread:$0]  %s5888_s0, 16, %s5017_s5, [#allocation17]  }
  0x3f   :  { %s4861_s8 = smov [#allocation19]   ;;  %s4862_s28 = smov [#allocation22]  }
  0x40   :  { %s124_s9 = sshll.u32 %s4861_s8, 4  ;;  %s151_s29 = sshll.u32 %s4862_s28, 4  ;;  %s125_s9 = int_to_ptr.vmem [resolvable:$true] %s124_s9  ;;  %s152_s29 = int_to_ptr.vmem [resolvable:$true] %s151_s29 }
  0x41   :  { %s4693_s23 = scalar_lea.hbm %s5851_s17, 512 }
  0x42   :  { %p4694_p2 = scmp.ne.s32.totalorder %s5851_s17, %s4693_s23  ;;  %p4697_p3 = scmp.lt.u32.totalorder %s4693_s23, %s5851_s17 }
  0x44   :  { %p4699_p4 = pnand %p4697_p3, %p4694_p2 }
  0x46   :  { %4702 = shalt.err (!%p4699_p4)
}
  0x47   :  { %s4703_s5 = scalar_lea.vmem %s125_s9, 512  ;;  %p4708_p6 = scmp.lt.s32.totalorder %s125_s9, %s125_s9 }
  0x48   :  { %p4704_p5 = scmp.ne.s32.totalorder %s125_s9, %s4703_s5  ;;  %p4709_p7 = scmp.lt.s32.totalorder %s4703_s5, %s4703_s5 }
  0x4a   :  { %p4710_p8 = por %p4709_p7, %p4708_p6 }
  0x4c   :  { %p4711_p9 = pnand %p4710_p8, %p4704_p5 }
  0x4e   :  { %4714 = shalt.err (!%p4711_p9)
}
  0x4f   :  { %s5889_s0 = smov 128   ;;  %s4715_s3 = scalar_lea.hbm %s5854_s20, 16 }
  0x50   :  { %130 = dma.hbm_to_vmem [thread:$0]  %s5851_s17, 512, %s125_s9, [#allocation20], %s5889_s0, %s5889_s0, %s4860_s7  }
  0x51   :  { %p4716_p10 = scmp.ne.s32.totalorder %s5854_s20, %s4715_s3  ;;  %p4719_p11 = scmp.lt.u32.totalorder %s4715_s3, %s5854_s20 }
  0x53   :  { %p4721_p12 = pnand %p4719_p11, %p4716_p10 }
  0x55   :  { %4724 = shalt.err (!%p4721_p12)
}
  0x56   :  { %s4725_s2 = scalar_lea.vmem %s152_s29, 16  ;;  %s4729_s30 = scalar_lea.vmem %s152_s29, 32 }
  0x57   :  { %p4726_p13 = scmp.ne.s32.totalorder %s152_s29, %s4725_s2  ;;  %p4730_p0 = scmp.lt.s32.totalorder %s152_s29, %s152_s29 }
  0x58   :  { %p4731_p1 = scmp.lt.s32.totalorder %s4729_s30, %s4725_s2 }
  0x5a   :  { %p4732_p2 = por %p4731_p1, %p4730_p0 }
  0x5c   :  { %p4733_p3 = pnand %p4732_p2, %p4726_p13 }
  0x5e   :  { %4736 = shalt.err (!%p4733_p3)
}
  0x5f   :  { %154 = dma.hbm_to_vmem [thread:$0]  %s5854_s20, 16, %s152_s29, [#allocation23]  }
  0x60   :  { %s4863_s5 = smov [#allocation11]   ;;  %s4864_s4 = smov [#allocation15]  }
  0x61   :  { %s46_s10 = sshll.u32 %s4863_s5, 4  ;;  %s77_s8 = sshll.u32 %s4864_s4, 4  ;;  %s47_s10 = int_to_ptr.vmem [resolvable:$true] %s46_s10  ;;  %s78_s8 = int_to_ptr.vmem [resolvable:$true] %s77_s8 }
  0x62   :  { %s5890_s1 = sld [smem:[#allocation31_spill]] }
  0x68   :  { %s4737_s6 = scalar_lea.hbm %s5890_s1, 256 }
  0x69   :  { %p4738_p4 = scmp.ne.s32.totalorder %s5890_s1, %s4737_s6  ;;  %p4741_p5 = scmp.lt.u32.totalorder %s4737_s6, %s5890_s1 }
  0x6b   :  { %p4743_p6 = pnand %p4741_p5, %p4738_p4 }
  0x6d   :  { %4746 = shalt.err (!%p4743_p6)
}
  0x6e   :  { %s4747_s20 = scalar_lea.vmem %s47_s10, 256  ;;  %p4752_p8 = scmp.lt.s32.totalorder %s47_s10, %s47_s10 }
  0x6f   :  { %p4748_p7 = scmp.ne.s32.totalorder %s47_s10, %s4747_s20  ;;  %p4753_p9 = scmp.lt.s32.totalorder %s4747_s20, %s4747_s20 }
  0x71   :  { %p4754_p10 = por %p4753_p9, %p4752_p8 }
  0x73   :  { %p4755_p11 = pnand %p4754_p10, %p4748_p7 }
  0x75   :  { %4758 = shalt.err (!%p4755_p11)
}
  0x76   :  { %52 = dma.hbm_to_vmem [thread:$0]  %s5890_s1, 256, %s47_s10, [#allocation12], %s5889_s0, %s5889_s0, %s4860_s7  }
  0x77   :  { %s5891_s4 = sld [smem:[#allocation36_spill]] }
  0x7d   :  { %s4759_s28 = scalar_lea.hbm %s5891_s4, 16 }
  0x7e   :  { %p4760_p12 = scmp.ne.s32.totalorder %s5891_s4, %s4759_s28  ;;  %p4763_p13 = scmp.lt.u32.totalorder %s4759_s28, %s5891_s4 }
  0x80   :  { %p4765_p0 = pnand %p4763_p13, %p4760_p12 }
  0x82   :  { %4768 = shalt.err (!%p4765_p0)
}
  0x83   :  { %s4769_s2 = scalar_lea.vmem %s78_s8, 16  ;;  %s4773_s30 = scalar_lea.vmem %s78_s8, 32 }
  0x84   :  { %p4770_p1 = scmp.ne.s32.totalorder %s78_s8, %s4769_s2  ;;  %p4774_p2 = scmp.lt.s32.totalorder %s78_s8, %s78_s8 }
  0x85   :  { %p4775_p3 = scmp.lt.s32.totalorder %s4773_s30, %s4769_s2 }
  0x87   :  { %p4776_p4 = por %p4775_p3, %p4774_p2 }
  0x89   :  { %p4777_p5 = pnand %p4776_p4, %p4770_p1 }
  0x8b   :  { %4780 = shalt.err (!%p4777_p5)
}
  0x8c   :  { %80 = dma.hbm_to_vmem [thread:$0]  %s5891_s4, 16, %s78_s8, [#allocation14]  }
  0x8d   :  { %s4865_s20 = smov [#allocation18]   ;;  %s4866_s17 = smov [#allocation21]  }
  0x8e   :  { %s110_s29 = sshll.u32 %s4865_s20, 4  ;;  %s136_s9 = sshll.u32 %s4866_s17, 4  ;;  %s111_s29 = int_to_ptr.vmem [resolvable:$true] %s110_s29  ;;  %s5106_s9 = int_to_ptr.vmem [resolvable:$true] %s136_s9 }
  0x8f   :  { %s4781_s3 = scalar_lea.hbm %s5849_s15, 512 }
  0x90   :  { %p4782_p6 = scmp.ne.s32.totalorder %s5849_s15, %s4781_s3  ;;  %p4785_p7 = scmp.lt.u32.totalorder %s4781_s3, %s5849_s15 }
  0x92   :  { %p4787_p8 = pnand %p4785_p7, %p4782_p6 }
  0x94   :  { %4790 = shalt.err (!%p4787_p8)
}
  0x95   :  { %s4791_s8 = scalar_lea.vmem %s111_s29, 512  ;;  %p4796_p10 = scmp.lt.s32.totalorder %s111_s29, %s111_s29 }
  0x96   :  { %p4792_p9 = scmp.ne.s32.totalorder %s111_s29, %s4791_s8  ;;  %p4797_p11 = scmp.lt.s32.totalorder %s4791_s8, %s4791_s8 }
  0x98   :  { %p4798_p12 = por %p4797_p11, %p4796_p10 }
  0x9a   :  { %p4799_p13 = pnand %p4798_p12, %p4792_p9 }
  0x9c   :  { %4802 = shalt.err (!%p4799_p13)
}
  0x9d   :  { %116 = dma.hbm_to_vmem [thread:$0]  %s5849_s15, 512, %s111_s29, [#allocation17], %s5889_s0, %s5889_s0, %s4860_s7  }
  0x9e   :  { %s4803_s20 = scalar_lea.hbm %s5852_s18, 512 }
  0x9f   :  { %p4804_p0 = scmp.ne.s32.totalorder %s5852_s18, %s4803_s20  ;;  %p4807_p1 = scmp.lt.u32.totalorder %s4803_s20, %s5852_s18 }
  0xa1   :  { %p4809_p2 = pnand %p4807_p1, %p4804_p0 }
  0xa3   :  { %4812 = shalt.err (!%p4809_p2)
}
  0xa4   :  { %s4813_s6 = scalar_lea.vmem %s5106_s9, 512  ;;  %p4818_p4 = scmp.lt.s32.totalorder %s5106_s9, %s5106_s9 }
  0xa5   :  { %p4814_p3 = scmp.ne.s32.totalorder %s5106_s9, %s4813_s6  ;;  %p4819_p5 = scmp.lt.s32.totalorder %s4813_s6, %s4813_s6 }
  0xa7   :  { %p4820_p6 = por %p4819_p5, %p4818_p4 }
  0xa9   :  { %p4821_p7 = pnand %p4820_p6, %p4814_p3 }
  0xab   :  { %4824 = shalt.err (!%p4821_p7)
}
  0xac   :  { %142 = dma.hbm_to_vmem [thread:$0]  %s5852_s18, 512, %s5106_s9, [#allocation20], %s5889_s0, %s5889_s0, %s4860_s7  }
  0xad   :  { %s4867_s23 = smov [#allocation24]   ;;  %s4825_s4 = scalar_lea.hbm %s5855_s21, 16 }
  0xae   :  { %s161_s11 = sshll.u32 %s4867_s23, 4  ;;  %p4826_p8 = scmp.ne.s32.totalorder %s5855_s21, %s4825_s4  ;;  %s162_s11 = int_to_ptr.vmem [resolvable:$true] %s161_s11 }
  0xaf   :  { %p4829_p9 = scmp.lt.u32.totalorder %s4825_s4, %s5855_s21 }
  0xb1   :  { %p4831_p10 = pnand %p4829_p9, %p4826_p8 }
  0xb3   :  { %4834 = shalt.err (!%p4831_p10)
}
  0xb4   :  { %s4835_s17 = scalar_lea.vmem %s162_s11, 16  ;;  %s4839_s18 = scalar_lea.vmem %s162_s11, 32 }
  0xb5   :  { %p4836_p11 = scmp.ne.s32.totalorder %s162_s11, %s4835_s17  ;;  %p4840_p12 = scmp.lt.s32.totalorder %s162_s11, %s162_s11 }
  0xb6   :  { %p4841_p13 = scmp.lt.s32.totalorder %s4839_s18, %s4835_s17 }
  0xb8   :  { %p4842_p0 = por %p4841_p13, %p4840_p12 }
  0xba   :  { %p4843_p1 = pnand %p4842_p0, %p4836_p11 }
  0xbc   :  { %4846 = shalt.err (!%p4843_p1)
}
  0xbd   :  { %164 = dma.hbm_to_vmem [thread:$0]  %s5855_s21, 16, %s162_s11, [#allocation23]  }
  0xbe   :  { %4847 = dma.done.wait [#allocation12], 256  }
  0xbf   :  { %4848 = vsyncadd [#allocation12], 4294967040 }
  0xc0   :  { %4849 = dma.done.wait [#allocation14], 272  }
  0xc1   :  { %4850 = vsyncadd [#allocation14], 4294967024 }
  0xc2   :  { %4851 = dma.done.wait [#allocation17], 528  }
  0xc3   :  { %4852 = vsyncadd [#allocation17], 4294966768 }
  0xc4   :  { %4853 = dma.done.wait [#allocation20], 1024  }
  0xc5   :  { %4854 = vsyncadd [#allocation20], 4294966272 }
  0xc6   :  { %4855 = dma.done.wait [#allocation23], 32  }
  0xc7   :  { %4856 = vsyncadd [#allocation23], 4294967264  ;;  %vm220_vm0 = vcmask 130048   ;;  %v414_v1 = vld [vmem:[#allocation13] sm:$0xff]  ;;  %v415_v2 = vld [vmem:[#allocation13 + $0x8] sm:$0xff]  ;;  %s5892_s28 = sld [smem:[#allocation30_spill]] }
  0xc8   :  { %v4308_v4 = vpack.c.bf16 %v415_v2, %v414_v1  ;;  %v218_v5 = vld [vmem:[#allocation11] sm:$0xff]  ;;  %v219_v6 = vld [vmem:[#allocation11 + $0x8] sm:$0xff]  ;;  %s5893_s1 = sld [smem:[#allocation33_spill]]  ;;  %vm568_vm1 = vcmask 261120   ;;  %s5895_s5 = sld [smem:[#allocation34_spill]]  ;;  %vm4869_vm2 = vmmov 0  }
  0xc9   :  { %v4304_v7 = vpack.c.bf16 %v219_v6, %v218_v5  ;;  %s5897_s7 = sld [smem:[#allocation40_spill]]  ;;  %s5898_s4 = sld [smem:[#allocation38_spill]]  ;;  %vm3605_vm3 = vcmask 23552  }
  0xca   :  { %4309 = vmatprep.subr.bf16.mxu1 %v4308_v4  ;;  %s4872_s0 = smov 32   ;;  %s5899_s21 = sld [smem:[#allocation41_spill]] }
  0xcb   :  { %4311 = vmatpush3.bf16.msra.mxu1 %v4308_v4  ;;  %4305 = vmatprep.subr.bf16.mxu0 %v4304_v7 }
  0xcc   :  { %4307 = vmatpush3.bf16.msra.mxu0 %v4304_v7 }
  0xcd   :  { %v202_v3 = vld [vmem:[%s5892_s28] sm:$0xff]  ;;  %v203_v8 = vld [vmem:[%s5892_s28 + $0x8] sm:$0xff]  ;;  %v204_v9 = vld [vmem:[%s5892_s28 + $0x10] sm:$0xff] }
  0xce   :  { %3958 = vmatprep.mubr.msk.f32.mxu1 %vm220_vm0, %v202_v3  ;;  %3930 = vmatprep.mubr.msk.f32.mxu0 %vm220_vm0, %v202_v3  ;;  %v205_v10 = vld [vmem:[%s5892_s28 + $0x18] sm:$0xff]  ;;  %v206_v11 = vld [vmem:[%s5892_s28 + $0x20] sm:$0xff]  ;;  %v207_v12 = vld [vmem:[%s5892_s28 + $0x28] sm:$0xff] }
  0xcf   :  { %3959 = vmatmul.mubr.msk.f32.vlgmr.msra.gmra.mrb[0].mxu1 %vm220_vm0, %v203_v8  ;;  %3931 = vmatmul.mubr.msk.f32.vlgmr.msra.gmra.mrb[0].mxu0 %vm220_vm0, %v203_v8  ;;  %v208_v13 = vld [vmem:[%s5892_s28 + $0x30] sm:$0xff]  ;;  %v209_v14 = vld [vmem:[%s5892_s28 + $0x38] sm:$0xff]  ;;  %v210_v15 = vld [vmem:[%s5892_s28 + $0x40] sm:$0xff] }
  0xd0   :  { %3961 = vmatprep.mubr.msk.f32.mxu1 %vm220_vm0, %v204_v9  ;;  %3933 = vmatprep.mubr.msk.f32.mxu0 %vm220_vm0, %v204_v9  ;;  %v211_v16 = vld [vmem:[%s5892_s28 + $0x48] sm:$0xff]  ;;  %v212_v17 = vld [vmem:[%s5892_s28 + $0x50] sm:$0xff]  ;;  %v213_v18 = vld [vmem:[%s5892_s28 + $0x58] sm:$0xff] }
  0xd1   :  { %v214_v19 = vld [vmem:[%s5892_s28 + $0x60] sm:$0xff]  ;;  %v215_v20 = vld [vmem:[%s5892_s28 + $0x68] sm:$0xff]  ;;  %v216_v21 = vld [vmem:[%s5892_s28 + $0x70] sm:$0xff] }
  0xd2   :  { %v217_v22 = vld [vmem:[%s5892_s28 + $0x78] sm:$0xff]  ;;  %v5238_v23 = vld [vmem:[%s5893_s1] ss:$0 sm:$0xff]  ;;  %s5894_s28 = sld [smem:[#allocation35_spill]]  ;;  %v700_v28 = vld [vmem:[%s5895_s5 + $0x8] sm:$0xff]  ;;  %s5896_s1 = sld [smem:[#allocation37_spill]] }
  0xd3   :  { %3962 = vmatmul.mubr.msk.f32.gmra.mrb[2].mxu1 %vm220_vm0, %v205_v10  ;;  %3934 = vmatmul.mubr.msk.f32.gmra.mrb[2].mxu0 %vm220_vm0, %v205_v10  ;;  %586 = vst.msk [vmem:[#allocation2 + $0x80] sm:$0xff] %vm568_vm1, %v5238_v23  ;;  %v699_v26 = vld [vmem:[%s5895_s5] sm:$0xff]  ;;  %v701_v32 = vld [vmem:[%s5895_s5 + $0x10] sm:$0xff]  ;;  %v702_v34 = vld [vmem:[%s5895_s5 + $0x18] sm:$0xff] }
  0xd4   :  { %3964 = vmatprep.mubr.msk.f32.mxu1 %vm220_vm0, %v206_v11  ;;  %3936 = vmatprep.mubr.msk.f32.mxu0 %vm220_vm0, %v206_v11  ;;  %v4312_v29 = vpack.c.bf16 %v700_v28, %v699_v26  ;;  %v4316_v35 = vpack.c.bf16 %v702_v34, %v701_v32 }
  0xd6   :  { %4313 = vmatprep.subr.bf16.mxu0 %v4312_v29 }
  0xd7   :  { %3965 = vmatmul.mubr.msk.f32.gmra.mrb[4].mxu1 %vm220_vm0, %v207_v12  ;;  %3937 = vmatmul.mubr.msk.f32.gmra.mrb[4].mxu0 %vm220_vm0, %v207_v12 }
  0xd8   :  { %3967 = vmatprep.mubr.msk.f32.mxu1 %vm220_vm0, %v208_v13  ;;  %3939 = vmatprep.mubr.msk.f32.mxu0 %vm220_vm0, %v208_v13  ;;  %v832_v24 = vld [vmem:[%s5894_s28] sm:$0xff]  ;;  %v833_v25 = vld [vmem:[%s5894_s28 + $0x8] sm:$0xff]  ;;  %v834_v30 = vld [vmem:[%s5894_s28 + $0x10] sm:$0xff] }
  0xd9   :  { %v4320_v27 = vpack.c.bf16 %v833_v25, %v832_v24  ;;  %v835_v31 = vld [vmem:[%s5894_s28 + $0x18] sm:$0xff]  ;;  %4315 = vmatpush3.bf16.msra.mxu0 %v4312_v29 }
  0xda   :  { %v4324_v33 = vpack.c.bf16 %v835_v31, %v834_v30  ;;  %4317 = vmatprep.subr.bf16.mxu0 %v4316_v35 }
  0xdb   :  { %3968 = vmatmul.mubr.msk.f32.gmra.mrb[6].mxu1 %vm220_vm0, %v209_v14  ;;  %3940 = vmatmul.mubr.msk.f32.gmra.mrb[6].mxu0 %vm220_vm0, %v209_v14 }
  0xdc   :  { %3970 = vmatprep.mubr.msk.f32.mxu1 %vm220_vm0, %v210_v15  ;;  %3942 = vmatprep.mubr.msk.f32.mxu0 %vm220_vm0, %v210_v15 }
  0xdd   :  { %4321 = vmatprep.subr.bf16.mxu1 %v4320_v27  ;;  %4319 = vmatpush3.bf16.msra.mxu0 %v4316_v35 }
  0xde   :  { %4323 = vmatpush3.bf16.msra.mxu1 %v4320_v27 }
  0xdf   :  { %3971 = vmatmul.mubr.msk.f32.gmra.mrb[8].mxu1 %vm220_vm0, %v211_v16  ;;  %3943 = vmatmul.mubr.msk.f32.gmra.mrb[8].mxu0 %vm220_vm0, %v211_v16 }
  0xe0   :  { %3973 = vmatprep.mubr.msk.f32.mxu1 %vm220_vm0, %v212_v17  ;;  %3945 = vmatprep.mubr.msk.f32.mxu0 %vm220_vm0, %v212_v17 }
  0xe1   :  { %4325 = vmatprep.subr.bf16.mxu1 %v4324_v33 }
  0xe2   :  { %4327 = vmatpush3.bf16.msra.mxu1 %v4324_v33 }
  0xe3   :  { %3974 = vmatmul.mubr.msk.f32.gmra.mrb[10].mxu1 %vm220_vm0, %v213_v18  ;;  %3946 = vmatmul.mubr.msk.f32.gmra.mrb[10].mxu0 %vm220_vm0, %v213_v18 }
  0xe4   :  { %3976 = vmatprep.mubr.msk.f32.mxu1 %vm220_vm0, %v214_v19  ;;  %3948 = vmatprep.mubr.msk.f32.mxu0 %vm220_vm0, %v214_v19 }
  0xe7   :  { %3977 = vmatmul.mubr.msk.f32.gmra.mrb[12].mxu1 %vm220_vm0, %v215_v20  ;;  %3949 = vmatmul.mubr.msk.f32.gmra.mrb[12].mxu0 %vm220_vm0, %v215_v20 }
  0xe8   :  { %3979 = vmatprep.mubr.msk.f32.mxu1 %vm220_vm0, %v216_v21  ;;  %3951 = vmatprep.mubr.msk.f32.mxu0 %vm220_vm0, %v216_v21 }
  0xeb   :  { %3980 = vmatmul.mubr.msk.f32.gmra.mrb[14].mxu1 %vm220_vm0, %v217_v22  ;;  %3952 = vmatmul.mubr.msk.f32.gmra.mrb[14].mxu0 %vm220_vm0, %v217_v22 }
 0x1a2   :  { %v3960_v36 = vpop.f32.mrb[0].mxu1  ;;  %v3932_v40 = vpop.f32.mrb[0].mxu0 }
 0x1a3   :  { %v495_v37 = vadd.f32 %v3960_v36, %v5238_v23  ;;  %v489_v38 = vpop.f32.mrb[1].mxu1  ;;  %v335_v41 = vpop.f32.mrb[1].mxu0 }
 0x1a4   :  { %v490_v39 = vadd.f32 %v5238_v23, %v489_v38 }
 0x1a5   :  { %570 = vst.msk [vmem:[#allocation2 + $0x8] sm:$0xff] %vm568_vm1, %v495_v37 }
 0x1a6   :  { %569 = vst.msk [vmem:[#allocation2] sm:$0xff] %vm568_vm1, %v490_v39  ;;  %v3963_v42 = vpop.f32.mrb[2].mxu1  ;;  %v3935_v46 = vpop.f32.mrb[2].mxu0 }
 0x1a7   :  { %v505_v43 = vadd.f32 %v3963_v42, %v5238_v23  ;;  %v499_v44 = vpop.f32.mrb[3].mxu1  ;;  %v345_v47 = vpop.f32.mrb[3].mxu0 }
 0x1a8   :  { %v500_v45 = vadd.f32 %v5238_v23, %v499_v44 }
 0x1a9   :  { %572 = vst.msk [vmem:[#allocation2 + $0x18] sm:$0xff] %vm568_vm1, %v505_v43 }
 0x1aa   :  { %571 = vst.msk [vmem:[#allocation2 + $0x10] sm:$0xff] %vm568_vm1, %v500_v45  ;;  %v3966_v48 = vpop.f32.mrb[4].mxu1  ;;  %v3938_v53 = vpop.f32.mrb[4].mxu0 }
 0x1ab   :  { %v515_v49 = vadd.f32 %v3966_v48, %v5238_v23  ;;  %v509_v50 = vpop.f32.mrb[5].mxu1  ;;  %v355_v55 = vpop.f32.mrb[5].mxu0 }
 0x1ac   :  { %v510_v51 = vadd.f32 %v5238_v23, %v509_v50  ;;  %v587_v52 = vld [vmem:[#allocation2 + $0x8] sm:$0xff] }
 0x1ad   :  { %574 = vst.msk [vmem:[#allocation2 + $0x28] sm:$0xff] %vm568_vm1, %v515_v49  ;;  %v603_v54 = vadd.f32 %v587_v52, %v335_v41  ;;  %v635_v19 = vld [vmem:[#allocation2] sm:$0xff] }
 0x1ae   :  { %573 = vst.msk [vmem:[#allocation2 + $0x20] sm:$0xff] %vm568_vm1, %v510_v51  ;;  %v3969_v56 = vpop.f32.mrb[6].mxu1  ;;  %v3941_v61 = vpop.f32.mrb[6].mxu0  ;;  %v602_v41 = vld [vmem:[#allocation2 + $0x80] sm:$0xff] }
 0x1af   :  { %619 = vst.msk [vmem:[#allocation2 + $0x8] sm:$0xff] %vm568_vm1, %v603_v54  ;;  %v525_v57 = vadd.f32 %v3969_v56, %v5238_v23  ;;  %v519_v58 = vpop.f32.mrb[7].mxu1  ;;  %v365_v0 = vpop.f32.mrb[7].mxu0 }
 0x1b0   :  { %v520_v59 = vadd.f32 %v5238_v23, %v519_v58  ;;  %v589_v60 = vld [vmem:[#allocation2 + $0x18] sm:$0xff] }
 0x1b1   :  { %v588_v62 = vld [vmem:[#allocation2 + $0x10] sm:$0xff]  ;;  %576 = vst.msk [vmem:[#allocation2 + $0x38] sm:$0xff] %vm568_vm1, %v525_v57  ;;  %v605_v63 = vadd.f32 %v589_v60, %v345_v47 }
 0x1b2   :  { %v604_v1 = vadd.f32 %v3932_v40, %v588_v62  ;;  %575 = vst.msk [vmem:[#allocation2 + $0x30] sm:$0xff] %vm568_vm1, %v520_v59  ;;  %v3972_v2 = vpop.f32.mrb[8].mxu1  ;;  %v5287_v7 = vpop.f32.mrb[8].mxu0 }
 0x1b3   :  { %621 = vst.msk [vmem:[#allocation2 + $0x18] sm:$0xff] %vm568_vm1, %v605_v63  ;;  %v535_v3 = vadd.f32 %v3972_v2, %v5238_v23  ;;  %v529_v4 = vpop.f32.mrb[9].mxu1  ;;  %v375_v10 = vpop.f32.mrb[9].mxu0 }
 0x1b4   :  { %620 = vst.msk [vmem:[#allocation2 + $0x10] sm:$0xff] %vm568_vm1, %v604_v1  ;;  %v530_v5 = vadd.f32 %v5238_v23, %v529_v4  ;;  %v591_v6 = vld [vmem:[#allocation2 + $0x28] sm:$0xff] }
 0x1b5   :  { %v590_v8 = vld [vmem:[#allocation2 + $0x20] sm:$0xff]  ;;  %578 = vst.msk [vmem:[#allocation2 + $0x48] sm:$0xff] %vm568_vm1, %v535_v3  ;;  %v607_v9 = vadd.f32 %v591_v6, %v355_v55 }
 0x1b6   :  { %v606_v11 = vadd.f32 %v3935_v46, %v590_v8  ;;  %577 = vst.msk [vmem:[#allocation2 + $0x40] sm:$0xff] %vm568_vm1, %v530_v5  ;;  %v3975_v12 = vpop.f32.mrb[10].mxu1  ;;  %v636_v13 = vld [vmem:[#allocation2 + $0x8] sm:$0xff]  ;;  %v3947_v18 = vpop.f32.mrb[10].mxu0 }
 0x1b7   :  { %623 = vst.msk [vmem:[#allocation2 + $0x28] sm:$0xff] %vm568_vm1, %v607_v9  ;;  %v545_v14 = vadd.f32 %v3975_v12, %v5238_v23  ;;  %v539_v15 = vpop.f32.mrb[11].mxu1  ;;  %v385_v22 = vpop.f32.mrb[11].mxu0  ;;  %v638_v24 = vmax.f32 %v635_v19, %v636_v13 }
 0x1b8   :  { %622 = vst.msk [vmem:[#allocation2 + $0x20] sm:$0xff] %vm568_vm1, %v606_v11  ;;  %v540_v16 = vadd.f32 %v5238_v23, %v539_v15  ;;  %v593_v17 = vld [vmem:[#allocation2 + $0x38] sm:$0xff] }
 0x1b9   :  { %v592_v20 = vld [vmem:[#allocation2 + $0x30] sm:$0xff]  ;;  %580 = vst.msk [vmem:[#allocation2 + $0x58] sm:$0xff] %vm568_vm1, %v545_v14  ;;  %v609_v21 = vadd.f32 %v593_v17, %v365_v0 }
 0x1ba   :  { %v608_v25 = vadd.f32 %v3938_v53, %v592_v20  ;;  %579 = vst.msk [vmem:[#allocation2 + $0x50] sm:$0xff] %vm568_vm1, %v540_v16  ;;  %v3978_v26 = vpop.f32.mrb[12].mxu1  ;;  %v643_v28 = vld [vmem:[#allocation2 + $0x18] sm:$0xff]  ;;  %v3950_v33 = vpop.f32.mrb[12].mxu0 }
 0x1bb   :  { %v637_v27 = vld [vmem:[#allocation2 + $0x10] sm:$0xff]  ;;  %625 = vst.msk [vmem:[#allocation2 + $0x38] sm:$0xff] %vm568_vm1, %v609_v21  ;;  %v555_v29 = vadd.f32 %v3978_v26, %v5238_v23  ;;  %v549_v30 = vpop.f32.mrb[13].mxu1  ;;  %v395_v37 = vpop.f32.mrb[13].mxu0 }
 0x1bc   :  { %624 = vst.msk [vmem:[#allocation2 + $0x30] sm:$0xff] %vm568_vm1, %v608_v25  ;;  %v550_v31 = vadd.f32 %v5238_v23, %v549_v30  ;;  %v595_v32 = vld [vmem:[#allocation2 + $0x48] sm:$0xff]  ;;  %v639_v34 = vmax.f32 %v638_v24, %v637_v27  ;;  %v645_v38 = vmax.f32 %v637_v27, %v643_v28 }
 0x1bd   :  { %v594_v35 = vld [vmem:[#allocation2 + $0x40] sm:$0xff]  ;;  %582 = vst.msk [vmem:[#allocation2 + $0x68] sm:$0xff] %vm568_vm1, %v555_v29  ;;  %v611_v36 = vadd.f32 %v595_v32, %v375_v10 }
 0x1be   :  { %v610_v39 = vadd.f32 %v3941_v61, %v594_v35  ;;  %581 = vst.msk [vmem:[#allocation2 + $0x60] sm:$0xff] %vm568_vm1, %v550_v31  ;;  %v3981_v40 = vpop.f32.mrb[14].mxu1  ;;  %v640_v42 = vmax.f32 %v639_v34, 0.0  ;;  %v650_v44 = vld [vmem:[#allocation2 + $0x28] sm:$0xff]  ;;  %v3953_v50 = vpop.f32.mrb[14].mxu0 }
 0x1bf   :  { %v644_v43 = vld [vmem:[#allocation2 + $0x20] sm:$0xff]  ;;  %627 = vst.msk [vmem:[#allocation2 + $0x48] sm:$0xff] %vm568_vm1, %v611_v36  ;;  %v565_v45 = vadd.f32 %v3981_v40, %v5238_v23  ;;  %v559_v46 = vpop.f32.mrb[15].mxu1  ;;  %v618_v53 = vadd.f32 %v3953_v50, %v602_v41  ;;  %v405_v54 = vpop.f32.mrb[15].mxu0  ;;  %v1015_v40 = vld [vmem:[%s5896_s1 + $0x8] sm:$0xff] }
 0x1c0   :  { %v646_v47 = vmax.f32 %v645_v38, %v644_v43  ;;  %626 = vst.msk [vmem:[#allocation2 + $0x40] sm:$0xff] %vm568_vm1, %v610_v39  ;;  %v560_v48 = vadd.f32 %v5238_v23, %v559_v46  ;;  %v597_v49 = vld [vmem:[#allocation2 + $0x58] sm:$0xff]  ;;  %641 = vst.msk [vmem:[#allocation3] sm:$0xff] %vm568_vm1, %v640_v42  ;;  %v652_v56 = vmax.f32 %v644_v43, %v650_v44  ;;  %v5341_v38 = vld [vmem:[#allocation15] ss:$0 sm:$0xff] }
 0x1c1   :  { %v596_v51 = vld [vmem:[#allocation2 + $0x50] sm:$0xff]  ;;  %584 = vst.msk [vmem:[#allocation2 + $0x78] sm:$0xff] %vm568_vm1, %v565_v45  ;;  %v613_v52 = vadd.f32 %v597_v49, %v385_v22  ;;  %634 = vst.msk [vmem:[#allocation2 + $0x80] sm:$0xff] %vm568_vm1, %v618_v53  ;;  %v1014_v39 = vld [vmem:[%s5896_s1] sm:$0xff] }
 0x1c2   :  { %v647_v55 = vmax.f32 %v646_v47, 0.0  ;;  %v612_v57 = vadd.f32 %v5287_v7, %v596_v51  ;;  %583 = vst.msk [vmem:[#allocation2 + $0x70] sm:$0xff] %vm568_vm1, %v560_v48  ;;  %v657_v59 = vld [vmem:[#allocation2 + $0x38] sm:$0xff]  ;;  %957 = vst.msk [vmem:[#allocation4 + $0x40] sm:$0xff] %vm568_vm1, %v5341_v38  ;;  %v1126_v41 = vld [vmem:[%s5897_s7] sm:$0xff]  ;;  %v4328_v42 = vpack.c.bf16 %v1015_v40, %v1014_v39  ;;  %v4868_v51 = vmov 0.0|0.0  }
 0x1c3   :  { %v651_v58 = vld [vmem:[#allocation2 + $0x30] sm:$0xff]  ;;  %629 = vst.msk [vmem:[#allocation2 + $0x58] sm:$0xff] %vm568_vm1, %v613_v52  ;;  %v1127_v43 = vld [vmem:[%s5897_s7 + $0x8] sm:$0xff]  ;;  %v1017_v46 = vld [vmem:[%s5896_s1 + $0x18] sm:$0xff] }
 0x1c4   :  { %648 = vst.msk [vmem:[#allocation3 + $0x8] sm:$0xff] %vm568_vm1, %v647_v55  ;;  %628 = vst.msk [vmem:[#allocation2 + $0x50] sm:$0xff] %vm568_vm1, %v612_v57  ;;  %v599_v23 = vld [vmem:[#allocation2 + $0x68] sm:$0xff]  ;;  %v653_v60 = vmax.f32 %v652_v56, %v651_v58  ;;  %v659_v63 = vmax.f32 %v651_v58, %v657_v59  ;;  %v4336_v44 = vpack.c.bf16 %v1127_v43, %v1126_v41  ;;  %4329 = vmatprep.subr.bf16.mxu0 %v4328_v42  ;;  %v1016_v45 = vld [vmem:[%s5896_s1 + $0x10] sm:$0xff] }
 0x1c5   :  { %v598_v61 = vld [vmem:[#allocation2 + $0x60] sm:$0xff]  ;;  %v615_v62 = vadd.f32 %v599_v23, %v395_v37  ;;  %v1128_v47 = vld [vmem:[%s5897_s7 + $0x10] sm:$0xff]  ;;  %v4332_v48 = vpack.c.bf16 %v1017_v46, %v1016_v45  ;;  %v1129_v49 = vld [vmem:[%s5897_s7 + $0x18] sm:$0xff] }
 0x1c6   :  { %v614_v0 = vadd.f32 %v3947_v18, %v598_v61  ;;  %v654_v1 = vmax.f32 %v653_v60, 0.0  ;;  %v664_v3 = vld [vmem:[#allocation2 + $0x48] sm:$0xff]  ;;  %4337 = vmatprep.subr.bf16.mxu1 %v4336_v44  ;;  %v4340_v50 = vpack.c.bf16 %v1129_v49, %v1128_v47 }
 0x1c7   :  { %v658_v2 = vld [vmem:[#allocation2 + $0x40] sm:$0xff]  ;;  %631 = vst.msk [vmem:[#allocation2 + $0x68] sm:$0xff] %vm568_vm1, %v615_v62  ;;  %v691_v4 = vld [vmem:[#allocation3] sm:$0xff] }
 0x1c8   :  { %630 = vst.msk [vmem:[#allocation2 + $0x60] sm:$0xff] %vm568_vm1, %v614_v0  ;;  %v601_v5 = vld [vmem:[#allocation2 + $0x78] sm:$0xff]  ;;  %3990 = vmatprep.mubr.msk.f32.mxu0 %vm568_vm1, %v691_v4  ;;  %4010 = vmatprep.mubr.msk.f32.mxu1 %vm568_vm1, %v691_v4  ;;  %655 = vst.msk [vmem:[#allocation3 + $0x10] sm:$0xff] %vm568_vm1, %v654_v1  ;;  %v660_v6 = vmax.f32 %v659_v63, %v658_v2  ;;  %v666_v9 = vmax.f32 %v658_v2, %v664_v3  ;;  %v686_v30 = vld [vmem:[#allocation2 + $0x80] sm:$0xff] }
 0x1c9   :  { %v600_v7 = vld [vmem:[#allocation2 + $0x70] sm:$0xff]  ;;  %v617_v8 = vadd.f32 %v601_v5, %v405_v54  ;;  %v1227_v45 = vld [vmem:[%s5898_s4 + $0x8] sm:$0xff] }
 0x1ca   :  { %v616_v10 = vadd.f32 %v3950_v33, %v600_v7  ;;  %v661_v11 = vmax.f32 %v660_v6, 0.0  ;;  %v671_v13 = vld [vmem:[#allocation2 + $0x58] sm:$0xff] }
 0x1cb   :  { %v665_v12 = vld [vmem:[#allocation2 + $0x50] sm:$0xff]  ;;  %633 = vst.msk [vmem:[#allocation2 + $0x78] sm:$0xff] %vm568_vm1, %v617_v8 }
 0x1cc   :  { %v692_v14 = vld [vmem:[#allocation3 + $0x8] sm:$0xff]  ;;  %632 = vst.msk [vmem:[#allocation2 + $0x70] sm:$0xff] %vm568_vm1, %v616_v10  ;;  %662 = vst.msk [vmem:[#allocation3 + $0x18] sm:$0xff] %vm568_vm1, %v661_v11  ;;  %v667_v15 = vmax.f32 %v666_v9, %v665_v12  ;;  %v673_v16 = vmax.f32 %v665_v12, %v671_v13  ;;  %v965_v11 = vld [vmem:[#allocation4 + $0x40] sm:$0xff] }
 0x1cd   :  { %3991 = vmatmul.mubr.msk.f32.vlgmr.msra.gmra.mrb[16].mxu0 %vm568_vm1, %v692_v14  ;;  %4011 = vmatmul.mubr.msk.f32.vlgmr.msra.gmra.mrb[16].mxu1 %vm568_vm1, %v692_v14 }
 0x1ce   :  { %v668_v17 = vmax.f32 %v667_v15, 0.0  ;;  %v678_v19 = vld [vmem:[#allocation2 + $0x68] sm:$0xff]  ;;  %4331 = vmatpush3.bf16.msra.mxu0 %v4328_v42  ;;  %4339 = vmatpush3.bf16.msra.mxu1 %v4336_v44  ;;  %v1226_v44 = vld [vmem:[%s5898_s4] sm:$0xff] }
 0x1cf   :  { %v672_v18 = vld [vmem:[#allocation2 + $0x60] sm:$0xff]  ;;  %v693_v20 = vld [vmem:[#allocation3 + $0x10] sm:$0xff]  ;;  %4333 = vmatprep.subr.bf16.mxu0 %v4332_v48  ;;  %4341 = vmatprep.subr.bf16.mxu1 %v4340_v50 }
 0x1d0   :  { %3993 = vmatprep.mubr.msk.f32.mxu0 %vm568_vm1, %v693_v20  ;;  %4013 = vmatprep.mubr.msk.f32.mxu1 %vm568_vm1, %v693_v20  ;;  %669 = vst.msk [vmem:[#allocation3 + $0x20] sm:$0xff] %vm568_vm1, %v668_v17  ;;  %v674_v21 = vmax.f32 %v673_v16, %v672_v18  ;;  %v680_v22 = vmax.f32 %v672_v18, %v678_v19 }
 0x1d2   :  { %v685_v24 = vld [vmem:[#allocation2 + $0x78] sm:$0xff]  ;;  %v675_v25 = vmax.f32 %v674_v21, 0.0  ;;  %4335 = vmatpush3.bf16.msra.mxu0 %v4332_v48  ;;  %4343 = vmatpush3.bf16.msra.mxu1 %v4340_v50 }
 0x1d3   :  { %v679_v26 = vld [vmem:[#allocation2 + $0x70] sm:$0xff]  ;;  %v694_v27 = vld [vmem:[#allocation3 + $0x18] sm:$0xff]  ;;  %4344 = vmatprep.subr.bf16.mxu0 %v4868_v51  ;;  %4350 = vmatprep.subr.bf16.mxu1 %v4868_v51 }
 0x1d4   :  { %v687_v28 = vmax.f32 %v679_v26, %v685_v24  ;;  %3994 = vmatmul.mubr.msk.f32.gmra.mrb[18].mxu0 %vm568_vm1, %v694_v27  ;;  %4014 = vmatmul.mubr.msk.f32.gmra.mrb[18].mxu1 %vm568_vm1, %v694_v27  ;;  %676 = vst.msk [vmem:[#allocation3 + $0x28] sm:$0xff] %vm568_vm1, %v675_v25  ;;  %v681_v29 = vmax.f32 %v680_v22, %v679_v26 }
 0x1d6   :  { %v682_v31 = vmax.f32 %v681_v29, 0.0  ;;  %v688_v32 = vmax.f32 %v687_v28, %v686_v30 }
 0x1d7   :  { %v695_v33 = vld [vmem:[#allocation3 + $0x20] sm:$0xff] }
 0x1d8   :  { %3996 = vmatprep.mubr.msk.f32.mxu0 %vm568_vm1, %v695_v33  ;;  %4016 = vmatprep.mubr.msk.f32.mxu1 %vm568_vm1, %v695_v33  ;;  %683 = vst.msk [vmem:[#allocation3 + $0x30] sm:$0xff] %vm568_vm1, %v682_v31  ;;  %v689_v34 = vmax.f32 %v688_v32, 0.0 }
 0x1da   :  { %690 = vst.msk [vmem:[#allocation3 + $0x38] sm:$0xff] %vm568_vm1, %v689_v34 }
 0x1db   :  { %v696_v35 = vld [vmem:[#allocation3 + $0x28] sm:$0xff] }
 0x1dc   :  { %3997 = vmatmul.mubr.msk.f32.gmra.mrb[20].mxu0 %vm568_vm1, %v696_v35  ;;  %4017 = vmatmul.mubr.msk.f32.gmra.mrb[20].mxu1 %vm568_vm1, %v696_v35 }
 0x1df   :  { %v697_v36 = vld [vmem:[#allocation3 + $0x30] sm:$0xff] }
 0x1e0   :  { %3999 = vmatprep.mubr.msk.f32.mxu0 %vm568_vm1, %v697_v36  ;;  %4019 = vmatprep.mubr.msk.f32.mxu1 %vm568_vm1, %v697_v36 }
 0x1e1   :  { %v698_v37 = vld [vmem:[#allocation3 + $0x38] sm:$0xff] }
 0x1e2   :  { %4000 = vmatmul.mubr.msk.f32.gmra.mrb[22].mxu0 %vm568_vm1, %v698_v37  ;;  %4020 = vmatmul.mubr.msk.f32.gmra.mrb[22].mxu1 %vm568_vm1, %v698_v37 }
 0x2a0   :  { %v3992_v52 = vpop.f32.mrb[16].mxu0  ;;  %v4012_v53 = vpop.f32.mrb[16].mxu1 }
 0x2a1   :  { %v915_v54 = vadd.f32 %v4012_v53, %v5341_v38  ;;  %v793_v55 = vpop.f32.mrb[17].mxu0  ;;  %v909_v56 = vpop.f32.mrb[17].mxu1 }
 0x2a2   :  { %v910_v57 = vadd.f32 %v5341_v38, %v909_v56 }
 0x2a3   :  { %949 = vst.msk [vmem:[#allocation4 + $0x8] sm:$0xff] %vm568_vm1, %v915_v54  ;;  %v1228_v54 = vld [vmem:[%s5898_s4 + $0x10] sm:$0xff] }
 0x2a4   :  { %948 = vst.msk [vmem:[#allocation4] sm:$0xff] %vm568_vm1, %v910_v57 }
 0x2a7   :  { %v3995_v58 = vpop.f32.mrb[18].mxu0  ;;  %v4015_v59 = vpop.f32.mrb[18].mxu1 }
 0x2a8   :  { %v925_v23 = vadd.f32 %v4015_v59, %v5341_v38  ;;  %v803_v60 = vpop.f32.mrb[19].mxu0  ;;  %v919_v61 = vpop.f32.mrb[19].mxu1 }
 0x2a9   :  { %v920_v63 = vadd.f32 %v5341_v38, %v919_v61  ;;  %v5445_v61 = vld [vmem:[%s5846_s12] ss:$0 sm:$0xff]  ;;  %s4871_s12 = smov 64  }
 0x2aa   :  { %v958_v62 = vld [vmem:[#allocation4 + $0x8] sm:$0xff]  ;;  %951 = vst.msk [vmem:[#allocation4 + $0x18] sm:$0xff] %vm568_vm1, %v925_v23  ;;  %v4870_v23 = vmov 0.0  }
 0x2ab   :  { %v966_v0 = vadd.f32 %v958_v62, %v793_v55  ;;  %950 = vst.msk [vmem:[#allocation4 + $0x10] sm:$0xff] %vm568_vm1, %v920_v63  ;;  %v982_v21 = vld [vmem:[#allocation4] sm:$0xff]  ;;  %v1229_v55 = vld [vmem:[%s5898_s4 + $0x18] sm:$0xff] }
 0x2ac   :  { %v5418_v57 = vpack.c.bf16 %v1229_v55, %v1228_v54 }
 0x2ad   :  { %974 = vst.msk [vmem:[#allocation4 + $0x8] sm:$0xff] %vm568_vm1, %v966_v0 }
 0x2af   :  { %v3998_v1 = vpop.f32.mrb[20].mxu0  ;;  %v4018_v2 = vpop.f32.mrb[20].mxu1 }
 0x2b0   :  { %v935_v3 = vadd.f32 %v4018_v2, %v5341_v38  ;;  %v813_v4 = vpop.f32.mrb[21].mxu0  ;;  %v929_v5 = vpop.f32.mrb[21].mxu1 }
 0x2b1   :  { %v960_v6 = vld [vmem:[#allocation4 + $0x18] sm:$0xff]  ;;  %v930_v7 = vadd.f32 %v5341_v38, %v929_v5 }
 0x2b2   :  { %v968_v8 = vadd.f32 %v960_v6, %v803_v60  ;;  %v959_v9 = vld [vmem:[#allocation4 + $0x10] sm:$0xff]  ;;  %953 = vst.msk [vmem:[#allocation4 + $0x28] sm:$0xff] %vm568_vm1, %v935_v3  ;;  %v3666_v60 = vld [vmem:[#allocation16] ss:$0 sm:$0xff] }
 0x2b3   :  { %v967_v10 = vadd.f32 %v3992_v52, %v959_v9  ;;  %952 = vst.msk [vmem:[#allocation4 + $0x20] sm:$0xff] %vm568_vm1, %v930_v7  ;;  %v5405_v52 = vpack.c.bf16 %v1227_v45, %v1226_v44 }
 0x2b4   :  { %976 = vst.msk [vmem:[#allocation4 + $0x18] sm:$0xff] %vm568_vm1, %v968_v8  ;;  %v983_v19 = vld [vmem:[#allocation4 + $0x8] sm:$0xff] }
 0x2b5   :  { %975 = vst.msk [vmem:[#allocation4 + $0x10] sm:$0xff] %vm568_vm1, %v967_v10  ;;  %v4001_v12 = vpop.f32.mrb[22].mxu0  ;;  %v4021_v13 = vpop.f32.mrb[22].mxu1  ;;  %v985_v25 = vmax.f32 %v982_v21, %v983_v19 }
 0x2b6   :  { %v973_v14 = vadd.f32 %v4001_v12, %v965_v11  ;;  %v945_v15 = vadd.f32 %v4021_v13, %v5341_v38  ;;  %v823_v16 = vpop.f32.mrb[23].mxu0  ;;  %v939_v17 = vpop.f32.mrb[23].mxu1 }
 0x2b7   :  { %v940_v18 = vadd.f32 %v5341_v38, %v939_v17 }
 0x2b8   :  { %981 = vst.msk [vmem:[#allocation4 + $0x40] sm:$0xff] %vm568_vm1, %v973_v14  ;;  %955 = vst.msk [vmem:[#allocation4 + $0x38] sm:$0xff] %vm568_vm1, %v945_v15 }
 0x2b9   :  { %v962_v20 = vld [vmem:[#allocation4 + $0x28] sm:$0xff]  ;;  %954 = vst.msk [vmem:[#allocation4 + $0x30] sm:$0xff] %vm568_vm1, %v940_v18 }
 0x2ba   :  { %v970_v22 = vadd.f32 %v962_v20, %v813_v4  ;;  %v961_v24 = vld [vmem:[#allocation4 + $0x20] sm:$0xff] }
 0x2bb   :  { %v969_v26 = vadd.f32 %v3995_v58, %v961_v24  ;;  %v990_v31 = vld [vmem:[#allocation4 + $0x18] sm:$0xff] }
 0x2bc   :  { %v989_v27 = vld [vmem:[#allocation4 + $0x10] sm:$0xff]  ;;  %978 = vst.msk [vmem:[#allocation4 + $0x28] sm:$0xff] %vm568_vm1, %v970_v22 }
 0x2bd   :  { %977 = vst.msk [vmem:[#allocation4 + $0x20] sm:$0xff] %vm568_vm1, %v969_v26  ;;  %v986_v28 = vmax.f32 %v985_v25, %v989_v27  ;;  %v992_v35 = vmax.f32 %v989_v27, %v990_v31 }
 0x2bf   :  { %v964_v29 = vld [vmem:[#allocation4 + $0x38] sm:$0xff]  ;;  %v987_v30 = vmax.f32 %v986_v28, 0.0  ;;  %v1005_v48 = vld [vmem:[#allocation4 + $0x40] sm:$0xff] }
 0x2c0   :  { %v972_v32 = vadd.f32 %v964_v29, %v823_v16  ;;  %v963_v33 = vld [vmem:[#allocation4 + $0x30] sm:$0xff] }
 0x2c1   :  { %v971_v34 = vadd.f32 %v3998_v1, %v963_v33  ;;  %988 = vst.msk [vmem:[#allocation5] sm:$0xff] %vm568_vm1, %v987_v30 }
 0x2c2   :  { %980 = vst.msk [vmem:[#allocation4 + $0x38] sm:$0xff] %vm568_vm1, %v972_v32 }
 0x2c3   :  { %979 = vst.msk [vmem:[#allocation4 + $0x30] sm:$0xff] %vm568_vm1, %v971_v34  ;;  %v997_v38 = vld [vmem:[#allocation4 + $0x28] sm:$0xff] }
 0x2c4   :  { %v991_v36 = vld [vmem:[#allocation4 + $0x20] sm:$0xff] }
 0x2c5   :  { %v993_v37 = vmax.f32 %v992_v35, %v991_v36  ;;  %v999_v42 = vmax.f32 %v991_v36, %v997_v38 }
 0x2c7   :  { %v994_v39 = vmax.f32 %v993_v37, 0.0 }
 0x2c8   :  { %v1010_v40 = vld [vmem:[#allocation5] sm:$0xff] }
 0x2c9   :  { %995 = vst.msk [vmem:[#allocation5 + $0x8] sm:$0xff] %vm568_vm1, %v994_v39  ;;  %v1004_v41 = vld [vmem:[#allocation4 + $0x38] sm:$0xff]  ;;  %4030 = vmatprep.mubr.msk.f32.mxu0 %vm568_vm1, %v1010_v40  ;;  %4044 = vmatprep.mubr.msk.f32.mxu1 %vm568_vm1, %v1010_v40 }
 0x2ca   :  { %v1003_v43 = vld [vmem:[#allocation4 + $0x30] sm:$0xff] }
 0x2cb   :  { %v1000_v46 = vmax.f32 %v999_v42, %v1003_v43  ;;  %v1006_v47 = vmax.f32 %v1003_v43, %v1004_v41 }
 0x2cd   :  { %v1001_v49 = vmax.f32 %v1000_v46, 0.0  ;;  %v1007_v50 = vmax.f32 %v1006_v47, %v1005_v48  ;;  %v1649_v47 = vld [vmem:[%s5899_s21] sm:$0xff]  ;;  %v1650_v48 = vld [vmem:[%s5899_s21 + $0x8] sm:$0xff] }
 0x2cf   :  { %1002 = vst.msk [vmem:[#allocation5 + $0x10] sm:$0xff] %vm568_vm1, %v1001_v49  ;;  %v1008_v53 = vmax.f32 %v1007_v50, 0.0  ;;  %v5484_v49 = vpack.c.bf16 %v1650_v48, %v1649_v47  ;;  %v1651_v50 = vld [vmem:[%s5899_s21 + $0x10] sm:$0xff] }
 0x2d0   :  { %v1011_v56 = vld [vmem:[#allocation5 + $0x8] sm:$0xff] }
 0x2d1   :  { %4031 = vmatmul.mubr.msk.f32.vlgmr.msra.gmra.mrb[24].mxu0 %vm568_vm1, %v1011_v56  ;;  %4045 = vmatmul.mubr.msk.f32.vlgmr.msra.gmra.mrb[24].mxu1 %vm568_vm1, %v1011_v56  ;;  %1009 = vst.msk [vmem:[#allocation5 + $0x18] sm:$0xff] %vm568_vm1, %v1008_v53 }
 0x2d2   :  { %4346 = vmatpush3.bf16.msra.mxu0 %v5405_v52  ;;  %4352 = vmatpush3.bf16.msra.mxu1 %v5405_v52 }
 0x2d3   :  { %4347 = vmatprep.subr.bf16.mxu0 %v4868_v51  ;;  %4353 = vmatprep.subr.bf16.mxu1 %v4868_v51 }
 0x2d6   :  { %v1012_v58 = vld [vmem:[#allocation5 + $0x10] sm:$0xff]  ;;  %4349 = vmatpush3.bf16.msra.mxu0 %v5418_v57  ;;  %4355 = vmatpush3.bf16.msra.mxu1 %v5418_v57 }
 0x2d7   :  { %4033 = vmatprep.mubr.msk.f32.mxu0 %vm568_vm1, %v1012_v58  ;;  %4047 = vmatprep.mubr.msk.f32.mxu1 %vm568_vm1, %v1012_v58 }
 0x2d8   :  { %v1013_v59 = vld [vmem:[#allocation5 + $0x18] sm:$0xff]  ;;  %4356 = vmatprep.subr.bf16.mxu0 %v4868_v51  ;;  %4362 = vmatprep.subr.bf16.mxu1 %v4868_v51 }
 0x2d9   :  { %4034 = vmatmul.mubr.msk.f32.gmra.mrb[26].mxu0 %vm568_vm1, %v1013_v59  ;;  %4048 = vmatmul.mubr.msk.f32.gmra.mrb[26].mxu1 %vm568_vm1, %v1013_v59 }
 0x2da   :  { %4058 = vmatprep.mubr.msk.f32.mxu0 %vm4869_vm2, %v4870_v23  ;;  %4069 = vmatprep.mubr.msk.f32.mxu1 %vm4869_vm2, %v4870_v23 }
 0x2dd   :  { %4059 = vmatmul.mubr.f32.vlgmr.msra.gmra.mrb[28].mxu0 %v4870_v23 }
 0x2de   :  { %4358 = vmatpush3.bf16.msra.mxu0 %v5405_v52  ;;  %4080 = vmatprep.mubr.msk.f32.mxu0 %vm4869_vm2, %v4870_v23 }
 0x2df   :  { %4359 = vmatprep.subr.bf16.mxu0 %v4868_v51 }
 0x2e2   :  { %4361 = vmatpush3.bf16.msra.mxu0 %v5418_v57 }
 0x2e3   :  { %4368 = vmatprep.subr.bf16.mxu0 %v4868_v51 }
 0x3a4   :  { %v4032_v62 = vpop.f32.mrb[24].mxu0  ;;  %v4046_v63 = vpop.f32.mrb[24].mxu1 }
 0x3a5   :  { %v1109_v0 = vadd.f32 %v4032_v62, %v3666_v60  ;;  %v5448_v1 = vadd.f32 %v4046_v63, %v5445_v61  ;;  %v1103_v2 = vpop.f32.mrb[25].mxu0  ;;  %v1203_v3 = vpop.f32.mrb[25].mxu1 }
 0x3a6   :  { %v5451_v4 = vadd.f32 %v5445_v61, %v1203_v3  ;;  %v1104_v12 = vadd.f32 %v3666_v60, %v1103_v2 }
 0x3ac   :  { %v4035_v5 = vpop.f32.mrb[26].mxu0  ;;  %v5453_v6 = vpop.f32.mrb[26].mxu1 }
 0x3ad   :  { %v5455_v7 = vadd.f32 %v4035_v5, %v3666_v60  ;;  %v1113_v8 = vpop.f32.mrb[27].mxu0  ;;  %v1213_v9 = vpop.f32.mrb[27].mxu1  ;;  %v1219_v58 = vadd.f32 %v5453_v6, %v5445_v61 }
 0x3ae   :  { %v5457_v10 = vadd.f32 %v3666_v60, %v1113_v8  ;;  %v5460_v11 = vadd.f32 %v5445_v61, %v1213_v9 }
 0x3b0   :  { %v1300_v13 = vpop.f32.mrb[28].mxu0 }
 0x3b1   :  { %v1304_v14 = vadd.f32 %v1300_v13, %v1104_v12  ;;  %v4060_v15 = vpop.f32.mrb[29].mxu0 }
 0x3b3   :  { %4511 = vtanh.f32 %v1304_v14  ;;  %v3676_v17 = vmul.f32 -1.442695, %v1304_v14 }
 0x3b5   :  { %4513 = vpow2.f32 %v3676_v17 }
 0x3bd   :  { %v4512_v16 = vpop.eup %4511 }
 0x3be   :  { %1314 = vrot.lane.b32.xlu0 %v4512_v16, %s4871_s12 }
 0x3bf   :  { %v4514_v18 = vpop.eup %4513 }
 0x3c0   :  { %v1308_v19 = vadd.f32 1.0, %v4514_v18 }
 0x3c2   :  { %4515 = vrcp.f32 %v1308_v19 }
 0x3cc   :  { %v4516_v20 = vpop.eup %4515 }
 0x3cd   :  { %v1312_v24 = vmul.f32 0.0, %v4516_v20 }
 0x430   :  { %v1315_v21 = vpop.permute.xlu0 %1314 }
 0x431   :  { %v1317_v22 = vmul.f32 %v4516_v20, %v1315_v21 }
 0x433   :  { %1319 = vrot.lane.b32.xlu0 %v1317_v22, %s4872_s0 }
 0x4a5   :  { %v1320_v25 = vpop.permute.xlu0 %1319 }
 0x4a6   :  { %v1322_v26 = vadd.f32 %v1320_v25, %v1312_v24 }
 0x4a8   :  { %4517 = vtanh.f32 %v1322_v26 }
 0x4b2   :  { %v4518_v27 = vpop.eup %4517 }
 0x4b3   :  { %1325 = vrot.lane.b32.xlu1 %v4518_v27, %s4871_s12 }
 0x525   :  { %v1326_v28 = vpop.permute.xlu1 %1325 }
 0x526   :  { %v1328_v29 = vmul.f32 %v4516_v20, %v1326_v28 }
 0x528   :  { %1330 = vrot.lane.b32.xlu1 %v1328_v29, %s4872_s0 }
 0x59a   :  { %v1331_v30 = vpop.permute.xlu1 %1330 }
 0x59b   :  { %1333 = vst.msk [vmem:[#allocation8] sm:$0xff] %vm568_vm1, %v1331_v30  ;;  %4070 = vmatmul.mubr.msk.f32.vlgmr.msra.gmra.mrb[28].mxu1 %vm568_vm1, %v1331_v30 }
 0x59c   :  { %4364 = vmatpush3.bf16.msra.mxu1 %v5405_v52  ;;  %4091 = vmatprep.mubr.msk.f32.mxu1 %vm4869_vm2, %v4870_v23  ;;  %v1652_v52 = vld [vmem:[%s5899_s21 + $0x18] sm:$0xff] }
 0x59d   :  { %4365 = vmatprep.subr.bf16.mxu1 %v4868_v51  ;;  %v5495_v54 = vpack.c.bf16 %v1652_v52, %v1651_v50 }
 0x5a0   :  { %4367 = vmatpush3.bf16.msra.mxu1 %v5418_v57 }
 0x5a1   :  { %4374 = vmatprep.subr.bf16.mxu1 %v4868_v51 }
 0x66e   :  { %v1404_v31 = vpop.f32.mrb[28].mxu1 }
 0x66f   :  { %v1408_v32 = vadd.f32 %v1404_v31, %v1109_v0  ;;  %v4071_v33 = vpop.f32.mrb[29].mxu1 }
 0x671   :  { %4519 = vtanh.f32 %v1408_v32  ;;  %v3678_v35 = vmul.f32 -1.442695, %v1408_v32 }
 0x673   :  { %4521 = vpow2.f32 %v3678_v35 }
 0x67b   :  { %v4520_v34 = vpop.eup %4519 }
 0x67c   :  { %1418 = vrot.lane.b32.xlu0 %v4520_v34, %s4871_s12 }
 0x67d   :  { %v4522_v36 = vpop.eup %4521 }
 0x67e   :  { %v1412_v37 = vadd.f32 1.0, %v4522_v36 }
 0x680   :  { %4523 = vrcp.f32 %v1412_v37 }
 0x68a   :  { %v4524_v38 = vpop.eup %4523 }
 0x68b   :  { %v1416_v41 = vmul.f32 %v4524_v38, %v1322_v26 }
 0x6ee   :  { %v1419_v39 = vpop.permute.xlu0 %1418 }
 0x6ef   :  { %v1421_v40 = vmul.f32 %v4524_v38, %v1419_v39 }
 0x6f1   :  { %1423 = vrot.lane.b32.xlu1 %v1421_v40, %s4872_s0 }
 0x763   :  { %v1424_v42 = vpop.permute.xlu1 %1423 }
 0x764   :  { %v1426_v43 = vadd.f32 %v1424_v42, %v1416_v41 }
 0x766   :  { %4525 = vtanh.f32 %v1426_v43 }
 0x770   :  { %v4526_v44 = vpop.eup %4525 }
 0x771   :  { %1429 = vrot.lane.b32.xlu0 %v4526_v44, %s4871_s12 }
 0x7e3   :  { %v1430_v45 = vpop.permute.xlu0 %1429 }
 0x7e4   :  { %v1432_v46 = vmul.f32 %v4524_v38, %v1430_v45 }
 0x7e6   :  { %1434 = vrot.lane.b32.xlu1 %v1432_v46, %s4872_s0 }
 0x858   :  { %v1435_v53 = vpop.permute.xlu1 %1434 }
 0x859   :  { %1438 = vst.msk [vmem:[#allocation8 + $0x8] sm:$0xff] %vm568_vm1, %v1435_v53  ;;  %4081 = vmatmul.mubr.msk.f32.vlgmr.msra.gmra.mrb[30].mxu0 %vm568_vm1, %v1435_v53 }
 0x85a   :  { %4370 = vmatpush3.bf16.msra.mxu0 %v5484_v49  ;;  %4102 = vmatprep.mubr.msk.f32.mxu0 %vm4869_vm2, %v4870_v23 }
 0x85b   :  { %4371 = vmatprep.subr.bf16.mxu0 %v4868_v51 }
 0x85e   :  { %4373 = vmatpush3.bf16.msra.mxu0 %v5495_v54 }
 0x85f   :  { %4380 = vmatprep.subr.bf16.mxu0 %v4868_v51 }
 0x861   :  { %4103 = vmatmul.mubr.f32.vlgmr.msra.gmra.mrb[32].mxu0 %v4870_v23 }
 0x862   :  { %4382 = vmatpush3.bf16.msra.mxu0 %v5484_v49  ;;  %4124 = vmatprep.mubr.msk.f32.mxu0 %vm4869_vm2, %v4870_v23 }
 0x863   :  { %4383 = vmatprep.subr.bf16.mxu0 %v4868_v51 }
 0x866   :  { %4385 = vmatpush3.bf16.msra.mxu0 %v5495_v54 }
 0x92c   :  { %v1509_v55 = vpop.f32.mrb[30].mxu0 }
 0x92d   :  { %v1513_v56 = vadd.f32 %v1509_v55, %v5457_v10  ;;  %v4082_v57 = vpop.f32.mrb[31].mxu0 }
 0x92f   :  { %4527 = vtanh.f32 %v1513_v56  ;;  %v3680_v2 = vmul.f32 -1.442695, %v1513_v56 }
 0x934   :  { %v1721_v59 = vpop.f32.mrb[32].mxu0 }
 0x935   :  { %v1725_v60 = vadd.f32 %v1721_v59, %v1219_v58  ;;  %v4104_v62 = vpop.f32.mrb[33].mxu0 }
 0x937   :  { %4529 = vtanh.f32 %v1725_v60  ;;  %v3683_v3 = vmul.f32 -1.442695, %v1725_v60 }
 0x938   :  { %4531 = vpow2.f32 %v3680_v2 }
 0x939   :  { %v4528_v63 = vpop.eup %4527  ;;  %4533 = vpow2.f32 %v3683_v3 }
 0x93a   :  { %1523 = vrot.lane.b32.xlu0 %v4528_v63, %s4871_s12 }
 0x941   :  { %v4530_v0 = vpop.eup %4529 }
 0x942   :  { %1735 = vrot.lane.b32.xlu1 %v4530_v0, %s4871_s12  ;;  %v4532_v5 = vpop.eup %4531 }
 0x943   :  { %v1517_v8 = vadd.f32 1.0, %v4532_v5  ;;  %v4534_v9 = vpop.eup %4533 }
 0x944   :  { %v1729_v10 = vadd.f32 1.0, %v4534_v9 }
 0x945   :  { %4535 = vrcp.f32 %v1517_v8 }
 0x946   :  { %4537 = vrcp.f32 %v1729_v10 }
 0x94f   :  { %v4536_v61 = vpop.eup %4535 }
 0x950   :  { %v4538_v13 = vpop.eup %4537  ;;  %v1521_v16 = vmul.f32 %v4536_v61, %v1426_v43 }
 0x951   :  { %v1733_v19 = vmul.f32 0.0, %v4538_v13 }
 0x9ac   :  { %v1524_v6 = vpop.permute.xlu0 %1523 }
 0x9ad   :  { %v1526_v12 = vmul.f32 %v4536_v61, %v1524_v6 }
 0x9af   :  { %1528 = vrot.lane.b32.xlu0 %v1526_v12, %s4872_s0 }
 0x9b4   :  { %v1736_v14 = vpop.permute.xlu1 %1735 }
 0x9b5   :  { %v1738_v15 = vmul.f32 %v4538_v13, %v1736_v14 }
 0x9b7   :  { %1740 = vrot.lane.b32.xlu1 %v1738_v15, %s4872_s0 }
 0xa21   :  { %v1529_v17 = vpop.permute.xlu0 %1528 }
 0xa22   :  { %v5515_v18 = vadd.f32 %v1529_v17, %v1521_v16 }
 0xa24   :  { %4539 = vtanh.f32 %v5515_v18 }
 0xa29   :  { %v1741_v20 = vpop.permute.xlu1 %1740 }
 0xa2a   :  { %v1743_v21 = vadd.f32 %v1741_v20, %v1733_v19 }
 0xa2c   :  { %4541 = vtanh.f32 %v1743_v21 }
 0xa2e   :  { %v4540_v22 = vpop.eup %4539 }
 0xa2f   :  { %1534 = vrot.lane.b32.xlu0 %v4540_v22, %s4871_s12 }
 0xa36   :  { %v4542_v24 = vpop.eup %4541 }
 0xa37   :  { %1746 = vrot.lane.b32.xlu1 %v4542_v24, %s4871_s12 }
 0xaa1   :  { %v1535_v25 = vpop.permute.xlu0 %1534 }
 0xaa2   :  { %v1537_v26 = vmul.f32 %v4536_v61, %v1535_v25 }
 0xaa4   :  { %1539 = vrot.lane.b32.xlu0 %v1537_v26, %s4872_s0 }
 0xaa9   :  { %v1747_v27 = vpop.permute.xlu1 %1746 }
 0xaaa   :  { %v1749_v28 = vmul.f32 %v4538_v13, %v1747_v27 }
 0xaac   :  { %1751 = vrot.lane.b32.xlu1 %v1749_v28, %s4872_s0 }
 0xb16   :  { %v1540_v29 = vpop.permute.xlu0 %1539 }
 0xb17   :  { %1543 = vst.msk [vmem:[#allocation8 + $0x10] sm:$0xff] %vm568_vm1, %v1540_v29  ;;  %4092 = vmatmul.mubr.msk.f32.vlgmr.msra.gmra.mrb[30].mxu1 %vm568_vm1, %v1540_v29 }
 0xb18   :  { %4376 = vmatpush3.bf16.msra.mxu1 %v5484_v49  ;;  %4113 = vmatprep.mubr.msk.f32.mxu1 %vm4869_vm2, %v4870_v23 }
 0xb19   :  { %4377 = vmatprep.subr.bf16.mxu1 %v4868_v51 }
 0xb1c   :  { %4379 = vmatpush3.bf16.msra.mxu1 %v5495_v54 }
 0xb1d   :  { %4386 = vmatprep.subr.bf16.mxu1 %v4868_v51 }
 0xb1e   :  { %v1752_v30 = vpop.permute.xlu1 %1751 }
 0xb1f   :  { %1755 = vst.msk [vmem:[#allocation9 + $0x18] sm:$0xff] %vm568_vm1, %v1752_v30  ;;  %4114 = vmatmul.mubr.msk.f32.vlgmr.msra.gmra.mrb[32].mxu1 %vm568_vm1, %v1752_v30 }
 0xb20   :  { %4388 = vmatpush3.bf16.msra.mxu1 %v5484_v49  ;;  %4135 = vmatprep.mubr.msk.f32.mxu1 %vm4869_vm2, %v4870_v23 }
 0xb21   :  { %4389 = vmatprep.subr.bf16.mxu1 %v4868_v51 }
 0xb24   :  { %4391 = vmatpush3.bf16.msra.mxu1 %v5495_v54 }
 0xbea   :  { %v1614_v31 = vpop.f32.mrb[30].mxu1 }
 0xbeb   :  { %v1618_v32 = vadd.f32 %v1614_v31, %v5455_v7  ;;  %v4093_v33 = vpop.f32.mrb[31].mxu1 }
 0xbed   :  { %v3682_v5 = vmul.f32 -1.442695, %v1618_v32 }
 0xbf2   :  { %v1826_v34 = vpop.f32.mrb[32].mxu1 }
 0xbf3   :  { %v1830_v35 = vadd.f32 %v1826_v34, %v5460_v11  ;;  %v4115_v36 = vpop.f32.mrb[33].mxu1  ;;  %v2081_v34 = vld [vmem:[%s5848_s14] sm:$0xff] }
 0xbf4   :  { %v2298_v36 = vld [vmem:[#allocation21] sm:$0xff] }
 0xbf5   :  { %4543 = vtanh.f32 %v1830_v35  ;;  %v3685_v38 = vmul.f32 -1.442695, %v1830_v35  ;;  %v2082_v35 = vld [vmem:[%s5848_s14 + $0x8] sm:$0xff] }
 0xbf7   :  { %4545 = vpow2.f32 %v3685_v38  ;;  %v2299_v38 = vld [vmem:[#allocation21 + $0x8] sm:$0xff] }
 0xbff   :  { %v4544_v37 = vpop.eup %4543 }
 0xc00   :  { %1840 = vrot.lane.b32.xlu0 %v4544_v37, %s4871_s12  ;;  %v4392_v37 = vpack.c.bf16 %v2082_v35, %v2081_v34 }
 0xc01   :  { %v4546_v39 = vpop.eup %4545 }
 0xc02   :  { %v1834_v40 = vadd.f32 1.0, %v4546_v39  ;;  %v4408_v39 = vpack.c.bf16 %v2299_v38, %v2298_v36  ;;  %4393 = vmatprep.subr.bf16.mxu0 %v4392_v37 }
 0xc04   :  { %4547 = vrcp.f32 %v1834_v40  ;;  %v2083_v40 = vld [vmem:[%s5848_s14 + $0x10] sm:$0xff]  ;;  %4409 = vmatprep.subr.bf16.mxu1 %v4408_v39 }
 0xc0e   :  { %v4548_v41 = vpop.eup %4547 }
 0xc0f   :  { %v1838_v7 = vmul.f32 %v4548_v41, %v1743_v21 }
 0xc72   :  { %v1841_v42 = vpop.permute.xlu0 %1840 }
 0xc73   :  { %v1843_v43 = vmul.f32 %v4548_v41, %v1841_v42  ;;  %v2300_v42 = vld [vmem:[#allocation21 + $0x10] sm:$0xff] }
 0xc75   :  { %1845 = vrot.lane.b32.xlu1 %v1843_v43, %s4872_s0 }
 0xce7   :  { %v1846_v44 = vpop.permute.xlu1 %1845 }
 0xce8   :  { %v1848_v45 = vadd.f32 %v1846_v44, %v1838_v7  ;;  %v2301_v7 = vld [vmem:[#allocation21 + $0x18] sm:$0xff] }
 0xce9   :  { %v4412_v44 = vpack.c.bf16 %v2301_v7, %v2300_v42 }
 0xcea   :  { %4549 = vtanh.f32 %v1848_v45 }
 0xcf4   :  { %v4550_v11 = vpop.eup %4549 }
 0xcf5   :  { %1851 = vrot.lane.b32.xlu0 %v4550_v11, %s4871_s12  ;;  %v2078_v11 = vld [vmem:[%s5847_s13 + $0x8] sm:$0xff] }
 0xd67   :  { %v1852_v46 = vpop.permute.xlu0 %1851 }
 0xd68   :  { %v1854_v47 = vmul.f32 %v4548_v41, %v1852_v46  ;;  %v2084_v41 = vld [vmem:[%s5848_s14 + $0x18] sm:$0xff] }
 0xd69   :  { %v4396_v43 = vpack.c.bf16 %v2084_v41, %v2083_v40  ;;  %v2294_v46 = vld [vmem:[#allocation19] sm:$0xff] }
 0xd6a   :  { %1856 = vrot.lane.b32.xlu1 %v1854_v47, %s4872_s0 }
 0xddc   :  { %v1857_v48 = vpop.permute.xlu1 %1856 }
 0xddd   :  { %1860 = vst.msk [vmem:[#allocation9 + $0x10] sm:$0xff] %vm568_vm1, %v1857_v48  ;;  %4125 = vmatmul.mubr.msk.f32.vlgmr.msra.gmra.mrb[34].mxu0 %vm568_vm1, %v1857_v48  ;;  %v2295_v48 = vld [vmem:[#allocation19 + $0x8] sm:$0xff] }
 0xdde   :  { %4395 = vmatpush3.bf16.msra.mxu0 %v4392_v37 }
 0xddf   :  { %4397 = vmatprep.subr.bf16.mxu0 %v4396_v43 }
 0xde2   :  { %4399 = vmatpush3.bf16.msra.mxu0 %v4396_v43 }
 0xeb0   :  { %v1931_v49 = vpop.f32.mrb[34].mxu0 }
 0xeb1   :  { %v1935_v50 = vadd.f32 %v1931_v49, %v5448_v1  ;;  %v4126_v52 = vpop.f32.mrb[35].mxu0  ;;  %v4416_v49 = vpack.c.bf16 %v2295_v48, %v2294_v46 }
 0xeb3   :  { %4551 = vtanh.f32 %v1935_v50  ;;  %v3687_v54 = vmul.f32 -1.442695, %v1935_v50 }
 0xeb5   :  { %4553 = vpow2.f32 %v3687_v54  ;;  %v2079_v54 = vld [vmem:[%s5847_s13 + $0x10] sm:$0xff] }
 0xebd   :  { %v4552_v53 = vpop.eup %4551 }
 0xebe   :  { %1945 = vrot.lane.b32.xlu0 %v4552_v53, %s4871_s12 }
 0xebf   :  { %v4554_v55 = vpop.eup %4553 }
 0xec0   :  { %v1939_v56 = vadd.f32 1.0, %v4554_v55  ;;  %v2080_v55 = vld [vmem:[%s5847_s13 + $0x18] sm:$0xff] }
 0xec2   :  { %4555 = vrcp.f32 %v1939_v56  ;;  %v2296_v56 = vld [vmem:[#allocation19 + $0x10] sm:$0xff] }
 0xecc   :  { %v4556_v57 = vpop.eup %4555 }
 0xecd   :  { %v1943_v60 = vmul.f32 %v4556_v57, %v1848_v45  ;;  %v2077_v45 = vld [vmem:[%s5847_s13] sm:$0xff] }
 0xece   :  { %v4400_v47 = vpack.c.bf16 %v2078_v11, %v2077_v45 }
 0xed0   :  { %4401 = vmatprep.subr.bf16.mxu0 %v4400_v47 }
 0xf30   :  { %v1946_v58 = vpop.permute.xlu0 %1945 }
 0xf31   :  { %v1948_v59 = vmul.f32 %v4556_v57, %v1946_v58 }
 0xf33   :  { %1950 = vrot.lane.b32.xlu1 %v1948_v59, %s4872_s0 }
 0xfa5   :  { %v1951_v62 = vpop.permute.xlu1 %1950 }
 0xfa6   :  { %v1953_v63 = vadd.f32 %v1951_v62, %v1943_v60  ;;  %v4404_v60 = vpack.c.bf16 %v2080_v55, %v2079_v54 }
 0xfa8   :  { %4557 = vtanh.f32 %v1953_v63 }
 0xfa9   :  { %4559 = vtanh.f32 %v1618_v32 }
 0xfaa   :  { %4561 = vpow2.f32 %v3682_v5 }
 0xfb2   :  { %v4558_v1 = vpop.eup %4557 }
 0xfb3   :  { %1956 = vrot.lane.b32.xlu0 %v4558_v1, %s4871_s12  ;;  %v4560_v3 = vpop.eup %4559  ;;  %v2487_v1 = vld [vmem:[#allocation18] sm:$0xff] }
 0xfb4   :  { %v4562_v8 = vpop.eup %4561 }
 0xfb5   :  { %v1622_v9 = vadd.f32 1.0, %v4562_v8  ;;  %v2489_v8 = vld [vmem:[#allocation18 + $0x10] sm:$0xff] }
 0xfb7   :  { %4563 = vrcp.f32 %v1622_v9  ;;  %v2490_v9 = vld [vmem:[#allocation18 + $0x18] sm:$0xff] }
 0xfc1   :  { %v4564_v61 = vpop.eup %4563 }
 0xfc2   :  { %v1626_v13 = vmul.f32 %v4564_v61, %v5515_v18 }
0x1025   :  { %v1957_v0 = vpop.permute.xlu0 %1956 }
0x1026   :  { %v1959_v2 = vmul.f32 %v4556_v57, %v1957_v0  ;;  %v2297_v57 = vld [vmem:[#allocation19 + $0x18] sm:$0xff]  ;;  %v2488_v0 = vld [vmem:[#allocation18 + $0x8] sm:$0xff] }
0x1027   :  { %v4420_v62 = vpack.c.bf16 %v2297_v57, %v2296_v56  ;;  %v5597_v5 = vpack.c.bf16 %v2488_v0, %v2487_v1  ;;  %v2902_v1 = vld [vmem:[%s5853_s19 + $0x8] sm:$0xff] }
0x1028   :  { %1961 = vrot.lane.b32.xlu1 %v1959_v2, %s4872_s0  ;;  %v2076_v2 = vld [vmem:[#allocation9 + $0x18] sm:$0xff] }
0x102c   :  { %1628 = vrot.lane.b32.xlu1 %v4560_v3, %s4871_s12  ;;  %v2069_v3 = vld [vmem:[#allocation8] sm:$0xff] }
0x109a   :  { %v1962_v10 = vpop.permute.xlu1 %1961 }
0x109b   :  { %1965 = vst.msk [vmem:[#allocation9 + $0x8] sm:$0xff] %vm568_vm1, %v1962_v10  ;;  %4136 = vmatmul.mubr.msk.f32.vlgmr.msra.gmra.mrb[34].mxu1 %vm568_vm1, %v1962_v10  ;;  %v2070_v10 = vld [vmem:[#allocation8 + $0x8] sm:$0xff] }
0x109c   :  { %4411 = vmatpush3.bf16.msra.mxu1 %v4408_v39 }
0x109d   :  { %4413 = vmatprep.subr.bf16.mxu1 %v4412_v44 }
0x109e   :  { %v1629_v6 = vpop.permute.xlu1 %1628 }
0x109f   :  { %v1631_v12 = vmul.f32 %v4564_v61, %v1629_v6  ;;  %v5605_v6 = vpack.c.bf16 %v2490_v9, %v2489_v8 }
0x10a0   :  { %4415 = vmatpush3.bf16.msra.mxu1 %v4412_v44 }
0x10a1   :  { %1633 = vrot.lane.b32.xlu1 %v1631_v12, %s4872_s0  ;;  %4417 = vmatprep.subr.bf16.mxu1 %v4416_v49 }
0x10a2   :  { %v2074_v59 = vld [vmem:[#allocation9 + $0x8] sm:$0xff] }
0x1113   :  { %v1634_v14 = vpop.permute.xlu1 %1633 }
0x1114   :  { %v1636_v15 = vadd.f32 %v1634_v14, %v1626_v13  ;;  %v3698_v13 = vld [vmem:[%s5850_s16] ss:$0 sm:$0xff]  ;;  %v5632_v14 = vld [vmem:[#allocation22] ss:$0 sm:$0xff] }
0x1116   :  { %4565 = vtanh.f32 %v1636_v15 }
0x1120   :  { %v4566_v16 = vpop.eup %4565 }
0x1121   :  { %1639 = vrot.lane.b32.xlu1 %v4566_v16, %s4871_s12 }
0x116e   :  { %v2035_v17 = vpop.f32.mrb[34].mxu1 }
0x116f   :  { %v2039_v19 = vadd.f32 %v2035_v17, %v5451_v4  ;;  %v4137_v20 = vpop.f32.mrb[35].mxu1 }
0x1171   :  { %4567 = vtanh.f32 %v2039_v19  ;;  %v3689_v25 = vmul.f32 -1.442695, %v2039_v19 }
0x1173   :  { %4569 = vpow2.f32 %v3689_v25 }
0x117b   :  { %v4568_v21 = vpop.eup %4567 }
0x117c   :  { %2049 = vrot.lane.b32.xlu0 %v4568_v21, %s4871_s12 }
0x117d   :  { %v4570_v18 = vpop.eup %4569 }
0x117e   :  { %v2043_v26 = vadd.f32 1.0, %v4570_v18 }
0x1180   :  { %4571 = vrcp.f32 %v2043_v26 }
0x118a   :  { %v4572_v27 = vpop.eup %4571 }
0x118b   :  { %v2047_v30 = vmul.f32 %v4572_v27, %v1953_v63  ;;  %v2075_v63 = vld [vmem:[#allocation9 + $0x10] sm:$0xff] }
0x1193   :  { %v1640_v22 = vpop.permute.xlu1 %1639 }
0x1194   :  { %v1642_v24 = vmul.f32 %v4564_v61, %v1640_v22  ;;  %v2071_v61 = vld [vmem:[#allocation8 + $0x10] sm:$0xff] }
0x1196   :  { %1644 = vrot.lane.b32.xlu1 %v1642_v24, %s4872_s0 }
0x11ee   :  { %v2050_v28 = vpop.permute.xlu0 %2049 }
0x11ef   :  { %v2052_v29 = vmul.f32 %v4572_v27, %v2050_v28 }
0x11f1   :  { %2054 = vrot.lane.b32.xlu0 %v2052_v29, %s4872_s0 }
0x1208   :  { %v1645_v4 = vpop.permute.xlu1 %1644 }
0x1209   :  { %1648 = vst.msk [vmem:[#allocation8 + $0x18] sm:$0xff] %vm568_vm1, %v1645_v4 }
0x1210   :  { %v2072_v12 = vld [vmem:[#allocation8 + $0x18] sm:$0xff] }
0x1263   :  { %v2055_v31 = vpop.permute.xlu0 %2054 }
0x1264   :  { %v2057_v32 = vadd.f32 %v2055_v31, %v2047_v30 }
0x1266   :  { %4573 = vtanh.f32 %v2057_v32 }
0x1270   :  { %v4574_v33 = vpop.eup %4573 }
0x1271   :  { %2060 = vrot.lane.b32.xlu0 %v4574_v33, %s4871_s12 }
0x12e3   :  { %v2061_v50 = vpop.permute.xlu0 %2060 }
0x12e4   :  { %v2063_v52 = vmul.f32 %v4572_v27, %v2061_v50 }
0x12e6   :  { %2065 = vrot.lane.b32.xlu0 %v2063_v52, %s4872_s0 }
0x1358   :  { %v2066_v53 = vpop.permute.xlu0 %2065 }
0x1359   :  { %2068 = vst.msk [vmem:[#allocation9] sm:$0xff] %vm568_vm1, %v2066_v53 }
0x1360   :  { %v2073_v58 = vld [vmem:[#allocation9] sm:$0xff] }
0x1361   :  { %4146 = vmatprep.mubr.msk.f32.mxu0 %vm568_vm1, %v2073_v58  ;;  %4174 = vmatprep.mubr.msk.f32.mxu1 %vm568_vm1, %v2073_v58 }
0x1362   :  { %4147 = vmatmul.mubr.msk.f32.vlgmr.msra.gmra.mrb[36].mxu0 %vm568_vm1, %v2074_v59  ;;  %4175 = vmatmul.mubr.msk.f32.vlgmr.msra.gmra.mrb[36].mxu1 %vm568_vm1, %v2074_v59 }
0x1363   :  { %4403 = vmatpush3.bf16.msra.mxu0 %v4400_v47  ;;  %4149 = vmatprep.mubr.msk.f32.mxu0 %vm568_vm1, %v2075_v63 }
0x1364   :  { %4177 = vmatprep.mubr.msk.f32.mxu1 %vm568_vm1, %v2075_v63  ;;  %4419 = vmatpush3.bf16.msra.mxu1 %v4416_v49  ;;  %v2901_v63 = vld [vmem:[%s5853_s19] sm:$0xff] }
0x1365   :  { %4405 = vmatprep.subr.bf16.mxu0 %v4404_v60  ;;  %4421 = vmatprep.subr.bf16.mxu1 %v4420_v62  ;;  %v5671_v0 = vpack.c.bf16 %v2902_v1, %v2901_v63 }
0x1366   :  { %4150 = vmatmul.mubr.msk.f32.gmra.mrb[38].mxu0 %vm568_vm1, %v2076_v2  ;;  %4178 = vmatmul.mubr.msk.f32.gmra.mrb[38].mxu1 %vm568_vm1, %v2076_v2  ;;  %v2903_v2 = vld [vmem:[%s5853_s19 + $0x10] sm:$0xff] }
0x1367   :  { %4407 = vmatpush3.bf16.msra.mxu0 %v4404_v60  ;;  %4160 = vmatprep.mubr.msk.f32.mxu0 %vm568_vm1, %v2069_v3 }
0x1368   :  { %4423 = vmatpush3.bf16.msra.mxu1 %v4420_v62  ;;  %4188 = vmatprep.mubr.msk.f32.mxu1 %vm568_vm1, %v2069_v3  ;;  %v2904_v3 = vld [vmem:[%s5853_s19 + $0x18] sm:$0xff] }
0x1369   :  { %4424 = vmatprep.subr.bf16.mxu0 %v4868_v51  ;;  %4430 = vmatprep.subr.bf16.mxu1 %v4868_v51  ;;  %v5682_v8 = vpack.c.bf16 %v2904_v3, %v2903_v2 }
0x136a   :  { %4161 = vmatmul.mubr.msk.f32.vlgmr.msra.gmra.mrb[36].mxu0 %vm568_vm1, %v2070_v10 }
0x136b   :  { %4189 = vmatmul.mubr.msk.f32.vlgmr.msra.gmra.mrb[36].mxu1 %vm568_vm1, %v2070_v10  ;;  %4426 = vmatpush3.bf16.msra.mxu0 %v5597_v5 }
0x136c   :  { %4163 = vmatprep.mubr.msk.f32.mxu0 %vm568_vm1, %v2071_v61  ;;  %4191 = vmatprep.mubr.msk.f32.mxu1 %vm568_vm1, %v2071_v61 }
0x136d   :  { %4427 = vmatprep.subr.bf16.mxu0 %v4868_v51  ;;  %4432 = vmatpush3.bf16.msra.mxu1 %v5597_v5 }
0x136e   :  { %4164 = vmatmul.mubr.msk.f32.gmra.mrb[38].mxu0 %vm568_vm1, %v2072_v12  ;;  %4433 = vmatprep.subr.bf16.mxu1 %v4868_v51 }
0x136f   :  { %4192 = vmatmul.mubr.msk.f32.gmra.mrb[38].mxu1 %vm568_vm1, %v2072_v12  ;;  %4429 = vmatpush3.bf16.msra.mxu0 %v5605_v6 }
0x1370   :  { %4202 = vmatprep.mubr.msk.f32.mxu0 %vm4869_vm2, %v4870_v23  ;;  %4213 = vmatprep.mubr.msk.f32.mxu1 %vm4869_vm2, %v4870_v23 }
0x1371   :  { %4435 = vmatpush3.bf16.msra.mxu1 %v5605_v6  ;;  %4436 = vmatprep.subr.bf16.mxu0 %v4868_v51 }
0x1372   :  { %4203 = vmatmul.mubr.f32.vlgmr.msra.gmra.mrb[40].mxu0 %v4870_v23  ;;  %4442 = vmatprep.subr.bf16.mxu1 %v4868_v51 }
0x1373   :  { %4438 = vmatpush3.bf16.msra.mxu0 %v5597_v5  ;;  %4224 = vmatprep.mubr.msk.f32.mxu0 %vm4869_vm2, %v4870_v23 }
0x1374   :  { %4439 = vmatprep.subr.bf16.mxu0 %v4868_v51 }
0x1377   :  { %4441 = vmatpush3.bf16.msra.mxu0 %v5605_v6 }
0x1378   :  { %4448 = vmatprep.subr.bf16.mxu0 %v4868_v51 }
0x143d   :  { %v4162_v15 = vpop.f32.mrb[36].mxu0 }
0x143e   :  { %v2287_v16 = vadd.f32 %v4162_v15, %v3698_v13  ;;  %v4190_v17 = vpop.f32.mrb[36].mxu1  ;;  %v2260_v19 = vpop.f32.mrb[37].mxu0 }
0x143f   :  { %v5635_v20 = vadd.f32 %v4190_v17, %v5632_v14  ;;  %v2453_v21 = vpop.f32.mrb[37].mxu1  ;;  %v2286_v29 = vadd.f32 %v3698_v13, %v2260_v19 }
0x1440   :  { %v5638_v22 = vadd.f32 %v5632_v14, %v2453_v21 }
0x1441   :  { %v4165_v24 = vpop.f32.mrb[38].mxu0 }
0x1442   :  { %v5640_v25 = vadd.f32 %v4165_v24, %v3698_v13  ;;  %v5642_v18 = vpop.f32.mrb[38].mxu1  ;;  %v2270_v26 = vpop.f32.mrb[39].mxu0 }
0x1443   :  { %v5644_v27 = vadd.f32 %v3698_v13, %v2270_v26  ;;  %v2463_v28 = vpop.f32.mrb[39].mxu1 }
0x1444   :  { %v5647_v4 = vadd.f32 %v5632_v14, %v2463_v28 }
0x1445   :  { %v2558_v30 = vpop.f32.mrb[40].mxu0 }
0x1446   :  { %v2562_v31 = vadd.f32 %v2558_v30, %v2286_v29  ;;  %v4204_v32 = vpop.f32.mrb[41].mxu0 }
0x1448   :  { %4575 = vtanh.f32 %v2562_v31  ;;  %v3708_v34 = vmul.f32 -1.442695, %v2562_v31 }
0x144a   :  { %4577 = vpow2.f32 %v3708_v34 }
0x1452   :  { %v4576_v33 = vpop.eup %4575 }
0x1453   :  { %2572 = vrot.lane.b32.xlu0 %v4576_v33, %s4871_s12 }
0x1454   :  { %v4578_v35 = vpop.eup %4577 }
0x1455   :  { %v2566_v36 = vadd.f32 1.0, %v4578_v35 }
0x1457   :  { %4579 = vrcp.f32 %v2566_v36 }
0x1461   :  { %v4580_v37 = vpop.eup %4579 }
0x1462   :  { %v2570_v40 = vmul.f32 0.0, %v4580_v37 }
0x14c5   :  { %v2573_v38 = vpop.permute.xlu0 %2572 }
0x14c6   :  { %v2575_v39 = vmul.f32 %v4580_v37, %v2573_v38 }
0x14c8   :  { %2577 = vrot.lane.b32.xlu1 %v2575_v39, %s4872_s0 }
0x153a   :  { %v2578_v41 = vpop.permute.xlu1 %2577 }
0x153b   :  { %v2580_v42 = vadd.f32 %v2578_v41, %v2570_v40 }
0x153d   :  { %4581 = vtanh.f32 %v2580_v42 }
0x1547   :  { %v4582_v43 = vpop.eup %4581 }
0x1548   :  { %2583 = vrot.lane.b32.xlu0 %v4582_v43, %s4871_s12 }
0x15ba   :  { %v2584_v7 = vpop.permute.xlu0 %2583 }
0x15bb   :  { %v2586_v44 = vmul.f32 %v4580_v37, %v2584_v7 }
0x15bd   :  { %2588 = vrot.lane.b32.xlu1 %v2586_v44, %s4872_s0 }
0x162f   :  { %v2589_v45 = vpop.permute.xlu1 %2588 }
0x1630   :  { %2591 = vst.msk [vmem:[#allocation8] sm:$0xff] %vm568_vm1, %v2589_v45  ;;  %4214 = vmatmul.mubr.msk.f32.vlgmr.msra.gmra.mrb[40].mxu1 %vm568_vm1, %v2589_v45 }
0x1631   :  { %4444 = vmatpush3.bf16.msra.mxu1 %v5597_v5  ;;  %4235 = vmatprep.mubr.msk.f32.mxu1 %vm4869_vm2, %v4870_v23 }
0x1632   :  { %4445 = vmatprep.subr.bf16.mxu1 %v4868_v51 }
0x1635   :  { %4447 = vmatpush3.bf16.msra.mxu1 %v5605_v6  ;;  %v2482_v6 = vadd.f32 %v5642_v18, %v5632_v14 }
0x1636   :  { %4454 = vmatprep.subr.bf16.mxu1 %v4868_v51 }
0x1703   :  { %v2661_v11 = vpop.f32.mrb[40].mxu1 }
0x1704   :  { %v2665_v46 = vadd.f32 %v2661_v11, %v2287_v16  ;;  %v4215_v47 = vpop.f32.mrb[41].mxu1 }
0x1706   :  { %4583 = vtanh.f32 %v2665_v46  ;;  %v3710_v49 = vmul.f32 -1.442695, %v2665_v46 }
0x1708   :  { %4585 = vpow2.f32 %v3710_v49 }
0x1710   :  { %v4584_v48 = vpop.eup %4583 }
0x1711   :  { %2675 = vrot.lane.b32.xlu0 %v4584_v48, %s4871_s12 }
0x1712   :  { %v4586_v50 = vpop.eup %4585 }
0x1713   :  { %v2669_v52 = vadd.f32 1.0, %v4586_v50 }
0x1715   :  { %4587 = vrcp.f32 %v2669_v52 }
0x171f   :  { %v4588_v53 = vpop.eup %4587 }
0x1720   :  { %v2673_v56 = vmul.f32 %v4588_v53, %v2580_v42 }
0x1783   :  { %v2676_v54 = vpop.permute.xlu0 %2675 }
0x1784   :  { %v2678_v55 = vmul.f32 %v4588_v53, %v2676_v54 }
0x1786   :  { %2680 = vrot.lane.b32.xlu1 %v2678_v55, %s4872_s0 }
0x17f8   :  { %v2681_v57 = vpop.permute.xlu1 %2680 }
0x17f9   :  { %v2683_v58 = vadd.f32 %v2681_v57, %v2673_v56 }
0x17fb   :  { %4589 = vtanh.f32 %v2683_v58 }
0x1805   :  { %v4590_v59 = vpop.eup %4589 }
0x1806   :  { %2686 = vrot.lane.b32.xlu0 %v4590_v59, %s4871_s12 }
0x1878   :  { %v2687_v60 = vpop.permute.xlu0 %2686 }
0x1879   :  { %v2689_v62 = vmul.f32 %v4588_v53, %v2687_v60 }
0x187b   :  { %2691 = vrot.lane.b32.xlu1 %v2689_v62, %s4872_s0 }
0x18ed   :  { %v2692_v5 = vpop.permute.xlu1 %2691 }
0x18ee   :  { %2694 = vst.msk [vmem:[#allocation8 + $0x8] sm:$0xff] %vm568_vm1, %v2692_v5  ;;  %4225 = vmatmul.mubr.msk.f32.vlgmr.msra.gmra.mrb[42].mxu0 %vm568_vm1, %v2692_v5 }
0x18ef   :  { %4450 = vmatpush3.bf16.msra.mxu0 %v5671_v0  ;;  %4246 = vmatprep.mubr.msk.f32.mxu0 %vm4869_vm2, %v4870_v23 }
0x18f0   :  { %4451 = vmatprep.subr.bf16.mxu0 %v4868_v51 }
0x18f3   :  { %4453 = vmatpush3.bf16.msra.mxu0 %v5682_v8 }
0x18f4   :  { %4460 = vmatprep.subr.bf16.mxu0 %v4868_v51 }
0x18f6   :  { %4247 = vmatmul.mubr.f32.vlgmr.msra.gmra.mrb[44].mxu0 %v4870_v23 }
0x18f7   :  { %4462 = vmatpush3.bf16.msra.mxu0 %v5671_v0  ;;  %4268 = vmatprep.mubr.msk.f32.mxu0 %vm4869_vm2, %v4870_v23 }
0x18f8   :  { %4463 = vmatprep.subr.bf16.mxu0 %v4868_v51 }
0x18fb   :  { %4465 = vmatpush3.bf16.msra.mxu0 %v5682_v8 }
0x18fc   :  { %4472 = vmatprep.subr.bf16.mxu0 %v4868_v51 }
0x19c1   :  { %v2764_v9 = vpop.f32.mrb[42].mxu0 }
0x19c2   :  { %v2768_v10 = vadd.f32 %v2764_v9, %v5644_v27  ;;  %v4226_v61 = vpop.f32.mrb[43].mxu0 }
0x19c4   :  { %4591 = vtanh.f32 %v2768_v10  ;;  %v3712_v19 = vmul.f32 -1.442695, %v2768_v10 }
0x19c9   :  { %v2972_v12 = vpop.f32.mrb[44].mxu0 }
0x19ca   :  { %v2976_v13 = vadd.f32 %v2972_v12, %v2482_v6  ;;  %v4248_v15 = vpop.f32.mrb[45].mxu0 }
0x19cc   :  { %4593 = vtanh.f32 %v2976_v13  ;;  %v3715_v21 = vmul.f32 -1.442695, %v2976_v13 }
0x19cd   :  { %4595 = vpow2.f32 %v3712_v19 }
0x19ce   :  { %v4592_v16 = vpop.eup %4591  ;;  %4597 = vpow2.f32 %v3715_v21 }
0x19cf   :  { %2778 = vrot.lane.b32.xlu0 %v4592_v16, %s4871_s12 }
0x19d6   :  { %v4594_v17 = vpop.eup %4593 }
0x19d7   :  { %2986 = vrot.lane.b32.xlu1 %v4594_v17, %s4871_s12  ;;  %v4596_v24 = vpop.eup %4595 }
0x19d8   :  { %v2772_v26 = vadd.f32 1.0, %v4596_v24  ;;  %v4598_v27 = vpop.eup %4597 }
0x19d9   :  { %v2980_v28 = vadd.f32 1.0, %v4598_v27 }
0x19da   :  { %4599 = vrcp.f32 %v2772_v26 }
0x19db   :  { %4601 = vrcp.f32 %v2980_v28 }
0x19e4   :  { %v4600_v14 = vpop.eup %4599 }
0x19e5   :  { %v4602_v30 = vpop.eup %4601  ;;  %v2776_v33 = vmul.f32 %v4600_v14, %v2683_v58 }
0x19e6   :  { %v2984_v36 = vmul.f32 0.0, %v4602_v30 }
0x1a41   :  { %v2779_v18 = vpop.permute.xlu0 %2778 }
0x1a42   :  { %v2781_v29 = vmul.f32 %v4600_v14, %v2779_v18 }
0x1a44   :  { %2783 = vrot.lane.b32.xlu0 %v2781_v29, %s4872_s0 }
0x1a49   :  { %v2987_v31 = vpop.permute.xlu1 %2986 }
0x1a4a   :  { %v2989_v32 = vmul.f32 %v4602_v30, %v2987_v31 }
0x1a4c   :  { %2991 = vrot.lane.b32.xlu1 %v2989_v32, %s4872_s0 }
0x1ab6   :  { %v2784_v34 = vpop.permute.xlu0 %2783 }
0x1ab7   :  { %v5703_v35 = vadd.f32 %v2784_v34, %v2776_v33 }
0x1ab9   :  { %4603 = vtanh.f32 %v5703_v35 }
0x1abe   :  { %v2992_v37 = vpop.permute.xlu1 %2991 }
0x1abf   :  { %v2994_v38 = vadd.f32 %v2992_v37, %v2984_v36 }
0x1ac1   :  { %4605 = vtanh.f32 %v2994_v38 }
0x1ac3   :  { %v4604_v39 = vpop.eup %4603 }
0x1ac4   :  { %2789 = vrot.lane.b32.xlu0 %v4604_v39, %s4871_s12 }
0x1acb   :  { %v4606_v40 = vpop.eup %4605 }
0x1acc   :  { %2997 = vrot.lane.b32.xlu1 %v4606_v40, %s4871_s12  ;;  %v5752_v40 = vld [vmem:[#allocation8 + $0x8] sm:$0xff] }
0x1b36   :  { %v2790_v41 = vpop.permute.xlu0 %2789 }
0x1b37   :  { %v2792_v42 = vmul.f32 %v4600_v14, %v2790_v41 }
0x1b39   :  { %2794 = vrot.lane.b32.xlu0 %v2792_v42, %s4872_s0 }
0x1b3e   :  { %v2998_v43 = vpop.permute.xlu1 %2997 }
0x1b3f   :  { %v3000_v7 = vmul.f32 %v4602_v30, %v2998_v43 }
0x1b41   :  { %3002 = vrot.lane.b32.xlu1 %v3000_v7, %s4872_s0 }
0x1bab   :  { %v2795_v44 = vpop.permute.xlu0 %2794 }
0x1bac   :  { %2797 = vst.msk [vmem:[#allocation8 + $0x10] sm:$0xff] %vm568_vm1, %v2795_v44  ;;  %4236 = vmatmul.mubr.msk.f32.vlgmr.msra.gmra.mrb[42].mxu1 %vm568_vm1, %v2795_v44 }
0x1bad   :  { %4456 = vmatpush3.bf16.msra.mxu1 %v5671_v0  ;;  %4257 = vmatprep.mubr.msk.f32.mxu1 %vm4869_vm2, %v4870_v23 }
0x1bae   :  { %4457 = vmatprep.subr.bf16.mxu1 %v4868_v51 }
0x1bb1   :  { %4459 = vmatpush3.bf16.msra.mxu1 %v5682_v8 }
0x1bb2   :  { %4466 = vmatprep.subr.bf16.mxu1 %v4868_v51 }
0x1bb3   :  { %v3003_v45 = vpop.permute.xlu1 %3002  ;;  %v5755_v42 = vld [vmem:[#allocation8 + $0x10] sm:$0xff] }
0x1bb4   :  { %3005 = vst.msk [vmem:[#allocation9 + $0x18] sm:$0xff] %vm568_vm1, %v3003_v45  ;;  %4258 = vmatmul.mubr.msk.f32.vlgmr.msra.gmra.mrb[44].mxu1 %vm568_vm1, %v3003_v45 }
0x1bb5   :  { %4468 = vmatpush3.bf16.msra.mxu1 %v5671_v0  ;;  %4279 = vmatprep.mubr.msk.f32.mxu1 %vm4869_vm2, %v4870_v23 }
0x1bb6   :  { %4469 = vmatprep.subr.bf16.mxu1 %v4868_v51 }
0x1bb9   :  { %4471 = vmatpush3.bf16.msra.mxu1 %v5682_v8 }
0x1bba   :  { %4478 = vmatprep.subr.bf16.mxu1 %v4868_v51 }
0x1c7f   :  { %v2867_v11 = vpop.f32.mrb[42].mxu1 }
0x1c80   :  { %v2871_v46 = vadd.f32 %v2867_v11, %v5640_v25  ;;  %v4237_v47 = vpop.f32.mrb[43].mxu1 }
0x1c82   :  { %v3714_v24 = vmul.f32 -1.442695, %v2871_v46 }
0x1c87   :  { %v3075_v48 = vpop.f32.mrb[44].mxu1 }
0x1c88   :  { %v3079_v49 = vadd.f32 %v3075_v48, %v5647_v4  ;;  %v4259_v50 = vpop.f32.mrb[45].mxu1 }
0x1c8a   :  { %4607 = vtanh.f32 %v3079_v49  ;;  %v3717_v53 = vmul.f32 -1.442695, %v3079_v49 }
0x1c8c   :  { %4609 = vpow2.f32 %v3717_v53 }
0x1c94   :  { %v4608_v52 = vpop.eup %4607 }
0x1c95   :  { %3089 = vrot.lane.b32.xlu0 %v4608_v52, %s4871_s12 }
0x1c96   :  { %v4610_v54 = vpop.eup %4609 }
0x1c97   :  { %v3083_v55 = vadd.f32 1.0, %v4610_v54 }
0x1c99   :  { %4611 = vrcp.f32 %v3083_v55 }
0x1ca3   :  { %v4612_v56 = vpop.eup %4611 }
0x1ca4   :  { %v3087_v25 = vmul.f32 %v4612_v56, %v2994_v38 }
0x1d07   :  { %v3090_v57 = vpop.permute.xlu0 %3089 }
0x1d08   :  { %v3092_v58 = vmul.f32 %v4612_v56, %v3090_v57 }
0x1d0a   :  { %3094 = vrot.lane.b32.xlu1 %v3092_v58, %s4872_s0 }
0x1d7c   :  { %v3095_v59 = vpop.permute.xlu1 %3094 }
0x1d7d   :  { %v3097_v60 = vadd.f32 %v3095_v59, %v3087_v25  ;;  %v5768_v59 = vld [vmem:[#allocation8] sm:$0xff] }
0x1d7f   :  { %4613 = vtanh.f32 %v3097_v60 }
0x1d89   :  { %v4614_v4 = vpop.eup %4613 }
0x1d8a   :  { %3100 = vrot.lane.b32.xlu0 %v4614_v4, %s4871_s12 }
0x1dfc   :  { %v3101_v62 = vpop.permute.xlu0 %3100 }
0x1dfd   :  { %v3103_v63 = vmul.f32 %v4612_v56, %v3101_v62  ;;  %v3723_v62 = vld [vmem:[%s5856_s22] ss:$0 sm:$0xff] }
0x1dff   :  { %3105 = vrot.lane.b32.xlu1 %v3103_v63, %s4872_s0 }
0x1e71   :  { %v3106_v1 = vpop.permute.xlu1 %3105 }
0x1e72   :  { %3108 = vst.msk [vmem:[#allocation9 + $0x10] sm:$0xff] %vm568_vm1, %v3106_v1  ;;  %4269 = vmatmul.mubr.msk.f32.vlgmr.msra.gmra.mrb[46].mxu0 %vm568_vm1, %v3106_v1 }
0x1e73   :  { %4290 = vmatprep.mubr.msk.f32.mxu0 %vm4869_vm2, %v4870_v23 }
0x1f45   :  { %v3178_v0 = vpop.f32.mrb[46].mxu0 }
0x1f46   :  { %v3182_v2 = vadd.f32 %v3178_v0, %v5635_v20  ;;  %v4270_v3 = vpop.f32.mrb[47].mxu0  ;;  %v5778_v0 = vld [vmem:[#allocation9 + $0x10] sm:$0xff] }
0x1f47   :  { %v3355_v3 = vmul.f32 %v3723_v62, %v5778_v0 }
0x1f48   :  { %4615 = vtanh.f32 %v3182_v2  ;;  %v3719_v8 = vmul.f32 -1.442695, %v3182_v2 }
0x1f4a   :  { %4617 = vpow2.f32 %v3719_v8 }
0x1f52   :  { %v4616_v5 = vpop.eup %4615 }
0x1f53   :  { %3192 = vrot.lane.b32.xlu0 %v4616_v5, %s4871_s12  ;;  %v3363_v5 = vsel %vm568_vm1, %v3355_v3, 0.0  ;;  %v3450_v3 = vld [vmem:[%s5859_s25 + $0x18] sm:$0xff] }
0x1f54   :  { %v4618_v9 = vpop.eup %4617 }
0x1f55   :  { %v3186_v10 = vadd.f32 1.0, %v4618_v9 }
0x1f57   :  { %4619 = vrcp.f32 %v3186_v10  ;;  %v5786_v10 = vld [vmem:[#allocation9 + $0x18] sm:$0xff] }
0x1f61   :  { %v4620_v61 = vpop.eup %4619 }
0x1f62   :  { %v3190_v13 = vmul.f32 %v4620_v61, %v3097_v60 }
0x1fc5   :  { %v3193_v6 = vpop.permute.xlu0 %3192 }
0x1fc6   :  { %v3195_v12 = vmul.f32 %v4620_v61, %v3193_v6 }
0x1fc8   :  { %3197 = vrot.lane.b32.xlu1 %v3195_v12, %s4872_s0  ;;  %v3356_v12 = vmul.f32 %v3723_v62, %v5786_v10 }
0x203a   :  { %v3198_v15 = vpop.permute.xlu1 %3197 }
0x203b   :  { %v3200_v16 = vadd.f32 %v3198_v15, %v3190_v13  ;;  %v3366_v13 = vsel %vm568_vm1, %v3356_v12, 0.0  ;;  %v4873_v15 = vmov 0  }
0x203c   :  { %4510 = vset.pattern.permute.xlu0 %v4873_v15  ;;  %4509 = vset.pattern.permute.xlu1 %v4873_v15 }
0x203d   :  { %4621 = vtanh.f32 %v3200_v16 }
0x203e   :  { %4623 = vtanh.f32 %v2871_v46 }
0x203f   :  { %4625 = vpow2.f32 %v3714_v24 }
0x2047   :  { %v4622_v20 = vpop.eup %4621 }
0x2048   :  { %3203 = vrot.lane.b32.xlu0 %v4622_v20, %s4871_s12  ;;  %v4624_v21 = vpop.eup %4623 }
0x2049   :  { %v4626_v26 = vpop.eup %4625 }
0x204a   :  { %v2875_v27 = vadd.f32 1.0, %v4626_v26  ;;  %v3724_v26 = vld [vmem:[#allocation10] ss:$0 sm:$0xff] }
0x204c   :  { %4627 = vrcp.f32 %v2875_v27 }
0x2056   :  { %v4628_v14 = vpop.eup %4627 }
0x2057   :  { %v2879_v30 = vmul.f32 %v4628_v14, %v5703_v35  ;;  %v3722_v35 = vld [vmem:[#allocation24] ss:$0 sm:$0xff] }
0x2058   :  { %v3331_v41 = vmul.f32 %v3722_v35, %v5752_v40  ;;  %v3330_v60 = vmul.f32 %v3722_v35, %v5768_v59 }
0x205a   :  { %v3337_v43 = vsel %vm568_vm1, %v3331_v41, 0.0  ;;  %v3334_v63 = vsel %vm568_vm1, %v3330_v60, 0.0 }
0x20ba   :  { %v3204_v17 = vpop.permute.xlu0 %3203 }
0x20bb   :  { %v3206_v19 = vmul.f32 %v4620_v61, %v3204_v17 }
0x20bd   :  { %3208 = vrot.lane.b32.xlu1 %v3206_v19, %s4872_s0 }
0x20c1   :  { %2881 = vrot.lane.b32.xlu1 %v4624_v21, %s4871_s12 }
0x212f   :  { %v3209_v28 = vpop.permute.xlu1 %3208 }
0x2130   :  { %3211 = vst.msk [vmem:[#allocation9 + $0x8] sm:$0xff] %vm568_vm1, %v3209_v28  ;;  %4280 = vmatmul.mubr.msk.f32.vlgmr.msra.gmra.mrb[46].mxu1 %vm568_vm1, %v3209_v28 }
0x2131   :  { %4301 = vmatprep.mubr.msk.f32.mxu1 %vm4869_vm2, %v4870_v23 }
0x2133   :  { %v2882_v18 = vpop.permute.xlu1 %2881 }
0x2134   :  { %v2884_v29 = vmul.f32 %v4628_v14, %v2882_v18 }
0x2136   :  { %2886 = vrot.lane.b32.xlu1 %v2884_v29, %s4872_s0 }
0x2137   :  { %v5771_v4 = vld [vmem:[#allocation9 + $0x8] sm:$0xff] }
0x2138   :  { %v3354_v1 = vmul.f32 %v3723_v62, %v5771_v4 }
0x213a   :  { %v3360_v2 = vsel %vm568_vm1, %v3354_v1, 0.0 }
0x21a8   :  { %v2887_v31 = vpop.permute.xlu1 %2886 }
0x21a9   :  { %v2889_v32 = vadd.f32 %v2887_v31, %v2879_v30 }
0x21ab   :  { %4629 = vtanh.f32 %v2889_v32 }
0x21b5   :  { %v4630_v33 = vpop.eup %4629 }
0x21b6   :  { %2892 = vrot.lane.b32.xlu1 %v4630_v33, %s4871_s12 }
0x2203   :  { %v3281_v34 = vpop.f32.mrb[46].mxu1 }
0x2204   :  { %v3285_v36 = vadd.f32 %v3281_v34, %v5638_v22  ;;  %v4281_v37 = vpop.f32.mrb[47].mxu1  ;;  %v3332_v22 = vmul.f32 %v3722_v35, %v5755_v42 }
0x2206   :  { %4631 = vtanh.f32 %v3285_v36  ;;  %v3340_v7 = vsel %vm568_vm1, %v3332_v22, 0.0  ;;  %v3721_v44 = vmul.f32 -1.442695, %v3285_v36 }
0x2208   :  { %4633 = vpow2.f32 %v3721_v44 }
0x2210   :  { %v4632_v38 = vpop.eup %4631 }
0x2211   :  { %3295 = vrot.lane.b32.xlu0 %v4632_v38, %s4871_s12 }
0x2212   :  { %v4634_v45 = vpop.eup %4633 }
0x2213   :  { %v3289_v11 = vadd.f32 1.0, %v4634_v45 }
0x2215   :  { %4635 = vrcp.f32 %v3289_v11 }
0x221f   :  { %v4636_v46 = vpop.eup %4635 }
0x2220   :  { %v3293_v54 = vmul.f32 %v4636_v46, %v3200_v16 }
0x2228   :  { %v2893_v23 = vpop.permute.xlu1 %2892 }
0x2229   :  { %v2895_v39 = vmul.f32 %v4628_v14, %v2893_v23 }
0x222b   :  { %2897 = vrot.lane.b32.xlu1 %v2895_v39, %s4872_s0 }
0x224f   :  { %3338 = vadd.xlane.f32.xlu1 %v3337_v43 }
0x2253   :  { %3341 = vadd.xlane.f32.xlu1 %v3340_v7 }
0x2283   :  { %v3296_v47 = vpop.permute.xlu0 %3295 }
0x2284   :  { %v3298_v48 = vmul.f32 %v4636_v46, %v3296_v47 }
0x2286   :  { %3300 = vrot.lane.b32.xlu0 %v3298_v48, %s4872_s0 }
0x229d   :  { %v2898_v49 = vpop.permute.xlu1 %2897 }
0x229e   :  { %2900 = vst.msk [vmem:[#allocation8 + $0x18] sm:$0xff] %vm568_vm1, %v2898_v49 }
0x22a5   :  { %v5762_v50 = vld [vmem:[#allocation8 + $0x18] sm:$0xff] }
0x22a6   :  { %v3333_v52 = vmul.f32 %v3722_v35, %v5762_v50 }
0x22a8   :  { %v3343_v53 = vsel %vm568_vm1, %v3333_v52, 0.0 }
0x22a9   :  { %3344 = vadd.xlane.f32.xlu1 %v3343_v53 }
0x22dc   :  { %v3339_v17 = vpop.xlane.xlu1 %3338 }
0x22e0   :  { %v3342_v24 = vpop.xlane.xlu1 %3341 }
0x22f8   :  { %v3301_v55 = vpop.permute.xlu0 %3300 }
0x22f9   :  { %v3303_v56 = vadd.f32 %v3301_v55, %v3293_v54 }
0x22fb   :  { %4637 = vtanh.f32 %v3303_v56 }
0x2305   :  { %v4638_v57 = vpop.eup %4637 }
0x2306   :  { %3306 = vrot.lane.b32.xlu0 %v4638_v57, %s4871_s12  ;;  %v3447_v57 = vld [vmem:[%s5859_s25] sm:$0xff] }
0x2336   :  { %v3345_v30 = vpop.xlane.xlu1 %3344 }
0x2378   :  { %v3307_v58 = vpop.permute.xlu0 %3306 }
0x2379   :  { %v3309_v25 = vmul.f32 %v4636_v46, %v3307_v58  ;;  %v3448_v58 = vld [vmem:[%s5859_s25 + $0x8] sm:$0xff] }
0x237a   :  { %v4473_v60 = vpack.c.bf16 %v3448_v58, %v3447_v57 }
0x237b   :  { %3311 = vrot.lane.b32.xlu0 %v3309_v25, %s4872_s0  ;;  %v3443_v25 = vld [vmem:[%s5858_s24] sm:$0xff] }
0x237c   :  { %4474 = vmatpush3.bf16.msra.mxu0 %v4473_v60 }
0x237d   :  { %4475 = vmatprep.subr.bf16.mxu0 %v4868_v51 }
0x239a   :  { %3335 = vadd.xlane.f32.xlu0 %v3334_v63 }
0x239e   :  { %3361 = vadd.xlane.f32.xlu0 %v3360_v2  ;;  %v3449_v2 = vld [vmem:[%s5859_s25 + $0x10] sm:$0xff] }
0x23a2   :  { %3364 = vadd.xlane.f32.xlu0 %v3363_v5  ;;  %v3445_v5 = vld [vmem:[%s5858_s24 + $0x10] sm:$0xff] }
0x23ed   :  { %v3312_v8 = vpop.permute.xlu0 %3311 }
0x23ee   :  { %3314 = vst.msk [vmem:[#allocation9] sm:$0xff] %vm568_vm1, %v3312_v8  ;;  %v4476_v8 = vpack.c.bf16 %v3450_v3, %v3449_v2 }
0x23f0   :  { %4477 = vmatpush3.bf16.msra.mxu0 %v4476_v8 }
0x23f5   :  { %v5784_v9 = vld [vmem:[#allocation9] sm:$0xff] }
0x23f6   :  { %v3353_v61 = vmul.f32 %v3723_v62, %v5784_v9  ;;  %v3444_v62 = vld [vmem:[%s5858_s24 + $0x8] sm:$0xff] }
0x23f7   :  { %v4479_v1 = vpack.c.bf16 %v3444_v62, %v3443_v25 }
0x23f8   :  { %v3357_v6 = vsel %vm568_vm1, %v3353_v61, 0.0  ;;  %v3446_v61 = vld [vmem:[%s5858_s24 + $0x18] sm:$0xff] }
0x23f9   :  { %3358 = vadd.xlane.f32.xlu0 %v3357_v6  ;;  %4480 = vmatpush3.bf16.msra.mxu1 %v4479_v1  ;;  %v4482_v6 = vpack.c.bf16 %v3446_v61, %v3445_v5 }
0x23fa   :  { %4481 = vmatprep.subr.bf16.mxu1 %v4868_v51 }
0x23fd   :  { %3367 = vadd.xlane.f32.xlu0 %v3366_v13  ;;  %4483 = vmatpush3.bf16.msra.mxu1 %v4482_v6 }
0x2427   :  { %v3336_v16 = vpop.xlane.xlu0 %3335 }
0x242b   :  { %v3362_v20 = vpop.xlane.xlu0 %3361 }
0x242c   :  { %v3370_v21 = vadd.f32 %v3362_v20, %v3339_v17 }
0x242e   :  { %v3381_v18 = vadd.f32 %v3724_v26, %v3370_v21 }
0x242f   :  { %v3365_v19 = vpop.xlane.xlu0 %3364 }
0x2430   :  { %v3371_v28 = vadd.f32 %v3365_v19, %v3342_v24 }
0x2432   :  { %v3382_v32 = vadd.f32 %v3724_v26, %v3371_v28 }
0x2486   :  { %v3359_v27 = vpop.xlane.xlu0 %3358 }
0x2487   :  { %v3369_v14 = vadd.f32 %v3359_v27, %v3336_v16 }
0x2489   :  { %v3380_v29 = vadd.f32 %v3724_v26, %v3369_v14 }
0x248a   :  { %v3368_v31 = vpop.xlane.xlu0 %3367 }
0x248b   :  { %v3384_v33 = vmax.f32 %v3380_v29, %v3381_v18  ;;  %v3372_v34 = vadd.f32 %v3368_v31, %v3345_v30 }
0x248d   :  { %v3383_v36 = vadd.f32 %v3724_v26, %v3372_v34  ;;  %v3385_v37 = vmax.f32 %v3384_v33, %v3382_v32 }
0x248f   :  { %v3386_v38 = vmax.f32 %v3385_v37, %v3383_v36 }
0x2491   :  { %v3387_v23 = vsub.f32 %v3380_v29, %v3386_v38  ;;  %v3390_v39 = vsub.f32 %v3381_v18, %v3386_v38  ;;  %v3393_v35 = vsub.f32 %v3382_v32, %v3386_v38  ;;  %v3396_v41 = vsub.f32 %v3383_v36, %v3386_v38 }
0x2493   :  { %v3388_v43 = vmul.f32 1.442695, %v3387_v23  ;;  %v3391_v22 = vmul.f32 1.442695, %v3390_v39  ;;  %v3394_v7 = vmul.f32 1.442695, %v3393_v35 }
0x2494   :  { %v3397_v44 = vmul.f32 1.442695, %v3396_v41 }
0x2495   :  { %4639 = vpow2.f32 %v3388_v43 }
0x2496   :  { %4641 = vpow2.f32 %v3391_v22 }
0x2497   :  { %4643 = vpow2.f32 %v3394_v7 }
0x2498   :  { %4645 = vpow2.f32 %v3397_v44 }
0x249f   :  { %v4640_v45 = vpop.eup %4639 }
0x24a0   :  { %v4642_v11 = vpop.eup %4641 }
0x24a1   :  { %v3399_v46 = vadd.f32 %v4642_v11, %v4640_v45  ;;  %v4644_v47 = vpop.eup %4643 }
0x24a2   :  { %v4646_v49 = vpop.eup %4645 }
0x24a3   :  { %v3400_v48 = vadd.f32 %v4644_v47, %v3399_v46 }
0x24a5   :  { %v3401_v52 = vadd.f32 %v4646_v49, %v3400_v48 }
0x24a7   :  { %4647 = vrcp.f32 %v3401_v52 }
0x24b1   :  { %v4648_v53 = vpop.eup %4647 }
0x24b2   :  { %v3413_v54 = vmul.f32 %v4648_v53, %v4642_v11  ;;  %v3403_v55 = vmul.f32 %v4648_v53, %v4640_v45  ;;  %v3423_v56 = vmul.f32 %v4648_v53, %v4644_v47  ;;  %v3433_v63 = vmul.f32 %v4648_v53, %v4646_v49 }
0x24b4   :  { %3416 = vperm.xlu0 %4510, %v3413_v54   ;;  %3406 = vperm.xlu1 %4509, %v3403_v55  }
0x24b8   :  { %3426 = vperm.xlu1 %4509, %v3423_v56  }
0x24bc   :  { %3436 = vperm.xlu1 %4509, %v3433_v63  }
0x2533   :  { %v3417_v12 = vpop.permute.xlu0 %3416  ;;  %v3407_v13 = vpop.permute.xlu1 %3406 }
0x2534   :  { %v3419_v15 = vmul.f32 %v3417_v12, %v5752_v40  ;;  %v3421_v16 = vmul.f32 %v3417_v12, %v5771_v4  ;;  %v3409_v20 = vmul.f32 %v3407_v13, %v5768_v59  ;;  %v3411_v17 = vmul.f32 %v3407_v13, %v5784_v9 }
0x2536   :  { %v3420_v24 = vadd.f32 %v3419_v15, %v3409_v20  ;;  %v3422_v26 = vadd.f32 %v3421_v16, %v3411_v17 }
0x2537   :  { %v3427_v19 = vpop.permute.xlu1 %3426 }
0x2538   :  { %v3429_v51 = vmul.f32 %v3427_v19, %v5755_v42  ;;  %v3431_v21 = vmul.f32 %v3427_v19, %v5778_v0  ;;  %v3727_v42 = vld [vmem:[%s5860_s26] ss:$0 sm:$0xff] }
0x253a   :  { %v3430_v28 = vadd.f32 %v3429_v51, %v3420_v24  ;;  %v3432_v14 = vadd.f32 %v3431_v21, %v3422_v26 }
0x253b   :  { %v3437_v27 = vpop.permute.xlu1 %3436 }
0x253c   :  { %v3439_v18 = vmul.f32 %v3437_v27, %v5762_v50  ;;  %v3441_v40 = vmul.f32 %v3437_v27, %v5786_v10 }
0x253e   :  { %v3440_v29 = vadd.f32 %v3439_v18, %v3430_v28  ;;  %v3442_v4 = vadd.f32 %v3441_v40, %v3432_v14 }
0x2540   :  { %4291 = vmatmul.mubr.msk.f32.vlgmr.msra.gmra.mrb[48].mxu0 %vm568_vm1, %v3442_v4  ;;  %4302 = vmatmul.mubr.msk.f32.vlgmr.msra.gmra.mrb[48].mxu1 %vm568_vm1, %v3440_v29 }
0x2613   :  { %v3520_v59 = vpop.f32.mrb[48].mxu0  ;;  %v3593_v9 = vpop.f32.mrb[48].mxu1 }
0x2614   :  { %v3594_v0 = vadd.f32 %v3593_v9, %v3520_v59  ;;  %v4292_v30 = vpop.f32.mrb[49].mxu0  ;;  %v4303_v31 = vpop.f32.mrb[49].mxu1 }
0x2616   :  { %v3604_v32 = vadd.f32 %v3727_v42, %v3594_v0 }
0x2618   :  { %3606 = vst.msk [vmem:[%s5861_s27] sm:$0xff] %vm3605_vm3, %v3604_v32 }
0x2619   :  { %3611 = vsyncpa [#allocation12], 1 }
0x261a   :  { %3612 = vsyncpa [#allocation14], 1 }
0x261b   :  { %3613 = vsyncpa [#allocation17], 1 }
0x261c   :  { %3614 = vsyncpa [#allocation20], 1 }
0x261d   :  { %3615 = vsyncpa [#allocation23], 1 }

</bundles_post_ra>
